<compile_context>
chip_gen: v7x
topology: tpu7x:2x2x1
jax: 0.10.0
libtpu: 0.0.40
codegen_flags: <defaults>
</compile_context>

<pallas_src>
import functools

import jax
import jax.numpy as jnp
from jax.experimental import pallas as pl
from jax.experimental.pallas import tpu as pltpu


def _round_up(x, m):
    return (x + m - 1) // m * m


def _tiles(M, K, N):
    """Deterministic tile choice shared by init-time weight prep and the matmul call."""
    tm = 256 if M > 256 else _round_up(max(M, 1), 8)
    tk = 256 if K > 128 else 128
    tn = 256 if N > 128 else 128
    return tm, tk, tn


# ----------------------------------------------------------------------------
# Pallas kernels
# ----------------------------------------------------------------------------
def _matmul_bias_act_kernel(x_ref, w_ref, b_ref, o_ref, acc_ref, *, activation):
    k = pl.program_id(2)

    @pl.when(k == 0)
    def _():
        acc_ref[...] = jnp.zeros_like(acc_ref)

    acc_ref[...] += jnp.dot(x_ref[...], w_ref[...],
                            preferred_element_type=jnp.float32)

    @pl.when(k == pl.num_programs(2) - 1)
    def _():
        r = acc_ref[...] + b_ref[...]
        if activation == "relu":
            r = jnp.maximum(r, 0.0)
        elif activation == "l2norm":
            # F.normalize(p=2, dim=channel): x / max(||x||, 1e-12). Padded output
            # columns are exactly zero (zero-padded W and bias) -> don't affect norm.
            nrm2 = jnp.sum(r * r, axis=-1, keepdims=True)
            r = r * jax.lax.rsqrt(jnp.maximum(nrm2, 1e-24))
        o_ref[...] = r.astype(o_ref.dtype)


def matmul_bias_act(x, w_padded, b, activation=None):
    """Fused (M,K)@(K,N) + bias (+ReLU / +row-L2-normalize) on the MXU.

    x        : (M, K) float (cast to bf16 inside)
    w_padded : (pad_k, pad_n) bf16, pre-padded & pre-laid-out at init
    b        : (N,) float32 bias (unpadded)
    """
    M, K = x.shape
    N = b.shape[0]
    tm, tk, tn = _tiles(M, K, N)
    pad_m = _round_up(M, tm)
    pad_k = _round_up(K, tk)
    pad_n = _round_up(N, tn)
    assert w_padded.shape == (pad_k, pad_n), (w_padded.shape, (pad_k, pad_n))
    if activation == "l2norm":
        # full channel row must be resident in a single N block for the fused norm
        assert pad_n == tn

    xp = jnp.pad(x.astype(jnp.bfloat16), ((0, pad_m - M), (0, pad_k - K)))
    bp = jnp.pad(b.astype(jnp.float32), (0, pad_n - N)).reshape(1, pad_n)

    grid = (pad_m // tm, pad_n // tn, pad_k // tk)
    out = pl.pallas_call(
        functools.partial(_matmul_bias_act_kernel, activation=activation),
        out_shape=jax.ShapeDtypeStruct((pad_m, pad_n), jnp.float32),
        grid_spec=pltpu.PrefetchScalarGridSpec(
            num_scalar_prefetch=0,
            grid=grid,
            in_specs=[
                pl.BlockSpec((tm, tk), lambda i, j, k: (i, k)),
                pl.BlockSpec((tk, tn), lambda i, j, k: (k, j)),
                pl.BlockSpec((1, tn), lambda i, j, k: (0, j)),
            ],
            out_specs=pl.BlockSpec((tm, tn), lambda i, j, k: (i, j)),
            scratch_shapes=[pltpu.VMEM((tm, tn), jnp.float32)],
        ),
        compiler_params=pltpu.CompilerParams(
            dimension_semantics=("parallel", "parallel", "arbitrary"),
            vmem_limit_bytes=48 * 1024 * 1024),
    )(xp, w_padded, bp)
    return out[:M, :N]


def _cost_volume_kernel(r_ref, l_ref, o_ref):
    o_ref[0] = jnp.dot(r_ref[0], l_ref[0],
                       preferred_element_type=jnp.float32).astype(o_ref.dtype)


def cost_volume(right_nhwc, left_nhwc):
    """cv[b, h, w, i*Wl+j] = <right[b,h,w,:], left[b,i,j,:]> (channels-last)."""
    B, Hr, Wr, C = right_nhwc.shape
    _, Hl, Wl, _ = left_nhwc.shape
    M, N = Hr * Wr, Hl * Wl
    tm = 256 if M > 256 else _round_up(M, 8)
    pad_m = _round_up(M, tm)
    pad_n = _round_up(N, 128)     # lane-dense output store
    pad_c = _round_up(C, 128)

    r = right_nhwc.reshape(B, M, C).astype(jnp.bfloat16)
    # pre-transpose left in the wrapper so the kernel does a plain (M,C)@(C,N)
    l = jnp.transpose(left_nhwc.reshape(B, N, C), (0, 2, 1)).astype(jnp.bfloat16)
    rp = jnp.pad(r, ((0, 0), (0, pad_m - M), (0, pad_c - C)))
    lp = jnp.pad(l, ((0, 0), (0, pad_c - C), (0, pad_n - N)))

    cv = pl.pallas_call(
        _cost_volume_kernel,
        out_shape=jax.ShapeDtypeStruct((B, pad_m, pad_n), jnp.float32),
        grid=(B, pad_m // tm),
        in_specs=[pl.BlockSpec((1, tm, pad_c), lambda b, i: (b, i, 0)),
                  pl.BlockSpec((1, pad_c, pad_n), lambda b, i: (b, 0, 0))],
        out_specs=pl.BlockSpec((1, tm, pad_n), lambda b, i: (b, i, 0)),
        compiler_params=pltpu.CompilerParams(
            dimension_semantics=("parallel", "parallel"),
            vmem_limit_bytes=48 * 1024 * 1024),
    )(rp, lp)
    return cv[:, :M, :N].reshape(B, Hr, Wr, N)


# ----------------------------------------------------------------------------
# Conv wrappers (bf16 im2col glue in JAX, fused matmul in Pallas)
# ----------------------------------------------------------------------------
def conv2d(x_nhwc, w_padded, b, ksize, stride=1, pad=0, activation=None):
    B, H, W, Cin = x_nhwc.shape
    Ho = (H + 2 * pad - ksize) // stride + 1
    Wo = (W + 2 * pad - ksize) // stride + 1
    xb = x_nhwc.astype(jnp.bfloat16)
    if pad:
        xb = jnp.pad(xb, ((0, 0), (pad, pad), (pad, pad), (0, 0)))
    if ksize == 1 and stride == 1:
        patches = xb.reshape(B * Ho * Wo, Cin)
    else:
        cols = []
        for i in range(ksize):
            for j in range(ksize):
                cols.append(xb[:, i:i + stride * Ho:stride,
                               j:j + stride * Wo:stride, :])
        patches = jnp.concatenate(cols, axis=-1).reshape(
            B * Ho * Wo, ksize * ksize * Cin)
    out = matmul_bias_act(patches, w_padded, b, activation=activation)
    return out.reshape(B, Ho, Wo, b.shape[0])


def conv_transpose2d_s2(x_nhwc, phases, b, relu=True):
    """ConvTranspose2d(k=3, s=2, p=1, output_padding=1) via subpixel phase split:
    4 small matmuls on the original-resolution input (no zero-upsampled tensor)."""
    B, H, W, _ = x_nhwc.shape
    Cout = b.shape[0]
    act = "relu" if relu else None
    xb = x_nhwc.astype(jnp.bfloat16)
    xq = jnp.pad(xb, ((0, 0), (0, 1), (0, 1), (0, 0)))   # zero row/col at far edge
    x00 = xb                      # x[r,   c  ]
    x01 = xq[:, :H, 1:, :]        # x[r,   c+1]
    x10 = xq[:, 1:, :W, :]        # x[r+1, c  ]
    x11 = xq[:, 1:, 1:, :]        # x[r+1, c+1]

    def run(patch_list, wp):
        pat = (patch_list[0] if len(patch_list) == 1
               else jnp.concatenate(patch_list, axis=-1))
        pat = pat.reshape(B * H * W, -1)
        out = matmul_bias_act(pat, wp, b, activation=act)
        return out.reshape(B, H, W, Cout)

    ee = run([x00], phases["ee"])                 # y[2r,   2c  ]
    eo = run([x01, x00], phases["eo"])            # y[2r,   2c+1]
    oe = run([x10, x00], phases["oe"])            # y[2r+1, 2c  ]
    oo = run([x11, x10, x01, x00], phases["oo"])  # y[2r+1, 2c+1]

    row_e = jnp.stack([ee, eo], axis=3)           # (B, H, W, 2, Cout)
    row_o = jnp.stack([oe, oo], axis=3)
    y = jnp.stack([row_e, row_o], axis=2)         # (B, H, 2, W, 2, Cout)
    return y.reshape(B, 2 * H, 2 * W, Cout)


# ----------------------------------------------------------------------------
# Parameter init + one-time layout prep
# ----------------------------------------------------------------------------
def _init_conv(key, cout, cin, kh, kw):
    wk, bk = jax.random.split(key)
    fan_in = cin * kh * kw
    w = jax.random.normal(wk, (cout, cin, kh, kw), jnp.float32) / jnp.sqrt(fan_in)
    b = 0.01 * jax.random.normal(bk, (cout,), jnp.float32)
    return w, b


def _init_convT(key, cin, cout, kh, kw):
    wk, bk = jax.random.split(key)
    fan_in = cout * kh * kw
    w = jax.random.normal(wk, (cin, cout, kh, kw), jnp.float32) / jnp.sqrt(fan_in)
    b = 0.01 * jax.random.normal(bk, (cout,), jnp.float32)
    return w, b


def _pad_wmat(wmat):
    """Pad a (K, N) weight matrix to the matmul tile grid and cast to bf16 (once)."""
    K, N = wmat.shape
    _, tk, tn = _tiles(8, K, N)
    pk, pn = _round_up(K, tk), _round_up(N, tn)
    return jnp.pad(wmat.astype(jnp.bfloat16), ((0, pk - K), (0, pn - N)))


def prep_conv(w_oihw, b):
    Cout, Cin, kh, kw = w_oihw.shape
    wmat = jnp.transpose(w_oihw, (2, 3, 1, 0)).reshape(kh * kw * Cin, Cout)
    return {"w": _pad_wmat(wmat), "b": b}


def prep_convT_s2(w_iohw, b):
    """Pre-split a ConvTranspose2d(k=3, s=2, p=1, op=1) weight (Cin, Cout, 3, 3)
    into the 4 subpixel-phase matmul weights."""
    Cin, Cout, kh, kw = w_iohw.shape
    assert kh == 3 and kw == 3
    Wt = lambda i, j: w_iohw[:, :, i, j]            # (Cin, Cout)
    mk = lambda mats: _pad_wmat(jnp.concatenate(mats, axis=0))
    phases = {
        "ee": mk([Wt(1, 1)]),                                   # taps: x[r,c]
        "eo": mk([Wt(1, 0), Wt(1, 2)]),                         # x[r,c+1], x[r,c]
        "oe": mk([Wt(0, 1), Wt(2, 1)]),                         # x[r+1,c], x[r,c]
        "oo": mk([Wt(0, 0), Wt(0, 2), Wt(2, 0), Wt(2, 2)]),     # x[r+1,c+1], x[r+1,c], x[r,c+1], x[r,c]
    }
    return {"phases": phases, "b": b}


def init_params(key, cost_channels):
    ks = jax.random.split(key, 12)
    p = {}
    # TODO(synk): synthetic stand-in for build_backbone(cfg); emits 'C3' with
    # 128 channels at 1/4 resolution.
    p["backbone"] = prep_conv(*_init_conv(ks[0], 128, 3, 3, 3))
    # DescExtractor.regress
    p["reg1"] = prep_conv(*_init_conv(ks[1], 256, 128, 1, 1))
    p["reg2"] = prep_conv(*_init_conv(ks[2], 128, 256, 3, 3))
    p["reg3"] = prep_conv(*_init_conv(ks[3], 128, 128, 1, 1))
    # ScaleEstimator (3600 cost channels in the real cfg; Hl*Wl here)
    p["lin1"] = prep_conv(*_init_conv(ks[4], 256, cost_channels, 1, 1))
    p["lin2"] = prep_conv(*_init_conv(ks[5], 128, 256, 3, 3))
    p["en1"] = prep_conv(*_init_conv(ks[6], 256, 128, 3, 3))
    p["en2"] = prep_conv(*_init_conv(ks[7], 256, 256, 3, 3))
    p["up1"] = prep_convT_s2(*_init_convT(ks[8], 256, 128, 3, 3))
    p["de1"] = prep_conv(*_init_conv(ks[9], 128, 256, 3, 3))
    p["sreg"] = prep_conv(*_init_conv(ks[10], 1, 128, 3, 3))
    return p


# ----------------------------------------------------------------------------
# Forward
# ----------------------------------------------------------------------------
def desc_extractor(params, images_nhwc):
    # backbone -> feats['C3']
    feat = conv2d(images_nhwc, params["backbone"]["w"], params["backbone"]["b"],
                  ksize=3, stride=4, pad=1, activation="relu")
    # regress head; F.normalize(p=2, dim=channel) fused into the last matmul epilogue
    x = conv2d(feat, params["reg1"]["w"], params["reg1"]["b"],
               ksize=1, activation="relu")
    x = conv2d(x, params["reg2"]["w"], params["reg2"]["b"],
               ksize=3, pad=1, activation="relu")
    x = conv2d(x, params["reg3"]["w"], params["reg3"]["b"],
               ksize=1, activation="l2norm")
    return x


def scale_estimator(params, left, right):
    cv = cost_volume(right, left)
    x = conv2d(cv, params["lin1"]["w"], params["lin1"]["b"],
               ksize=1, activation="relu")
    linear = conv2d(x, params["lin2"]["w"], params["lin2"]["b"],
                    ksize=3, pad=1, activation="relu")
    x = conv2d(linear, params["en1"]["w"], params["en1"]["b"],
               ksize=3, stride=2, pad=1, activation="relu")
    en = conv2d(x, params["en2"]["w"], params["en2"]["b"],
                ksize=3, pad=1, activation="relu")
    up_en = conv_transpose2d_s2(en, params["up1"]["phases"], params["up1"]["b"],
                                relu=True)
    de = conv2d(jnp.concatenate([up_en, linear], axis=-1),
                params["de1"]["w"], params["de1"]["b"],
                ksize=3, pad=1, activation="relu")
    scale_pred = conv2d(de, params["sreg"]["w"], params["sreg"]["b"],
                        ksize=3, pad=1, activation=None)
    return scale_pred


def multiscale_net_v12(params, images0_nchw, images1_nchw):
    """Network compute of MultiScaleNetV12 (descriptors + scale prediction).

    The loss heads (MultiDescEvaluator, scale_evaluator) and logger are external
    training utilities with no definition; they are not reproduced.
    """
    x0 = jnp.transpose(images0_nchw, (0, 2, 3, 1))  # NCHW -> NHWC
    x1 = jnp.transpose(images1_nchw, (0, 2, 3, 1))
    descs0 = desc_extractor(params, x0)
    descs1 = desc_extractor(params, x1)
    scale_pred = scale_estimator(params, descs0, descs1)
    # back to PyTorch NCHW conventions
    return (jnp.transpose(descs0, (0, 3, 1, 2)),
            jnp.transpose(descs1, (0, 3, 1, 2)),
            jnp.transpose(scale_pred, (0, 3, 1, 2)))


# ----------------------------------------------------------------------------
if __name__ == "__main__":
    B, C, H, W = 2, 3, 16, 16
    key = jax.random.PRNGKey(0)
    k0, k1, kp = jax.random.split(key, 3)
    images0 = jax.random.normal(k0, (B, C, H, W), jnp.float32)
    images1 = jax.random.normal(k1, (B, C, H, W), jnp.float32)

    # feature ('C3') resolution is H/4 x W/4 -> cost-volume channels = (H/4)*(W/4)
    feat_h, feat_w = H // 4, W // 4
    params = init_params(kp, cost_channels=feat_h * feat_w)

    fwd = jax.jit(multiscale_net_v12)
    descs0, descs1, scale_pred = fwd(params, images0, images1)
    jax.block_until_ready((descs0, descs1, scale_pred))

    assert descs0.shape == (B, 128, feat_h, feat_w)
    assert descs1.shape == (B, 128, feat_h, feat_w)
    assert scale_pred.shape == (B, 1, feat_h, feat_w)
    # descriptors are unit-norm along the channel dim (norm computed in f32)
    assert jnp.allclose(jnp.sum(descs0 ** 2, axis=1), 1.0, atol=1e-3)
    assert jnp.all(jnp.isfinite(scale_pred))

    print("KERNEL_OK")
</pallas_src>

<mosaic_0001>
module attributes {stable_mosaic.version = 11 : i64} {
  func.func @_matmul_bias_act_kernel(%arg0: i32, %arg1: i32, %arg2: i32, %arg3: memref<32x128xbf16, #tpu.memory_space<vmem>>, %arg4: memref<128x128xbf16, #tpu.memory_space<vmem>>, %arg5: memref<1x128xf32, #tpu.memory_space<vmem>>, %arg6: memref<32x128xf32, #tpu.memory_space<vmem>>, %arg7: memref<32x128xf32, #tpu.memory_space<vmem>>) attributes {dimension_semantics = [#tpu.dimension_semantics<parallel>, #tpu.dimension_semantics<parallel>, #tpu.dimension_semantics<arbitrary>], iteration_bounds = array<i64: 1, 1, 1>, scalar_prefetch = 0 : i64, scratch_operands = 1 : i64, tpu.core_type = #tpu.core_type<tc>, window_params = [{transform_indices = @transform_0, window_bounds = array<i64: 32, 128>}, {transform_indices = @transform_1, window_bounds = array<i64: 128, 128>}, {transform_indices = @transform_2, window_bounds = array<i64: 1, 128>}, {transform_indices = @transform_3, window_bounds = array<i64: 32, 128>}]} {
    %c0_i32 = arith.constant 0 : i32
    %0 = arith.cmpi eq, %arg2, %c0_i32 : i32
    %1 = arith.extui %0 : i1 to i32
    %c0_i32_0 = arith.constant 0 : i32
    %2 = arith.cmpi ne, %1, %c0_i32_0 : i32
    scf.if %2 {
      %cst_10 = arith.constant 0.000000e+00 : f32
      %12 = vector.broadcast %cst_10 : f32 to vector<32x128xf32>
      %c0_11 = arith.constant 0 : index
      %c0_12 = arith.constant 0 : index
      %13 = vector.load %arg7[%c0_11, %c0_12] : memref<32x128xf32, #tpu.memory_space<vmem>>, vector<32x128xf32>
      tpu.vector_store %arg7[%c0_11, %c0_12], %12 {strides = array<i32>} : memref<32x128xf32, #tpu.memory_space<vmem>>, vector<32x128xf32>,
    } else {
    }
    %c0 = arith.constant 0 : index
    %c0_1 = arith.constant 0 : index
    %3 = vector.load %arg7[%c0, %c0_1] : memref<32x128xf32, #tpu.memory_space<vmem>>, vector<32x128xf32>
    %c0_2 = arith.constant 0 : index
    %c0_3 = arith.constant 0 : index
    %4 = vector.load %arg3[%c0_2, %c0_3] : memref<32x128xbf16, #tpu.memory_space<vmem>>, vector<32x128xbf16>
    %c0_4 = arith.constant 0 : index
    %c0_5 = arith.constant 0 : index
    %5 = vector.load %arg4[%c0_4, %c0_5] : memref<128x128xbf16, #tpu.memory_space<vmem>>, vector<128x128xbf16>
    %cst = arith.constant dense<0.000000e+00> : vector<32x128xf32>
    %6 = tpu.matmul %4, %5, %cst {dimension_numbers = #tpu.dot_dimension_numbers<[1], [0], [0], [1], [0, 0, 1, 1], [], []>} : vector<32x128xbf16>, vector<128x128xbf16>, vector<32x128xf32> -> vector<32x128xf32>
    %7 = arith.addf %3, %6 : vector<32x128xf32>
    %c0_6 = arith.constant 0 : index
    %c0_7 = arith.constant 0 : index
    %8 = vector.load %arg7[%c0_6, %c0_7] : memref<32x128xf32, #tpu.memory_space<vmem>>, vector<32x128xf32>
    tpu.vector_store %arg7[%c0_6, %c0_7], %7 {strides = array<i32>} : memref<32x128xf32, #tpu.memory_space<vmem>>, vector<32x128xf32>,
    %c0_i32_8 = arith.constant 0 : i32
    %9 = arith.cmpi eq, %arg2, %c0_i32_8 : i32
    %10 = arith.extui %9 : i1 to i32
    %c0_i32_9 = arith.constant 0 : i32
    %11 = arith.cmpi ne, %10, %c0_i32_9 : i32
    scf.if %11 {
      %c0_10 = arith.constant 0 : index
      %c0_11 = arith.constant 0 : index
      %12 = vector.load %arg7[%c0_10, %c0_11] : memref<32x128xf32, #tpu.memory_space<vmem>>, vector<32x128xf32>
      %c0_12 = arith.constant 0 : index
      %c0_13 = arith.constant 0 : index
      %13 = vector.load %arg5[%c0_12, %c0_13] : memref<1x128xf32, #tpu.memory_space<vmem>>, vector<1x128xf32>
      %14 = vector.broadcast %13 : vector<1x128xf32> to vector<32x128xf32>
      %15 = arith.addf %12, %14 : vector<32x128xf32>
      %cst_14 = arith.constant 0.000000e+00 : f32
      %16 = vector.broadcast %cst_14 : f32 to vector<32x128xf32>
      %17 = arith.maximumf %15, %16 : vector<32x128xf32>
      %c0_15 = arith.constant 0 : index
      %c0_16 = arith.constant 0 : index
      %18 = vector.load %arg6[%c0_15, %c0_16] : memref<32x128xf32, #tpu.memory_space<vmem>>, vector<32x128xf32>
      tpu.vector_store %arg6[%c0_15, %c0_16], %17 {strides = array<i32>} : memref<32x128xf32, #tpu.memory_space<vmem>>, vector<32x128xf32>,
    } else {
    }
    return
  }
  func.func @transform_0(%arg0: i32, %arg1: i32, %arg2: i32) -> (i32, i32) {
    %c0_i32 = arith.constant 0 : i32
    return %arg0, %arg2 : i32, i32
  }
  func.func @transform_1(%arg0: i32, %arg1: i32, %arg2: i32) -> (i32, i32) {
    %c0_i32 = arith.constant 0 : i32
    return %arg2, %arg1 : i32, i32
  }
  func.func @transform_2(%arg0: i32, %arg1: i32, %arg2: i32) -> (i32, i32) {
    %c0_i32 = arith.constant 0 : i32
    %c0_i32_0 = arith.constant 0 : i32
    return %c0_i32, %arg1 : i32, i32
  }
  func.func @transform_3(%arg0: i32, %arg1: i32, %arg2: i32) -> (i32, i32) {
    %c0_i32 = arith.constant 0 : i32
    return %arg0, %arg1 : i32, i32
  }
}

module attributes {stable_mosaic.version = 11 : i64} {
  func.func @_matmul_bias_act_kernel(%arg0: i32, %arg1: i32, %arg2: i32, %arg3: memref<32x128xbf16, #tpu.memory_space<vmem>>, %arg4: memref<128x256xbf16, #tpu.memory_space<vmem>>, %arg5: memref<1x256xf32, #tpu.memory_space<vmem>>, %arg6: memref<32x256xf32, #tpu.memory_space<vmem>>, %arg7: memref<32x256xf32, #tpu.memory_space<vmem>>) attributes {dimension_semantics = [#tpu.dimension_semantics<parallel>, #tpu.dimension_semantics<parallel>, #tpu.dimension_semantics<arbitrary>], iteration_bounds = array<i64: 1, 1, 1>, scalar_prefetch = 0 : i64, scratch_operands = 1 : i64, tpu.core_type = #tpu.core_type<tc>, window_params = [{transform_indices = @transform_0, window_bounds = array<i64: 32, 128>}, {transform_indices = @transform_1, window_bounds = array<i64: 128, 256>}, {transform_indices = @transform_2, window_bounds = array<i64: 1, 256>}, {transform_indices = @transform_3, window_bounds = array<i64: 32, 256>}]} {
    %c0_i32 = arith.constant 0 : i32
    %0 = arith.cmpi eq, %arg2, %c0_i32 : i32
    %1 = arith.extui %0 : i1 to i32
    %c0_i32_0 = arith.constant 0 : i32
    %2 = arith.cmpi ne, %1, %c0_i32_0 : i32
    scf.if %2 {
      %cst_10 = arith.constant 0.000000e+00 : f32
      %12 = vector.broadcast %cst_10 : f32 to vector<32x256xf32>
      %c0_11 = arith.constant 0 : index
      %c0_12 = arith.constant 0 : index
      %13 = vector.load %arg7[%c0_11, %c0_12] : memref<32x256xf32, #tpu.memory_space<vmem>>, vector<32x256xf32>
      tpu.vector_store %arg7[%c0_11, %c0_12], %12 {strides = array<i32>} : memref<32x256xf32, #tpu.memory_space<vmem>>, vector<32x256xf32>,
    } else {
    }
    %c0 = arith.constant 0 : index
    %c0_1 = arith.constant 0 : index
    %3 = vector.load %arg7[%c0, %c0_1] : memref<32x256xf32, #tpu.memory_space<vmem>>, vector<32x256xf32>
    %c0_2 = arith.constant 0 : index
    %c0_3 = arith.constant 0 : index
    %4 = vector.load %arg3[%c0_2, %c0_3] : memref<32x128xbf16, #tpu.memory_space<vmem>>, vector<32x128xbf16>
    %c0_4 = arith.constant 0 : index
    %c0_5 = arith.constant 0 : index
    %5 = vector.load %arg4[%c0_4, %c0_5] : memref<128x256xbf16, #tpu.memory_space<vmem>>, vector<128x256xbf16>
    %cst = arith.constant dense<0.000000e+00> : vector<32x256xf32>
    %6 = tpu.matmul %4, %5, %cst {dimension_numbers = #tpu.dot_dimension_numbers<[1], [0], [0], [1], [0, 0, 1, 1], [], []>} : vector<32x128xbf16>, vector<128x256xbf16>, vector<32x256xf32> -> vector<32x256xf32>
    %7 = arith.addf %3, %6 : vector<32x256xf32>
    %c0_6 = arith.constant 0 : index
    %c0_7 = arith.constant 0 : index
    %8 = vector.load %arg7[%c0_6, %c0_7] : memref<32x256xf32, #tpu.memory_space<vmem>>, vector<32x256xf32>
    tpu.vector_store %arg7[%c0_6, %c0_7], %7 {strides = array<i32>} : memref<32x256xf32, #tpu.memory_space<vmem>>, vector<32x256xf32>,
    %c0_i32_8 = arith.constant 0 : i32
    %9 = arith.cmpi eq, %arg2, %c0_i32_8 : i32
    %10 = arith.extui %9 : i1 to i32
    %c0_i32_9 = arith.constant 0 : i32
    %11 = arith.cmpi ne, %10, %c0_i32_9 : i32
    scf.if %11 {
      %c0_10 = arith.constant 0 : index
      %c0_11 = arith.constant 0 : index
      %12 = vector.load %arg7[%c0_10, %c0_11] : memref<32x256xf32, #tpu.memory_space<vmem>>, vector<32x256xf32>
      %c0_12 = arith.constant 0 : index
      %c0_13 = arith.constant 0 : index
      %13 = vector.load %arg5[%c0_12, %c0_13] : memref<1x256xf32, #tpu.memory_space<vmem>>, vector<1x256xf32>
      %14 = vector.broadcast %13 : vector<1x256xf32> to vector<32x256xf32>
      %15 = arith.addf %12, %14 : vector<32x256xf32>
      %cst_14 = arith.constant 0.000000e+00 : f32
      %16 = vector.broadcast %cst_14 : f32 to vector<32x256xf32>
      %17 = arith.maximumf %15, %16 : vector<32x256xf32>
      %c0_15 = arith.constant 0 : index
      %c0_16 = arith.constant 0 : index
      %18 = vector.load %arg6[%c0_15, %c0_16] : memref<32x256xf32, #tpu.memory_space<vmem>>, vector<32x256xf32>
      tpu.vector_store %arg6[%c0_15, %c0_16], %17 {strides = array<i32>} : memref<32x256xf32, #tpu.memory_space<vmem>>, vector<32x256xf32>,
    } else {
    }
    return
  }
  func.func @transform_0(%arg0: i32, %arg1: i32, %arg2: i32) -> (i32, i32) {
    %c0_i32 = arith.constant 0 : i32
    return %arg0, %arg2 : i32, i32
  }
  func.func @transform_1(%arg0: i32, %arg1: i32, %arg2: i32) -> (i32, i32) {
    %c0_i32 = arith.constant 0 : i32
    return %arg2, %arg1 : i32, i32
  }
  func.func @transform_2(%arg0: i32, %arg1: i32, %arg2: i32) -> (i32, i32) {
    %c0_i32 = arith.constant 0 : i32
    %c0_i32_0 = arith.constant 0 : i32
    return %c0_i32, %arg1 : i32, i32
  }
  func.func @transform_3(%arg0: i32, %arg1: i32, %arg2: i32) -> (i32, i32) {
    %c0_i32 = arith.constant 0 : i32
    return %arg0, %arg1 : i32, i32
  }
}

module attributes {stable_mosaic.version = 11 : i64} {
  func.func @_matmul_bias_act_kernel(%arg0: i32, %arg1: i32, %arg2: i32, %arg3: memref<32x256xbf16, #tpu.memory_space<vmem>>, %arg4: memref<256x128xbf16, #tpu.memory_space<vmem>>, %arg5: memref<1x128xf32, #tpu.memory_space<vmem>>, %arg6: memref<32x128xf32, #tpu.memory_space<vmem>>, %arg7: memref<32x128xf32, #tpu.memory_space<vmem>>) attributes {dimension_semantics = [#tpu.dimension_semantics<parallel>, #tpu.dimension_semantics<parallel>, #tpu.dimension_semantics<arbitrary>], iteration_bounds = array<i64: 1, 1, 9>, scalar_prefetch = 0 : i64, scratch_operands = 1 : i64, tpu.core_type = #tpu.core_type<tc>, window_params = [{transform_indices = @transform_0, window_bounds = array<i64: 32, 256>}, {transform_indices = @transform_1, window_bounds = array<i64: 256, 128>}, {transform_indices = @transform_2, window_bounds = array<i64: 1, 128>}, {transform_indices = @transform_3, window_bounds = array<i64: 32, 128>}]} {
    %c0_i32 = arith.constant 0 : i32
    %0 = arith.cmpi eq, %arg2, %c0_i32 : i32
    %1 = arith.extui %0 : i1 to i32
    %c0_i32_0 = arith.constant 0 : i32
    %2 = arith.cmpi ne, %1, %c0_i32_0 : i32
    scf.if %2 {
      %cst_9 = arith.constant 0.000000e+00 : f32
      %12 = vector.broadcast %cst_9 : f32 to vector<32x128xf32>
      %c0_10 = arith.constant 0 : index
      %c0_11 = arith.constant 0 : index
      %13 = vector.load %arg7[%c0_10, %c0_11] : memref<32x128xf32, #tpu.memory_space<vmem>>, vector<32x128xf32>
      tpu.vector_store %arg7[%c0_10, %c0_11], %12 {strides = array<i32>} : memref<32x128xf32, #tpu.memory_space<vmem>>, vector<32x128xf32>,
    } else {
    }
    %c0 = arith.constant 0 : index
    %c0_1 = arith.constant 0 : index
    %3 = vector.load %arg7[%c0, %c0_1] : memref<32x128xf32, #tpu.memory_space<vmem>>, vector<32x128xf32>
    %c0_2 = arith.constant 0 : index
    %c0_3 = arith.constant 0 : index
    %4 = vector.load %arg3[%c0_2, %c0_3] : memref<32x256xbf16, #tpu.memory_space<vmem>>, vector<32x256xbf16>
    %c0_4 = arith.constant 0 : index
    %c0_5 = arith.constant 0 : index
    %5 = vector.load %arg4[%c0_4, %c0_5] : memref<256x128xbf16, #tpu.memory_space<vmem>>, vector<256x128xbf16>
    %cst = arith.constant dense<0.000000e+00> : vector<32x128xf32>
    %6 = tpu.matmul %4, %5, %cst {dimension_numbers = #tpu.dot_dimension_numbers<[1], [0], [0], [1], [0, 0, 1, 1], [], []>} : vector<32x256xbf16>, vector<256x128xbf16>, vector<32x128xf32> -> vector<32x128xf32>
    %7 = arith.addf %3, %6 : vector<32x128xf32>
    %c0_6 = arith.constant 0 : index
    %c0_7 = arith.constant 0 : index
    %8 = vector.load %arg7[%c0_6, %c0_7] : memref<32x128xf32, #tpu.memory_space<vmem>>, vector<32x128xf32>
    tpu.vector_store %arg7[%c0_6, %c0_7], %7 {strides = array<i32>} : memref<32x128xf32, #tpu.memory_space<vmem>>, vector<32x128xf32>,
    %c8_i32 = arith.constant 8 : i32
    %9 = arith.cmpi eq, %arg2, %c8_i32 : i32
    %10 = arith.extui %9 : i1 to i32
    %c0_i32_8 = arith.constant 0 : i32
    %11 = arith.cmpi ne, %10, %c0_i32_8 : i32
    scf.if %11 {
      %c0_9 = arith.constant 0 : index
      %c0_10 = arith.constant 0 : index
      %12 = vector.load %arg7[%c0_9, %c0_10] : memref<32x128xf32, #tpu.memory_space<vmem>>, vector<32x128xf32>
      %c0_11 = arith.constant 0 : index
      %c0_12 = arith.constant 0 : index
      %13 = vector.load %arg5[%c0_11, %c0_12] : memref<1x128xf32, #tpu.memory_space<vmem>>, vector<1x128xf32>
      %14 = vector.broadcast %13 : vector<1x128xf32> to vector<32x128xf32>
      %15 = arith.addf %12, %14 : vector<32x128xf32>
      %cst_13 = arith.constant 0.000000e+00 : f32
      %16 = vector.broadcast %cst_13 : f32 to vector<32x128xf32>
      %17 = arith.maximumf %15, %16 : vector<32x128xf32>
      %c0_14 = arith.constant 0 : index
      %c0_15 = arith.constant 0 : index
      %18 = vector.load %arg6[%c0_14, %c0_15] : memref<32x128xf32, #tpu.memory_space<vmem>>, vector<32x128xf32>
      tpu.vector_store %arg6[%c0_14, %c0_15], %17 {strides = array<i32>} : memref<32x128xf32, #tpu.memory_space<vmem>>, vector<32x128xf32>,
    } else {
    }
    return
  }
  func.func @transform_0(%arg0: i32, %arg1: i32, %arg2: i32) -> (i32, i32) {
    %c0_i32 = arith.constant 0 : i32
    return %arg0, %arg2 : i32, i32
  }
  func.func @transform_1(%arg0: i32, %arg1: i32, %arg2: i32) -> (i32, i32) {
    %c0_i32 = arith.constant 0 : i32
    return %arg2, %arg1 : i32, i32
  }
  func.func @transform_2(%arg0: i32, %arg1: i32, %arg2: i32) -> (i32, i32) {
    %c0_i32 = arith.constant 0 : i32
    %c0_i32_0 = arith.constant 0 : i32
    return %c0_i32, %arg1 : i32, i32
  }
  func.func @transform_3(%arg0: i32, %arg1: i32, %arg2: i32) -> (i32, i32) {
    %c0_i32 = arith.constant 0 : i32
    return %arg0, %arg1 : i32, i32
  }
}

module attributes {stable_mosaic.version = 11 : i64} {
  func.func @_matmul_bias_act_kernel(%arg0: i32, %arg1: i32, %arg2: i32, %arg3: memref<32x128xbf16, #tpu.memory_space<vmem>>, %arg4: memref<128x128xbf16, #tpu.memory_space<vmem>>, %arg5: memref<1x128xf32, #tpu.memory_space<vmem>>, %arg6: memref<32x128xf32, #tpu.memory_space<vmem>>, %arg7: memref<32x128xf32, #tpu.memory_space<vmem>>) attributes {dimension_semantics = [#tpu.dimension_semantics<parallel>, #tpu.dimension_semantics<parallel>, #tpu.dimension_semantics<arbitrary>], iteration_bounds = array<i64: 1, 1, 1>, scalar_prefetch = 0 : i64, scratch_operands = 1 : i64, tpu.core_type = #tpu.core_type<tc>, window_params = [{transform_indices = @transform_0, window_bounds = array<i64: 32, 128>}, {transform_indices = @transform_1, window_bounds = array<i64: 128, 128>}, {transform_indices = @transform_2, window_bounds = array<i64: 1, 128>}, {transform_indices = @transform_3, window_bounds = array<i64: 32, 128>}]} {
    %c0_i32 = arith.constant 0 : i32
    %0 = arith.cmpi eq, %arg2, %c0_i32 : i32
    %1 = arith.extui %0 : i1 to i32
    %c0_i32_0 = arith.constant 0 : i32
    %2 = arith.cmpi ne, %1, %c0_i32_0 : i32
    scf.if %2 {
      %cst_10 = arith.constant 0.000000e+00 : f32
      %12 = vector.broadcast %cst_10 : f32 to vector<32x128xf32>
      %c0_11 = arith.constant 0 : index
      %c0_12 = arith.constant 0 : index
      %13 = vector.load %arg7[%c0_11, %c0_12] : memref<32x128xf32, #tpu.memory_space<vmem>>, vector<32x128xf32>
      tpu.vector_store %arg7[%c0_11, %c0_12], %12 {strides = array<i32>} : memref<32x128xf32, #tpu.memory_space<vmem>>, vector<32x128xf32>,
    } else {
    }
    %c0 = arith.constant 0 : index
    %c0_1 = arith.constant 0 : index
    %3 = vector.load %arg7[%c0, %c0_1] : memref<32x128xf32, #tpu.memory_space<vmem>>, vector<32x128xf32>
    %c0_2 = arith.constant 0 : index
    %c0_3 = arith.constant 0 : index
    %4 = vector.load %arg3[%c0_2, %c0_3] : memref<32x128xbf16, #tpu.memory_space<vmem>>, vector<32x128xbf16>
    %c0_4 = arith.constant 0 : index
    %c0_5 = arith.constant 0 : index
    %5 = vector.load %arg4[%c0_4, %c0_5] : memref<128x128xbf16, #tpu.memory_space<vmem>>, vector<128x128xbf16>
    %cst = arith.constant dense<0.000000e+00> : vector<32x128xf32>
    %6 = tpu.matmul %4, %5, %cst {dimension_numbers = #tpu.dot_dimension_numbers<[1], [0], [0], [1], [0, 0, 1, 1], [], []>} : vector<32x128xbf16>, vector<128x128xbf16>, vector<32x128xf32> -> vector<32x128xf32>
    %7 = arith.addf %3, %6 : vector<32x128xf32>
    %c0_6 = arith.constant 0 : index
    %c0_7 = arith.constant 0 : index
    %8 = vector.load %arg7[%c0_6, %c0_7] : memref<32x128xf32, #tpu.memory_space<vmem>>, vector<32x128xf32>
    tpu.vector_store %arg7[%c0_6, %c0_7], %7 {strides = array<i32>} : memref<32x128xf32, #tpu.memory_space<vmem>>, vector<32x128xf32>,
    %c0_i32_8 = arith.constant 0 : i32
    %9 = arith.cmpi eq, %arg2, %c0_i32_8 : i32
    %10 = arith.extui %9 : i1 to i32
    %c0_i32_9 = arith.constant 0 : i32
    %11 = arith.cmpi ne, %10, %c0_i32_9 : i32
    scf.if %11 {
      %c0_10 = arith.constant 0 : index
      %c0_11 = arith.constant 0 : index
      %12 = vector.load %arg7[%c0_10, %c0_11] : memref<32x128xf32, #tpu.memory_space<vmem>>, vector<32x128xf32>
      %c0_12 = arith.constant 0 : index
      %c0_13 = arith.constant 0 : index
      %13 = vector.load %arg5[%c0_12, %c0_13] : memref<1x128xf32, #tpu.memory_space<vmem>>, vector<1x128xf32>
      %14 = vector.broadcast %13 : vector<1x128xf32> to vector<32x128xf32>
      %15 = arith.addf %12, %14 : vector<32x128xf32>
      %16 = arith.mulf %15, %15 : vector<32x128xf32>
      %cst_14 = arith.constant dense<0.000000e+00> : vector<32xf32>
      %17 = vector.multi_reduction <add>, %16, %cst_14 [1] : vector<32x128xf32> to vector<32xf32>
      %18 = vector.shape_cast %17 : vector<32xf32> to vector<32x1xf32>
      %cst_15 = arith.constant 1.000000e-24 : f32
      %19 = vector.broadcast %cst_15 : f32 to vector<32x1xf32>
      %20 = arith.maximumf %18, %19 : vector<32x1xf32>
      %21 = math.rsqrt %20 : vector<32x1xf32>
      %22 = vector.broadcast %21 : vector<32x1xf32> to vector<32x128xf32>
      %23 = arith.mulf %15, %22 : vector<32x128xf32>
      %c0_16 = arith.constant 0 : index
      %c0_17 = arith.constant 0 : index
      %24 = vector.load %arg6[%c0_16, %c0_17] : memref<32x128xf32, #tpu.memory_space<vmem>>, vector<32x128xf32>
      tpu.vector_store %arg6[%c0_16, %c0_17], %23 {strides = array<i32>} : memref<32x128xf32, #tpu.memory_space<vmem>>, vector<32x128xf32>,
    } else {
    }
    return
  }
  func.func @transform_0(%arg0: i32, %arg1: i32, %arg2: i32) -> (i32, i32) {
    %c0_i32 = arith.constant 0 : i32
    return %arg0, %arg2 : i32, i32
  }
  func.func @transform_1(%arg0: i32, %arg1: i32, %arg2: i32) -> (i32, i32) {
    %c0_i32 = arith.constant 0 : i32
    return %arg2, %arg1 : i32, i32
  }
  func.func @transform_2(%arg0: i32, %arg1: i32, %arg2: i32) -> (i32, i32) {
    %c0_i32 = arith.constant 0 : i32
    %c0_i32_0 = arith.constant 0 : i32
    return %c0_i32, %arg1 : i32, i32
  }
  func.func @transform_3(%arg0: i32, %arg1: i32, %arg2: i32) -> (i32, i32) {
    %c0_i32 = arith.constant 0 : i32
    return %arg0, %arg1 : i32, i32
  }
}

module attributes {stable_mosaic.version = 11 : i64} {
  func.func @_matmul_bias_act_kernel(%arg0: i32, %arg1: i32, %arg2: i32, %arg3: memref<32x128xbf16, #tpu.memory_space<vmem>>, %arg4: memref<128x256xbf16, #tpu.memory_space<vmem>>, %arg5: memref<1x256xf32, #tpu.memory_space<vmem>>, %arg6: memref<32x256xf32, #tpu.memory_space<vmem>>, %arg7: memref<32x256xf32, #tpu.memory_space<vmem>>) attributes {dimension_semantics = [#tpu.dimension_semantics<parallel>, #tpu.dimension_semantics<parallel>, #tpu.dimension_semantics<arbitrary>], iteration_bounds = array<i64: 1, 1, 1>, scalar_prefetch = 0 : i64, scratch_operands = 1 : i64, tpu.core_type = #tpu.core_type<tc>, window_params = [{transform_indices = @transform_0, window_bounds = array<i64: 32, 128>}, {transform_indices = @transform_1, window_bounds = array<i64: 128, 256>}, {transform_indices = @transform_2, window_bounds = array<i64: 1, 256>}, {transform_indices = @transform_3, window_bounds = array<i64: 32, 256>}]} {
    %c0_i32 = arith.constant 0 : i32
    %0 = arith.cmpi eq, %arg2, %c0_i32 : i32
    %1 = arith.extui %0 : i1 to i32
    %c0_i32_0 = arith.constant 0 : i32
    %2 = arith.cmpi ne, %1, %c0_i32_0 : i32
    scf.if %2 {
      %cst_10 = arith.constant 0.000000e+00 : f32
      %12 = vector.broadcast %cst_10 : f32 to vector<32x256xf32>
      %c0_11 = arith.constant 0 : index
      %c0_12 = arith.constant 0 : index
      %13 = vector.load %arg7[%c0_11, %c0_12] : memref<32x256xf32, #tpu.memory_space<vmem>>, vector<32x256xf32>
      tpu.vector_store %arg7[%c0_11, %c0_12], %12 {strides = array<i32>} : memref<32x256xf32, #tpu.memory_space<vmem>>, vector<32x256xf32>,
    } else {
    }
    %c0 = arith.constant 0 : index
    %c0_1 = arith.constant 0 : index
    %3 = vector.load %arg7[%c0, %c0_1] : memref<32x256xf32, #tpu.memory_space<vmem>>, vector<32x256xf32>
    %c0_2 = arith.constant 0 : index
    %c0_3 = arith.constant 0 : index
    %4 = vector.load %arg3[%c0_2, %c0_3] : memref<32x128xbf16, #tpu.memory_space<vmem>>, vector<32x128xbf16>
    %c0_4 = arith.constant 0 : index
    %c0_5 = arith.constant 0 : index
    %5 = vector.load %arg4[%c0_4, %c0_5] : memref<128x256xbf16, #tpu.memory_space<vmem>>, vector<128x256xbf16>
    %cst = arith.constant dense<0.000000e+00> : vector<32x256xf32>
    %6 = tpu.matmul %4, %5, %cst {dimension_numbers = #tpu.dot_dimension_numbers<[1], [0], [0], [1], [0, 0, 1, 1], [], []>} : vector<32x128xbf16>, vector<128x256xbf16>, vector<32x256xf32> -> vector<32x256xf32>
    %7 = arith.addf %3, %6 : vector<32x256xf32>
    %c0_6 = arith.constant 0 : index
    %c0_7 = arith.constant 0 : index
    %8 = vector.load %arg7[%c0_6, %c0_7] : memref<32x256xf32, #tpu.memory_space<vmem>>, vector<32x256xf32>
    tpu.vector_store %arg7[%c0_6, %c0_7], %7 {strides = array<i32>} : memref<32x256xf32, #tpu.memory_space<vmem>>, vector<32x256xf32>,
    %c0_i32_8 = arith.constant 0 : i32
    %9 = arith.cmpi eq, %arg2, %c0_i32_8 : i32
    %10 = arith.extui %9 : i1 to i32
    %c0_i32_9 = arith.constant 0 : i32
    %11 = arith.cmpi ne, %10, %c0_i32_9 : i32
    scf.if %11 {
      %c0_10 = arith.constant 0 : index
      %c0_11 = arith.constant 0 : index
      %12 = vector.load %arg7[%c0_10, %c0_11] : memref<32x256xf32, #tpu.memory_space<vmem>>, vector<32x256xf32>
      %c0_12 = arith.constant 0 : index
      %c0_13 = arith.constant 0 : index
      %13 = vector.load %arg5[%c0_12, %c0_13] : memref<1x256xf32, #tpu.memory_space<vmem>>, vector<1x256xf32>
      %14 = vector.broadcast %13 : vector<1x256xf32> to vector<32x256xf32>
      %15 = arith.addf %12, %14 : vector<32x256xf32>
      %cst_14 = arith.constant 0.000000e+00 : f32
      %16 = vector.broadcast %cst_14 : f32 to vector<32x256xf32>
      %17 = arith.maximumf %15, %16 : vector<32x256xf32>
      %c0_15 = arith.constant 0 : index
      %c0_16 = arith.constant 0 : index
      %18 = vector.load %arg6[%c0_15, %c0_16] : memref<32x256xf32, #tpu.memory_space<vmem>>, vector<32x256xf32>
      tpu.vector_store %arg6[%c0_15, %c0_16], %17 {strides = array<i32>} : memref<32x256xf32, #tpu.memory_space<vmem>>, vector<32x256xf32>,
    } else {
    }
    return
  }
  func.func @transform_0(%arg0: i32, %arg1: i32, %arg2: i32) -> (i32, i32) {
    %c0_i32 = arith.constant 0 : i32
    return %arg0, %arg2 : i32, i32
  }
  func.func @transform_1(%arg0: i32, %arg1: i32, %arg2: i32) -> (i32, i32) {
    %c0_i32 = arith.constant 0 : i32
    return %arg2, %arg1 : i32, i32
  }
  func.func @transform_2(%arg0: i32, %arg1: i32, %arg2: i32) -> (i32, i32) {
    %c0_i32 = arith.constant 0 : i32
    %c0_i32_0 = arith.constant 0 : i32
    return %c0_i32, %arg1 : i32, i32
  }
  func.func @transform_3(%arg0: i32, %arg1: i32, %arg2: i32) -> (i32, i32) {
    %c0_i32 = arith.constant 0 : i32
    return %arg0, %arg1 : i32, i32
  }
}

module attributes {stable_mosaic.version = 11 : i64} {
  func.func @_matmul_bias_act_kernel(%arg0: i32, %arg1: i32, %arg2: i32, %arg3: memref<32x128xbf16, #tpu.memory_space<vmem>>, %arg4: memref<128x128xbf16, #tpu.memory_space<vmem>>, %arg5: memref<1x128xf32, #tpu.memory_space<vmem>>, %arg6: memref<32x128xf32, #tpu.memory_space<vmem>>, %arg7: memref<32x128xf32, #tpu.memory_space<vmem>>) attributes {dimension_semantics = [#tpu.dimension_semantics<parallel>, #tpu.dimension_semantics<parallel>, #tpu.dimension_semantics<arbitrary>], iteration_bounds = array<i64: 1, 1, 1>, scalar_prefetch = 0 : i64, scratch_operands = 1 : i64, tpu.core_type = #tpu.core_type<tc>, window_params = [{transform_indices = @transform_0, window_bounds = array<i64: 32, 128>}, {transform_indices = @transform_1, window_bounds = array<i64: 128, 128>}, {transform_indices = @transform_2, window_bounds = array<i64: 1, 128>}, {transform_indices = @transform_3, window_bounds = array<i64: 32, 128>}]} {
    %c0_i32 = arith.constant 0 : i32
    %0 = arith.cmpi eq, %arg2, %c0_i32 : i32
    %1 = arith.extui %0 : i1 to i32
    %c0_i32_0 = arith.constant 0 : i32
    %2 = arith.cmpi ne, %1, %c0_i32_0 : i32
    scf.if %2 {
      %cst_10 = arith.constant 0.000000e+00 : f32
      %12 = vector.broadcast %cst_10 : f32 to vector<32x128xf32>
      %c0_11 = arith.constant 0 : index
      %c0_12 = arith.constant 0 : index
      %13 = vector.load %arg7[%c0_11, %c0_12] : memref<32x128xf32, #tpu.memory_space<vmem>>, vector<32x128xf32>
      tpu.vector_store %arg7[%c0_11, %c0_12], %12 {strides = array<i32>} : memref<32x128xf32, #tpu.memory_space<vmem>>, vector<32x128xf32>,
    } else {
    }
    %c0 = arith.constant 0 : index
    %c0_1 = arith.constant 0 : index
    %3 = vector.load %arg7[%c0, %c0_1] : memref<32x128xf32, #tpu.memory_space<vmem>>, vector<32x128xf32>
    %c0_2 = arith.constant 0 : index
    %c0_3 = arith.constant 0 : index
    %4 = vector.load %arg3[%c0_2, %c0_3] : memref<32x128xbf16, #tpu.memory_space<vmem>>, vector<32x128xbf16>
    %c0_4 = arith.constant 0 : index
    %c0_5 = arith.constant 0 : index
    %5 = vector.load %arg4[%c0_4, %c0_5] : memref<128x128xbf16, #tpu.memory_space<vmem>>, vector<128x128xbf16>
    %cst = arith.constant dense<0.000000e+00> : vector<32x128xf32>
    %6 = tpu.matmul %4, %5, %cst {dimension_numbers = #tpu.dot_dimension_numbers<[1], [0], [0], [1], [0, 0, 1, 1], [], []>} : vector<32x128xbf16>, vector<128x128xbf16>, vector<32x128xf32> -> vector<32x128xf32>
    %7 = arith.addf %3, %6 : vector<32x128xf32>
    %c0_6 = arith.constant 0 : index
    %c0_7 = arith.constant 0 : index
    %8 = vector.load %arg7[%c0_6, %c0_7] : memref<32x128xf32, #tpu.memory_space<vmem>>, vector<32x128xf32>
    tpu.vector_store %arg7[%c0_6, %c0_7], %7 {strides = array<i32>} : memref<32x128xf32, #tpu.memory_space<vmem>>, vector<32x128xf32>,
    %c0_i32_8 = arith.constant 0 : i32
    %9 = arith.cmpi eq, %arg2, %c0_i32_8 : i32
    %10 = arith.extui %9 : i1 to i32
    %c0_i32_9 = arith.constant 0 : i32
    %11 = arith.cmpi ne, %10, %c0_i32_9 : i32
    scf.if %11 {
      %c0_10 = arith.constant 0 : index
      %c0_11 = arith.constant 0 : index
      %12 = vector.load %arg7[%c0_10, %c0_11] : memref<32x128xf32, #tpu.memory_space<vmem>>, vector<32x128xf32>
      %c0_12 = arith.constant 0 : index
      %c0_13 = arith.constant 0 : index
      %13 = vector.load %arg5[%c0_12, %c0_13] : memref<1x128xf32, #tpu.memory_space<vmem>>, vector<1x128xf32>
      %14 = vector.broadcast %13 : vector<1x128xf32> to vector<32x128xf32>
      %15 = arith.addf %12, %14 : vector<32x128xf32>
      %cst_14 = arith.constant 0.000000e+00 : f32
      %16 = vector.broadcast %cst_14 : f32 to vector<32x128xf32>
      %17 = arith.maximumf %15, %16 : vector<32x128xf32>
      %c0_15 = arith.constant 0 : index
      %c0_16 = arith.constant 0 : index
      %18 = vector.load %arg6[%c0_15, %c0_16] : memref<32x128xf32, #tpu.memory_space<vmem>>, vector<32x128xf32>
      tpu.vector_store %arg6[%c0_15, %c0_16], %17 {strides = array<i32>} : memref<32x128xf32, #tpu.memory_space<vmem>>, vector<32x128xf32>,
    } else {
    }
    return
  }
  func.func @transform_0(%arg0: i32, %arg1: i32, %arg2: i32) -> (i32, i32) {
    %c0_i32 = arith.constant 0 : i32
    return %arg0, %arg2 : i32, i32
  }
  func.func @transform_1(%arg0: i32, %arg1: i32, %arg2: i32) -> (i32, i32) {
    %c0_i32 = arith.constant 0 : i32
    return %arg2, %arg1 : i32, i32
  }
  func.func @transform_2(%arg0: i32, %arg1: i32, %arg2: i32) -> (i32, i32) {
    %c0_i32 = arith.constant 0 : i32
    %c0_i32_0 = arith.constant 0 : i32
    return %c0_i32, %arg1 : i32, i32
  }
  func.func @transform_3(%arg0: i32, %arg1: i32, %arg2: i32) -> (i32, i32) {
    %c0_i32 = arith.constant 0 : i32
    return %arg0, %arg1 : i32, i32
  }
}

module attributes {stable_mosaic.version = 11 : i64} {
  func.func @_cost_volume_kernel(%arg0: i32, %arg1: i32, %arg2: memref<1x16x128xbf16, #tpu.memory_space<vmem>>, %arg3: memref<1x128x128xbf16, #tpu.memory_space<vmem>>, %arg4: memref<1x16x128xf32, #tpu.memory_space<vmem>>) attributes {dimension_semantics = [#tpu.dimension_semantics<parallel>, #tpu.dimension_semantics<parallel>], iteration_bounds = array<i64: 2, 1>, scalar_prefetch = 0 : i64, scratch_operands = 0 : i64, tpu.core_type = #tpu.core_type<tc>, window_params = [{transform_indices = @transform_0, window_bounds = array<i64: 1, 16, 128>}, {transform_indices = @transform_1, window_bounds = array<i64: 1, 128, 128>}, {transform_indices = @transform_2, window_bounds = array<i64: 1, 16, 128>}]} {
    %c0 = arith.constant 0 : index
    %c0_0 = arith.constant 0 : index
    %c0_1 = arith.constant 0 : index
    %0 = vector.load %arg2[%c0, %c0_0, %c0_1] : memref<1x16x128xbf16, #tpu.memory_space<vmem>>, vector<1x16x128xbf16>
    %1 = vector.shape_cast %0 : vector<1x16x128xbf16> to vector<16x128xbf16>
    %c0_2 = arith.constant 0 : index
    %c0_3 = arith.constant 0 : index
    %c0_4 = arith.constant 0 : index
    %2 = vector.load %arg3[%c0_2, %c0_3, %c0_4] : memref<1x128x128xbf16, #tpu.memory_space<vmem>>, vector<1x128x128xbf16>
    %3 = vector.shape_cast %2 : vector<1x128x128xbf16> to vector<128x128xbf16>
    %cst = arith.constant dense<0.000000e+00> : vector<16x128xf32>
    %4 = tpu.matmul %1, %3, %cst {dimension_numbers = #tpu.dot_dimension_numbers<[1], [0], [0], [1], [0, 0, 1, 1], [], []>} : vector<16x128xbf16>, vector<128x128xbf16>, vector<16x128xf32> -> vector<16x128xf32>
    %c0_5 = arith.constant 0 : index
    %c0_6 = arith.constant 0 : index
    %c0_7 = arith.constant 0 : index
    %5 = vector.load %arg4[%c0_5, %c0_6, %c0_7] : memref<1x16x128xf32, #tpu.memory_space<vmem>>, vector<1x16x128xf32>
    %6 = vector.shape_cast %5 : vector<1x16x128xf32> to vector<16x128xf32>
    %7 = vector.shape_cast %4 : vector<16x128xf32> to vector<1x16x128xf32>
    tpu.vector_store %arg4[%c0_5, %c0_6, %c0_7], %7 {strides = array<i32>} : memref<1x16x128xf32, #tpu.memory_space<vmem>>, vector<1x16x128xf32>,
    return
  }
  func.func @transform_0(%arg0: i32, %arg1: i32) -> (i32, i32, i32) {
    %c0_i32 = arith.constant 0 : i32
    %c0_i32_0 = arith.constant 0 : i32
    return %arg0, %arg1, %c0_i32 : i32, i32, i32
  }
  func.func @transform_1(%arg0: i32, %arg1: i32) -> (i32, i32, i32) {
    %c0_i32 = arith.constant 0 : i32
    %c0_i32_0 = arith.constant 0 : i32
    %c0_i32_1 = arith.constant 0 : i32
    return %arg0, %c0_i32, %c0_i32_0 : i32, i32, i32
  }
  func.func @transform_2(%arg0: i32, %arg1: i32) -> (i32, i32, i32) {
    %c0_i32 = arith.constant 0 : i32
    %c0_i32_0 = arith.constant 0 : i32
    return %arg0, %arg1, %c0_i32 : i32, i32, i32
  }
}

module attributes {stable_mosaic.version = 11 : i64} {
  func.func @_matmul_bias_act_kernel(%arg0: i32, %arg1: i32, %arg2: i32, %arg3: memref<8x256xbf16, #tpu.memory_space<vmem>>, %arg4: memref<256x256xbf16, #tpu.memory_space<vmem>>, %arg5: memref<1x256xf32, #tpu.memory_space<vmem>>, %arg6: memref<8x256xf32, #tpu.memory_space<vmem>>, %arg7: memref<8x256xf32, #tpu.memory_space<vmem>>) attributes {dimension_semantics = [#tpu.dimension_semantics<parallel>, #tpu.dimension_semantics<parallel>, #tpu.dimension_semantics<arbitrary>], iteration_bounds = array<i64: 1, 1, 5>, scalar_prefetch = 0 : i64, scratch_operands = 1 : i64, tpu.core_type = #tpu.core_type<tc>, window_params = [{transform_indices = @transform_0, window_bounds = array<i64: 8, 256>}, {transform_indices = @transform_1, window_bounds = array<i64: 256, 256>}, {transform_indices = @transform_2, window_bounds = array<i64: 1, 256>}, {transform_indices = @transform_3, window_bounds = array<i64: 8, 256>}]} {
    %c0_i32 = arith.constant 0 : i32
    %0 = arith.cmpi eq, %arg2, %c0_i32 : i32
    %1 = arith.extui %0 : i1 to i32
    %c0_i32_0 = arith.constant 0 : i32
    %2 = arith.cmpi ne, %1, %c0_i32_0 : i32
    scf.if %2 {
      %cst_9 = arith.constant 0.000000e+00 : f32
      %12 = vector.broadcast %cst_9 : f32 to vector<8x256xf32>
      %c0_10 = arith.constant 0 : index
      %c0_11 = arith.constant 0 : index
      %13 = vector.load %arg7[%c0_10, %c0_11] : memref<8x256xf32, #tpu.memory_space<vmem>>, vector<8x256xf32>
      tpu.vector_store %arg7[%c0_10, %c0_11], %12 {strides = array<i32>} : memref<8x256xf32, #tpu.memory_space<vmem>>, vector<8x256xf32>,
    } else {
    }
    %c0 = arith.constant 0 : index
    %c0_1 = arith.constant 0 : index
    %3 = vector.load %arg7[%c0, %c0_1] : memref<8x256xf32, #tpu.memory_space<vmem>>, vector<8x256xf32>
    %c0_2 = arith.constant 0 : index
    %c0_3 = arith.constant 0 : index
    %4 = vector.load %arg3[%c0_2, %c0_3] : memref<8x256xbf16, #tpu.memory_space<vmem>>, vector<8x256xbf16>
    %c0_4 = arith.constant 0 : index
    %c0_5 = arith.constant 0 : index
    %5 = vector.load %arg4[%c0_4, %c0_5] : memref<256x256xbf16, #tpu.memory_space<vmem>>, vector<256x256xbf16>
    %cst = arith.constant dense<0.000000e+00> : vector<8x256xf32>
    %6 = tpu.matmul %4, %5, %cst {dimension_numbers = #tpu.dot_dimension_numbers<[1], [0], [0], [1], [0, 0, 1, 1], [], []>} : vector<8x256xbf16>, vector<256x256xbf16>, vector<8x256xf32> -> vector<8x256xf32>
    %7 = arith.addf %3, %6 : vector<8x256xf32>
    %c0_6 = arith.constant 0 : index
    %c0_7 = arith.constant 0 : index
    %8 = vector.load %arg7[%c0_6, %c0_7] : memref<8x256xf32, #tpu.memory_space<vmem>>, vector<8x256xf32>
    tpu.vector_store %arg7[%c0_6, %c0_7], %7 {strides = array<i32>} : memref<8x256xf32, #tpu.memory_space<vmem>>, vector<8x256xf32>,
    %c4_i32 = arith.constant 4 : i32
    %9 = arith.cmpi eq, %arg2, %c4_i32 : i32
    %10 = arith.extui %9 : i1 to i32
    %c0_i32_8 = arith.constant 0 : i32
    %11 = arith.cmpi ne, %10, %c0_i32_8 : i32
    scf.if %11 {
      %c0_9 = arith.constant 0 : index
      %c0_10 = arith.constant 0 : index
      %12 = vector.load %arg7[%c0_9, %c0_10] : memref<8x256xf32, #tpu.memory_space<vmem>>, vector<8x256xf32>
      %c0_11 = arith.constant 0 : index
      %c0_12 = arith.constant 0 : index
      %13 = vector.load %arg5[%c0_11, %c0_12] : memref<1x256xf32, #tpu.memory_space<vmem>>, vector<1x256xf32>
      %14 = vector.broadcast %13 : vector<1x256xf32> to vector<8x256xf32>
      %15 = arith.addf %12, %14 : vector<8x256xf32>
      %cst_13 = arith.constant 0.000000e+00 : f32
      %16 = vector.broadcast %cst_13 : f32 to vector<8x256xf32>
      %17 = arith.maximumf %15, %16 : vector<8x256xf32>
      %c0_14 = arith.constant 0 : index
      %c0_15 = arith.constant 0 : index
      %18 = vector.load %arg6[%c0_14, %c0_15] : memref<8x256xf32, #tpu.memory_space<vmem>>, vector<8x256xf32>
      tpu.vector_store %arg6[%c0_14, %c0_15], %17 {strides = array<i32>} : memref<8x256xf32, #tpu.memory_space<vmem>>, vector<8x256xf32>,
    } else {
    }
    return
  }
  func.func @transform_0(%arg0: i32, %arg1: i32, %arg2: i32) -> (i32, i32) {
    %c0_i32 = arith.constant 0 : i32
    return %arg0, %arg2 : i32, i32
  }
  func.func @transform_1(%arg0: i32, %arg1: i32, %arg2: i32) -> (i32, i32) {
    %c0_i32 = arith.constant 0 : i32
    return %arg2, %arg1 : i32, i32
  }
  func.func @transform_2(%arg0: i32, %arg1: i32, %arg2: i32) -> (i32, i32) {
    %c0_i32 = arith.constant 0 : i32
    %c0_i32_0 = arith.constant 0 : i32
    return %c0_i32, %arg1 : i32, i32
  }
  func.func @transform_3(%arg0: i32, %arg1: i32, %arg2: i32) -> (i32, i32) {
    %c0_i32 = arith.constant 0 : i32
    return %arg0, %arg1 : i32, i32
  }
}

module attributes {stable_mosaic.version = 11 : i64} {
  func.func @_matmul_bias_act_kernel(%arg0: i32, %arg1: i32, %arg2: i32, %arg3: memref<8x256xbf16, #tpu.memory_space<vmem>>, %arg4: memref<256x256xbf16, #tpu.memory_space<vmem>>, %arg5: memref<1x256xf32, #tpu.memory_space<vmem>>, %arg6: memref<8x256xf32, #tpu.memory_space<vmem>>, %arg7: memref<8x256xf32, #tpu.memory_space<vmem>>) attributes {dimension_semantics = [#tpu.dimension_semantics<parallel>, #tpu.dimension_semantics<parallel>, #tpu.dimension_semantics<arbitrary>], iteration_bounds = array<i64: 1, 1, 9>, scalar_prefetch = 0 : i64, scratch_operands = 1 : i64, tpu.core_type = #tpu.core_type<tc>, window_params = [{transform_indices = @transform_0, window_bounds = array<i64: 8, 256>}, {transform_indices = @transform_1, window_bounds = array<i64: 256, 256>}, {transform_indices = @transform_2, window_bounds = array<i64: 1, 256>}, {transform_indices = @transform_3, window_bounds = array<i64: 8, 256>}]} {
    %c0_i32 = arith.constant 0 : i32
    %0 = arith.cmpi eq, %arg2, %c0_i32 : i32
    %1 = arith.extui %0 : i1 to i32
    %c0_i32_0 = arith.constant 0 : i32
    %2 = arith.cmpi ne, %1, %c0_i32_0 : i32
    scf.if %2 {
      %cst_9 = arith.constant 0.000000e+00 : f32
      %12 = vector.broadcast %cst_9 : f32 to vector<8x256xf32>
      %c0_10 = arith.constant 0 : index
      %c0_11 = arith.constant 0 : index
      %13 = vector.load %arg7[%c0_10, %c0_11] : memref<8x256xf32, #tpu.memory_space<vmem>>, vector<8x256xf32>
      tpu.vector_store %arg7[%c0_10, %c0_11], %12 {strides = array<i32>} : memref<8x256xf32, #tpu.memory_space<vmem>>, vector<8x256xf32>,
    } else {
    }
    %c0 = arith.constant 0 : index
    %c0_1 = arith.constant 0 : index
    %3 = vector.load %arg7[%c0, %c0_1] : memref<8x256xf32, #tpu.memory_space<vmem>>, vector<8x256xf32>
    %c0_2 = arith.constant 0 : index
    %c0_3 = arith.constant 0 : index
    %4 = vector.load %arg3[%c0_2, %c0_3] : memref<8x256xbf16, #tpu.memory_space<vmem>>, vector<8x256xbf16>
    %c0_4 = arith.constant 0 : index
    %c0_5 = arith.constant 0 : index
    %5 = vector.load %arg4[%c0_4, %c0_5] : memref<256x256xbf16, #tpu.memory_space<vmem>>, vector<256x256xbf16>
    %cst = arith.constant dense<0.000000e+00> : vector<8x256xf32>
    %6 = tpu.matmul %4, %5, %cst {dimension_numbers = #tpu.dot_dimension_numbers<[1], [0], [0], [1], [0, 0, 1, 1], [], []>} : vector<8x256xbf16>, vector<256x256xbf16>, vector<8x256xf32> -> vector<8x256xf32>
    %7 = arith.addf %3, %6 : vector<8x256xf32>
    %c0_6 = arith.constant 0 : index
    %c0_7 = arith.constant 0 : index
    %8 = vector.load %arg7[%c0_6, %c0_7] : memref<8x256xf32, #tpu.memory_space<vmem>>, vector<8x256xf32>
    tpu.vector_store %arg7[%c0_6, %c0_7], %7 {strides = array<i32>} : memref<8x256xf32, #tpu.memory_space<vmem>>, vector<8x256xf32>,
    %c8_i32 = arith.constant 8 : i32
    %9 = arith.cmpi eq, %arg2, %c8_i32 : i32
    %10 = arith.extui %9 : i1 to i32
    %c0_i32_8 = arith.constant 0 : i32
    %11 = arith.cmpi ne, %10, %c0_i32_8 : i32
    scf.if %11 {
      %c0_9 = arith.constant 0 : index
      %c0_10 = arith.constant 0 : index
      %12 = vector.load %arg7[%c0_9, %c0_10] : memref<8x256xf32, #tpu.memory_space<vmem>>, vector<8x256xf32>
      %c0_11 = arith.constant 0 : index
      %c0_12 = arith.constant 0 : index
      %13 = vector.load %arg5[%c0_11, %c0_12] : memref<1x256xf32, #tpu.memory_space<vmem>>, vector<1x256xf32>
      %14 = vector.broadcast %13 : vector<1x256xf32> to vector<8x256xf32>
      %15 = arith.addf %12, %14 : vector<8x256xf32>
      %cst_13 = arith.constant 0.000000e+00 : f32
      %16 = vector.broadcast %cst_13 : f32 to vector<8x256xf32>
      %17 = arith.maximumf %15, %16 : vector<8x256xf32>
      %c0_14 = arith.constant 0 : index
      %c0_15 = arith.constant 0 : index
      %18 = vector.load %arg6[%c0_14, %c0_15] : memref<8x256xf32, #tpu.memory_space<vmem>>, vector<8x256xf32>
      tpu.vector_store %arg6[%c0_14, %c0_15], %17 {strides = array<i32>} : memref<8x256xf32, #tpu.memory_space<vmem>>, vector<8x256xf32>,
    } else {
    }
    return
  }
  func.func @transform_0(%arg0: i32, %arg1: i32, %arg2: i32) -> (i32, i32) {
    %c0_i32 = arith.constant 0 : i32
    return %arg0, %arg2 : i32, i32
  }
  func.func @transform_1(%arg0: i32, %arg1: i32, %arg2: i32) -> (i32, i32) {
    %c0_i32 = arith.constant 0 : i32
    return %arg2, %arg1 : i32, i32
  }
  func.func @transform_2(%arg0: i32, %arg1: i32, %arg2: i32) -> (i32, i32) {
    %c0_i32 = arith.constant 0 : i32
    %c0_i32_0 = arith.constant 0 : i32
    return %c0_i32, %arg1 : i32, i32
  }
  func.func @transform_3(%arg0: i32, %arg1: i32, %arg2: i32) -> (i32, i32) {
    %c0_i32 = arith.constant 0 : i32
    return %arg0, %arg1 : i32, i32
  }
}

module attributes {stable_mosaic.version = 11 : i64} {
  func.func @_matmul_bias_act_kernel(%arg0: i32, %arg1: i32, %arg2: i32, %arg3: memref<8x256xbf16, #tpu.memory_space<vmem>>, %arg4: memref<256x128xbf16, #tpu.memory_space<vmem>>, %arg5: memref<1x128xf32, #tpu.memory_space<vmem>>, %arg6: memref<8x128xf32, #tpu.memory_space<vmem>>, %arg7: memref<8x128xf32, #tpu.memory_space<vmem>>) attributes {dimension_semantics = [#tpu.dimension_semantics<parallel>, #tpu.dimension_semantics<parallel>, #tpu.dimension_semantics<arbitrary>], iteration_bounds = array<i64: 1, 1, 4>, scalar_prefetch = 0 : i64, scratch_operands = 1 : i64, tpu.core_type = #tpu.core_type<tc>, window_params = [{transform_indices = @transform_0, window_bounds = array<i64: 8, 256>}, {transform_indices = @transform_1, window_bounds = array<i64: 256, 128>}, {transform_indices = @transform_2, window_bounds = array<i64: 1, 128>}, {transform_indices = @transform_3, window_bounds = array<i64: 8, 128>}]} {
    %c0_i32 = arith.constant 0 : i32
    %0 = arith.cmpi eq, %arg2, %c0_i32 : i32
    %1 = arith.extui %0 : i1 to i32
    %c0_i32_0 = arith.constant 0 : i32
    %2 = arith.cmpi ne, %1, %c0_i32_0 : i32
    scf.if %2 {
      %cst_9 = arith.constant 0.000000e+00 : f32
      %12 = vector.broadcast %cst_9 : f32 to vector<8x128xf32>
      %c0_10 = arith.constant 0 : index
      %c0_11 = arith.constant 0 : index
      %13 = vector.load %arg7[%c0_10, %c0_11] : memref<8x128xf32, #tpu.memory_space<vmem>>, vector<8x128xf32>
      tpu.vector_store %arg7[%c0_10, %c0_11], %12 {strides = array<i32>} : memref<8x128xf32, #tpu.memory_space<vmem>>, vector<8x128xf32>,
    } else {
    }
    %c0 = arith.constant 0 : index
    %c0_1 = arith.constant 0 : index
    %3 = vector.load %arg7[%c0, %c0_1] : memref<8x128xf32, #tpu.memory_space<vmem>>, vector<8x128xf32>
    %c0_2 = arith.constant 0 : index
    %c0_3 = arith.constant 0 : index
    %4 = vector.load %arg3[%c0_2, %c0_3] : memref<8x256xbf16, #tpu.memory_space<vmem>>, vector<8x256xbf16>
    %c0_4 = arith.constant 0 : index
    %c0_5 = arith.constant 0 : index
    %5 = vector.load %arg4[%c0_4, %c0_5] : memref<256x128xbf16, #tpu.memory_space<vmem>>, vector<256x128xbf16>
    %cst = arith.constant dense<0.000000e+00> : vector<8x128xf32>
    %6 = tpu.matmul %4, %5, %cst {dimension_numbers = #tpu.dot_dimension_numbers<[1], [0], [0], [1], [0, 0, 1, 1], [], []>} : vector<8x256xbf16>, vector<256x128xbf16>, vector<8x128xf32> -> vector<8x128xf32>
    %7 = arith.addf %3, %6 : vector<8x128xf32>
    %c0_6 = arith.constant 0 : index
    %c0_7 = arith.constant 0 : index
    %8 = vector.load %arg7[%c0_6, %c0_7] : memref<8x128xf32, #tpu.memory_space<vmem>>, vector<8x128xf32>
    tpu.vector_store %arg7[%c0_6, %c0_7], %7 {strides = array<i32>} : memref<8x128xf32, #tpu.memory_space<vmem>>, vector<8x128xf32>,
    %c3_i32 = arith.constant 3 : i32
    %9 = arith.cmpi eq, %arg2, %c3_i32 : i32
    %10 = arith.extui %9 : i1 to i32
    %c0_i32_8 = arith.constant 0 : i32
    %11 = arith.cmpi ne, %10, %c0_i32_8 : i32
    scf.if %11 {
      %c0_9 = arith.constant 0 : index
      %c0_10 = arith.constant 0 : index
      %12 = vector.load %arg7[%c0_9, %c0_10] : memref<8x128xf32, #tpu.memory_space<vmem>>, vector<8x128xf32>
      %c0_11 = arith.constant 0 : index
      %c0_12 = arith.constant 0 : index
      %13 = vector.load %arg5[%c0_11, %c0_12] : memref<1x128xf32, #tpu.memory_space<vmem>>, vector<1x128xf32>
      %14 = vector.broadcast %13 : vector<1x128xf32> to vector<8x128xf32>
      %15 = arith.addf %12, %14 : vector<8x128xf32>
      %cst_13 = arith.constant 0.000000e+00 : f32
      %16 = vector.broadcast %cst_13 : f32 to vector<8x128xf32>
      %17 = arith.maximumf %15, %16 : vector<8x128xf32>
      %c0_14 = arith.constant 0 : index
      %c0_15 = arith.constant 0 : index
      %18 = vector.load %arg6[%c0_14, %c0_15] : memref<8x128xf32, #tpu.memory_space<vmem>>, vector<8x128xf32>
      tpu.vector_store %arg6[%c0_14, %c0_15], %17 {strides = array<i32>} : memref<8x128xf32, #tpu.memory_space<vmem>>, vector<8x128xf32>,
    } else {
    }
    return
  }
  func.func @transform_0(%arg0: i32, %arg1: i32, %arg2: i32) -> (i32, i32) {
    %c0_i32 = arith.constant 0 : i32
    return %arg0, %arg2 : i32, i32
  }
  func.func @transform_1(%arg0: i32, %arg1: i32, %arg2: i32) -> (i32, i32) {
    %c0_i32 = arith.constant 0 : i32
    return %arg2, %arg1 : i32, i32
  }
  func.func @transform_2(%arg0: i32, %arg1: i32, %arg2: i32) -> (i32, i32) {
    %c0_i32 = arith.constant 0 : i32
    %c0_i32_0 = arith.constant 0 : i32
    return %c0_i32, %arg1 : i32, i32
  }
  func.func @transform_3(%arg0: i32, %arg1: i32, %arg2: i32) -> (i32, i32) {
    %c0_i32 = arith.constant 0 : i32
    return %arg0, %arg1 : i32, i32
  }
}

module attributes {stable_mosaic.version = 11 : i64} {
  func.func @_matmul_bias_act_kernel(%arg0: i32, %arg1: i32, %arg2: i32, %arg3: memref<8x256xbf16, #tpu.memory_space<vmem>>, %arg4: memref<256x128xbf16, #tpu.memory_space<vmem>>, %arg5: memref<1x128xf32, #tpu.memory_space<vmem>>, %arg6: memref<8x128xf32, #tpu.memory_space<vmem>>, %arg7: memref<8x128xf32, #tpu.memory_space<vmem>>) attributes {dimension_semantics = [#tpu.dimension_semantics<parallel>, #tpu.dimension_semantics<parallel>, #tpu.dimension_semantics<arbitrary>], iteration_bounds = array<i64: 1, 1, 2>, scalar_prefetch = 0 : i64, scratch_operands = 1 : i64, tpu.core_type = #tpu.core_type<tc>, window_params = [{transform_indices = @transform_0, window_bounds = array<i64: 8, 256>}, {transform_indices = @transform_1, window_bounds = array<i64: 256, 128>}, {transform_indices = @transform_2, window_bounds = array<i64: 1, 128>}, {transform_indices = @transform_3, window_bounds = array<i64: 8, 128>}]} {
    %c0_i32 = arith.constant 0 : i32
    %0 = arith.cmpi eq, %arg2, %c0_i32 : i32
    %1 = arith.extui %0 : i1 to i32
    %c0_i32_0 = arith.constant 0 : i32
    %2 = arith.cmpi ne, %1, %c0_i32_0 : i32
    scf.if %2 {
      %cst_9 = arith.constant 0.000000e+00 : f32
      %12 = vector.broadcast %cst_9 : f32 to vector<8x128xf32>
      %c0_10 = arith.constant 0 : index
      %c0_11 = arith.constant 0 : index
      %13 = vector.load %arg7[%c0_10, %c0_11] : memref<8x128xf32, #tpu.memory_space<vmem>>, vector<8x128xf32>
      tpu.vector_store %arg7[%c0_10, %c0_11], %12 {strides = array<i32>} : memref<8x128xf32, #tpu.memory_space<vmem>>, vector<8x128xf32>,
    } else {
    }
    %c0 = arith.constant 0 : index
    %c0_1 = arith.constant 0 : index
    %3 = vector.load %arg7[%c0, %c0_1] : memref<8x128xf32, #tpu.memory_space<vmem>>, vector<8x128xf32>
    %c0_2 = arith.constant 0 : index
    %c0_3 = arith.constant 0 : index
    %4 = vector.load %arg3[%c0_2, %c0_3] : memref<8x256xbf16, #tpu.memory_space<vmem>>, vector<8x256xbf16>
    %c0_4 = arith.constant 0 : index
    %c0_5 = arith.constant 0 : index
    %5 = vector.load %arg4[%c0_4, %c0_5] : memref<256x128xbf16, #tpu.memory_space<vmem>>, vector<256x128xbf16>
    %cst = arith.constant dense<0.000000e+00> : vector<8x128xf32>
    %6 = tpu.matmul %4, %5, %cst {dimension_numbers = #tpu.dot_dimension_numbers<[1], [0], [0], [1], [0, 0, 1, 1], [], []>} : vector<8x256xbf16>, vector<256x128xbf16>, vector<8x128xf32> -> vector<8x128xf32>
    %7 = arith.addf %3, %6 : vector<8x128xf32>
    %c0_6 = arith.constant 0 : index
    %c0_7 = arith.constant 0 : index
    %8 = vector.load %arg7[%c0_6, %c0_7] : memref<8x128xf32, #tpu.memory_space<vmem>>, vector<8x128xf32>
    tpu.vector_store %arg7[%c0_6, %c0_7], %7 {strides = array<i32>} : memref<8x128xf32, #tpu.memory_space<vmem>>, vector<8x128xf32>,
    %c1_i32 = arith.constant 1 : i32
    %9 = arith.cmpi eq, %arg2, %c1_i32 : i32
    %10 = arith.extui %9 : i1 to i32
    %c0_i32_8 = arith.constant 0 : i32
    %11 = arith.cmpi ne, %10, %c0_i32_8 : i32
    scf.if %11 {
      %c0_9 = arith.constant 0 : index
      %c0_10 = arith.constant 0 : index
      %12 = vector.load %arg7[%c0_9, %c0_10] : memref<8x128xf32, #tpu.memory_space<vmem>>, vector<8x128xf32>
      %c0_11 = arith.constant 0 : index
      %c0_12 = arith.constant 0 : index
      %13 = vector.load %arg5[%c0_11, %c0_12] : memref<1x128xf32, #tpu.memory_space<vmem>>, vector<1x128xf32>
      %14 = vector.broadcast %13 : vector<1x128xf32> to vector<8x128xf32>
      %15 = arith.addf %12, %14 : vector<8x128xf32>
      %cst_13 = arith.constant 0.000000e+00 : f32
      %16 = vector.broadcast %cst_13 : f32 to vector<8x128xf32>
      %17 = arith.maximumf %15, %16 : vector<8x128xf32>
      %c0_14 = arith.constant 0 : index
      %c0_15 = arith.constant 0 : index
      %18 = vector.load %arg6[%c0_14, %c0_15] : memref<8x128xf32, #tpu.memory_space<vmem>>, vector<8x128xf32>
      tpu.vector_store %arg6[%c0_14, %c0_15], %17 {strides = array<i32>} : memref<8x128xf32, #tpu.memory_space<vmem>>, vector<8x128xf32>,
    } else {
    }
    return
  }
  func.func @transform_0(%arg0: i32, %arg1: i32, %arg2: i32) -> (i32, i32) {
    %c0_i32 = arith.constant 0 : i32
    return %arg0, %arg2 : i32, i32
  }
  func.func @transform_1(%arg0: i32, %arg1: i32, %arg2: i32) -> (i32, i32) {
    %c0_i32 = arith.constant 0 : i32
    return %arg2, %arg1 : i32, i32
  }
  func.func @transform_2(%arg0: i32, %arg1: i32, %arg2: i32) -> (i32, i32) {
    %c0_i32 = arith.constant 0 : i32
    %c0_i32_0 = arith.constant 0 : i32
    return %c0_i32, %arg1 : i32, i32
  }
  func.func @transform_3(%arg0: i32, %arg1: i32, %arg2: i32) -> (i32, i32) {
    %c0_i32 = arith.constant 0 : i32
    return %arg0, %arg1 : i32, i32
  }
}

module attributes {stable_mosaic.version = 11 : i64} {
  func.func @_matmul_bias_act_kernel(%arg0: i32, %arg1: i32, %arg2: i32, %arg3: memref<8x256xbf16, #tpu.memory_space<vmem>>, %arg4: memref<256x128xbf16, #tpu.memory_space<vmem>>, %arg5: memref<1x128xf32, #tpu.memory_space<vmem>>, %arg6: memref<8x128xf32, #tpu.memory_space<vmem>>, %arg7: memref<8x128xf32, #tpu.memory_space<vmem>>) attributes {dimension_semantics = [#tpu.dimension_semantics<parallel>, #tpu.dimension_semantics<parallel>, #tpu.dimension_semantics<arbitrary>], iteration_bounds = array<i64: 1, 1, 1>, scalar_prefetch = 0 : i64, scratch_operands = 1 : i64, tpu.core_type = #tpu.core_type<tc>, window_params = [{transform_indices = @transform_0, window_bounds = array<i64: 8, 256>}, {transform_indices = @transform_1, window_bounds = array<i64: 256, 128>}, {transform_indices = @transform_2, window_bounds = array<i64: 1, 128>}, {transform_indices = @transform_3, window_bounds = array<i64: 8, 128>}]} {
    %c0_i32 = arith.constant 0 : i32
    %0 = arith.cmpi eq, %arg2, %c0_i32 : i32
    %1 = arith.extui %0 : i1 to i32
    %c0_i32_0 = arith.constant 0 : i32
    %2 = arith.cmpi ne, %1, %c0_i32_0 : i32
    scf.if %2 {
      %cst_10 = arith.constant 0.000000e+00 : f32
      %12 = vector.broadcast %cst_10 : f32 to vector<8x128xf32>
      %c0_11 = arith.constant 0 : index
      %c0_12 = arith.constant 0 : index
      %13 = vector.load %arg7[%c0_11, %c0_12] : memref<8x128xf32, #tpu.memory_space<vmem>>, vector<8x128xf32>
      tpu.vector_store %arg7[%c0_11, %c0_12], %12 {strides = array<i32>} : memref<8x128xf32, #tpu.memory_space<vmem>>, vector<8x128xf32>,
    } else {
    }
    %c0 = arith.constant 0 : index
    %c0_1 = arith.constant 0 : index
    %3 = vector.load %arg7[%c0, %c0_1] : memref<8x128xf32, #tpu.memory_space<vmem>>, vector<8x128xf32>
    %c0_2 = arith.constant 0 : index
    %c0_3 = arith.constant 0 : index
    %4 = vector.load %arg3[%c0_2, %c0_3] : memref<8x256xbf16, #tpu.memory_space<vmem>>, vector<8x256xbf16>
    %c0_4 = arith.constant 0 : index
    %c0_5 = arith.constant 0 : index
    %5 = vector.load %arg4[%c0_4, %c0_5] : memref<256x128xbf16, #tpu.memory_space<vmem>>, vector<256x128xbf16>
    %cst = arith.constant dense<0.000000e+00> : vector<8x128xf32>
    %6 = tpu.matmul %4, %5, %cst {dimension_numbers = #tpu.dot_dimension_numbers<[1], [0], [0], [1], [0, 0, 1, 1], [], []>} : vector<8x256xbf16>, vector<256x128xbf16>, vector<8x128xf32> -> vector<8x128xf32>
    %7 = arith.addf %3, %6 : vector<8x128xf32>
    %c0_6 = arith.constant 0 : index
    %c0_7 = arith.constant 0 : index
    %8 = vector.load %arg7[%c0_6, %c0_7] : memref<8x128xf32, #tpu.memory_space<vmem>>, vector<8x128xf32>
    tpu.vector_store %arg7[%c0_6, %c0_7], %7 {strides = array<i32>} : memref<8x128xf32, #tpu.memory_space<vmem>>, vector<8x128xf32>,
    %c0_i32_8 = arith.constant 0 : i32
    %9 = arith.cmpi eq, %arg2, %c0_i32_8 : i32
    %10 = arith.extui %9 : i1 to i32
    %c0_i32_9 = arith.constant 0 : i32
    %11 = arith.cmpi ne, %10, %c0_i32_9 : i32
    scf.if %11 {
      %c0_10 = arith.constant 0 : index
      %c0_11 = arith.constant 0 : index
      %12 = vector.load %arg7[%c0_10, %c0_11] : memref<8x128xf32, #tpu.memory_space<vmem>>, vector<8x128xf32>
      %c0_12 = arith.constant 0 : index
      %c0_13 = arith.constant 0 : index
      %13 = vector.load %arg5[%c0_12, %c0_13] : memref<1x128xf32, #tpu.memory_space<vmem>>, vector<1x128xf32>
      %14 = vector.broadcast %13 : vector<1x128xf32> to vector<8x128xf32>
      %15 = arith.addf %12, %14 : vector<8x128xf32>
      %cst_14 = arith.constant 0.000000e+00 : f32
      %16 = vector.broadcast %cst_14 : f32 to vector<8x128xf32>
      %17 = arith.maximumf %15, %16 : vector<8x128xf32>
      %c0_15 = arith.constant 0 : index
      %c0_16 = arith.constant 0 : index
      %18 = vector.load %arg6[%c0_15, %c0_16] : memref<8x128xf32, #tpu.memory_space<vmem>>, vector<8x128xf32>
      tpu.vector_store %arg6[%c0_15, %c0_16], %17 {strides = array<i32>} : memref<8x128xf32, #tpu.memory_space<vmem>>, vector<8x128xf32>,
    } else {
    }
    return
  }
  func.func @transform_0(%arg0: i32, %arg1: i32, %arg2: i32) -> (i32, i32) {
    %c0_i32 = arith.constant 0 : i32
    return %arg0, %arg2 : i32, i32
  }
  func.func @transform_1(%arg0: i32, %arg1: i32, %arg2: i32) -> (i32, i32) {
    %c0_i32 = arith.constant 0 : i32
    return %arg2, %arg1 : i32, i32
  }
  func.func @transform_2(%arg0: i32, %arg1: i32, %arg2: i32) -> (i32, i32) {
    %c0_i32 = arith.constant 0 : i32
    %c0_i32_0 = arith.constant 0 : i32
    return %c0_i32, %arg1 : i32, i32
  }
  func.func @transform_3(%arg0: i32, %arg1: i32, %arg2: i32) -> (i32, i32) {
    %c0_i32 = arith.constant 0 : i32
    return %arg0, %arg1 : i32, i32
  }
}

module attributes {stable_mosaic.version = 11 : i64} {
  func.func @_matmul_bias_act_kernel(%arg0: i32, %arg1: i32, %arg2: i32, %arg3: memref<32x256xbf16, #tpu.memory_space<vmem>>, %arg4: memref<256x128xbf16, #tpu.memory_space<vmem>>, %arg5: memref<1x128xf32, #tpu.memory_space<vmem>>, %arg6: memref<32x128xf32, #tpu.memory_space<vmem>>, %arg7: memref<32x128xf32, #tpu.memory_space<vmem>>) attributes {dimension_semantics = [#tpu.dimension_semantics<parallel>, #tpu.dimension_semantics<parallel>, #tpu.dimension_semantics<arbitrary>], iteration_bounds = array<i64: 1, 1, 5>, scalar_prefetch = 0 : i64, scratch_operands = 1 : i64, tpu.core_type = #tpu.core_type<tc>, window_params = [{transform_indices = @transform_0, window_bounds = array<i64: 32, 256>}, {transform_indices = @transform_1, window_bounds = array<i64: 256, 128>}, {transform_indices = @transform_2, window_bounds = array<i64: 1, 128>}, {transform_indices = @transform_3, window_bounds = array<i64: 32, 128>}]} {
    %c0_i32 = arith.constant 0 : i32
    %0 = arith.cmpi eq, %arg2, %c0_i32 : i32
    %1 = arith.extui %0 : i1 to i32
    %c0_i32_0 = arith.constant 0 : i32
    %2 = arith.cmpi ne, %1, %c0_i32_0 : i32
    scf.if %2 {
      %cst_9 = arith.constant 0.000000e+00 : f32
      %12 = vector.broadcast %cst_9 : f32 to vector<32x128xf32>
      %c0_10 = arith.constant 0 : index
      %c0_11 = arith.constant 0 : index
      %13 = vector.load %arg7[%c0_10, %c0_11] : memref<32x128xf32, #tpu.memory_space<vmem>>, vector<32x128xf32>
      tpu.vector_store %arg7[%c0_10, %c0_11], %12 {strides = array<i32>} : memref<32x128xf32, #tpu.memory_space<vmem>>, vector<32x128xf32>,
    } else {
    }
    %c0 = arith.constant 0 : index
    %c0_1 = arith.constant 0 : index
    %3 = vector.load %arg7[%c0, %c0_1] : memref<32x128xf32, #tpu.memory_space<vmem>>, vector<32x128xf32>
    %c0_2 = arith.constant 0 : index
    %c0_3 = arith.constant 0 : index
    %4 = vector.load %arg3[%c0_2, %c0_3] : memref<32x256xbf16, #tpu.memory_space<vmem>>, vector<32x256xbf16>
    %c0_4 = arith.constant 0 : index
    %c0_5 = arith.constant 0 : index
    %5 = vector.load %arg4[%c0_4, %c0_5] : memref<256x128xbf16, #tpu.memory_space<vmem>>, vector<256x128xbf16>
    %cst = arith.constant dense<0.000000e+00> : vector<32x128xf32>
    %6 = tpu.matmul %4, %5, %cst {dimension_numbers = #tpu.dot_dimension_numbers<[1], [0], [0], [1], [0, 0, 1, 1], [], []>} : vector<32x256xbf16>, vector<256x128xbf16>, vector<32x128xf32> -> vector<32x128xf32>
    %7 = arith.addf %3, %6 : vector<32x128xf32>
    %c0_6 = arith.constant 0 : index
    %c0_7 = arith.constant 0 : index
    %8 = vector.load %arg7[%c0_6, %c0_7] : memref<32x128xf32, #tpu.memory_space<vmem>>, vector<32x128xf32>
    tpu.vector_store %arg7[%c0_6, %c0_7], %7 {strides = array<i32>} : memref<32x128xf32, #tpu.memory_space<vmem>>, vector<32x128xf32>,
    %c4_i32 = arith.constant 4 : i32
    %9 = arith.cmpi eq, %arg2, %c4_i32 : i32
    %10 = arith.extui %9 : i1 to i32
    %c0_i32_8 = arith.constant 0 : i32
    %11 = arith.cmpi ne, %10, %c0_i32_8 : i32
    scf.if %11 {
      %c0_9 = arith.constant 0 : index
      %c0_10 = arith.constant 0 : index
      %12 = vector.load %arg7[%c0_9, %c0_10] : memref<32x128xf32, #tpu.memory_space<vmem>>, vector<32x128xf32>
      %c0_11 = arith.constant 0 : index
      %c0_12 = arith.constant 0 : index
      %13 = vector.load %arg5[%c0_11, %c0_12] : memref<1x128xf32, #tpu.memory_space<vmem>>, vector<1x128xf32>
      %14 = vector.broadcast %13 : vector<1x128xf32> to vector<32x128xf32>
      %15 = arith.addf %12, %14 : vector<32x128xf32>
      %c0_13 = arith.constant 0 : index
      %c0_14 = arith.constant 0 : index
      %16 = vector.load %arg6[%c0_13, %c0_14] : memref<32x128xf32, #tpu.memory_space<vmem>>, vector<32x128xf32>
      tpu.vector_store %arg6[%c0_13, %c0_14], %15 {strides = array<i32>} : memref<32x128xf32, #tpu.memory_space<vmem>>, vector<32x128xf32>,
    } else {
    }
    return
  }
  func.func @transform_0(%arg0: i32, %arg1: i32, %arg2: i32) -> (i32, i32) {
    %c0_i32 = arith.constant 0 : i32
    return %arg0, %arg2 : i32, i32
  }
  func.func @transform_1(%arg0: i32, %arg1: i32, %arg2: i32) -> (i32, i32) {
    %c0_i32 = arith.constant 0 : i32
    return %arg2, %arg1 : i32, i32
  }
  func.func @transform_2(%arg0: i32, %arg1: i32, %arg2: i32) -> (i32, i32) {
    %c0_i32 = arith.constant 0 : i32
    %c0_i32_0 = arith.constant 0 : i32
    return %c0_i32, %arg1 : i32, i32
  }
  func.func @transform_3(%arg0: i32, %arg1: i32, %arg2: i32) -> (i32, i32) {
    %c0_i32 = arith.constant 0 : i32
    return %arg0, %arg1 : i32, i32
  }
}

</mosaic_0001>

<bundles_post_ra>
// kernel: multiscale_net_v12.23
= control target key start
LH: loop header
LB: loop body
LE: loop exit
PB: predicated region body
PF: predicated region fallthrough
CT: control target
= control target key end

     0   :  { %8 = vsyncpa [#allocation4], 0  ;;  %s391_s0 = inlined_call_operand.vmem [shape: bf16[32,128], index: 0, kind: input, shape index: {}]   ;;  %s392_s1 = inlined_call_operand.hbm [shape: bf16[128,128], index: 1, kind: input, shape index: {}]   ;;  %s393_s2 = inlined_call_operand.hbm [shape: f32[1,128], index: 2, kind: input, shape index: {}]   ;;  %s394_s3 = inlined_call_operand.vmem [shape: f32[32,128], index: 3, kind: output, shape index: {}]  }
   0x1   :  { %9 = vsyncpa [#allocation6], 0  ;;  %s325_s12 = smov [#allocation3]   ;;  %s277_s16 = scalar_lea.hbm %s392_s1, 1024 }
   0x2   :  { %s17_s13 = sshll.u32 %s325_s12, 4  ;;  %p278_p0 = scmp.ne.s32.totalorder %s392_s1, %s277_s16  ;;  %s18_s13 = int_to_ptr.vmem [resolvable:$true] %s17_s13 }
   0x3   :  { %p281_p1 = scmp.lt.u32.totalorder %s277_s16, %s392_s1 }
   0x5   :  { %p283_p2 = pnand %p281_p1, %p278_p0 }
   0x7   :  { %286 = shalt.err (!%p283_p2)
}
   0x8   :  { %s287_s21 = scalar_lea.vmem %s18_s13, 1024  ;;  %p292_p4 = scmp.lt.s32.totalorder %s18_s13, %s18_s13 }
   0x9   :  { %p288_p3 = scmp.ne.s32.totalorder %s18_s13, %s287_s21  ;;  %p293_p5 = scmp.lt.s32.totalorder %s287_s21, %s287_s21 }
   0xb   :  { %p294_p6 = por %p293_p5, %p292_p4 }
   0xd   :  { %p295_p7 = pnand %p294_p6, %p288_p3 }
   0xf   :  { %298 = shalt.err (!%p295_p7)
}
  0x10   :  { %s326_s22 = smov 64   ;;  %s327_s23 = smov 4  }
  0x11   :  { %23 = dma.hbm_to_vmem [thread:$0]  %s392_s1, 1024, %s18_s13, [#allocation4], %s326_s22, %s326_s22, %s327_s23  }
  0x12   :  { %s328_s26 = smov [#allocation5]   ;;  %s299_s30 = scalar_lea.hbm %s393_s2, 16 }
  0x13   :  { %s30_s27 = sshll.u32 %s328_s26, 4  ;;  %p300_p8 = scmp.ne.s32.totalorder %s393_s2, %s299_s30  ;;  %s31_s27 = int_to_ptr.vmem [resolvable:$true] %s30_s27 }
  0x14   :  { %p303_p9 = scmp.lt.u32.totalorder %s299_s30, %s393_s2 }
  0x16   :  { %p305_p10 = pnand %p303_p9, %p300_p8 }
  0x18   :  { %308 = shalt.err (!%p305_p10)
}
  0x19   :  { %s309_s8 = scalar_lea.vmem %s31_s27, 16  ;;  %s313_s1 = scalar_lea.vmem %s31_s27, 32 }
  0x1a   :  { %p310_p11 = scmp.ne.s32.totalorder %s31_s27, %s309_s8  ;;  %p314_p12 = scmp.lt.s32.totalorder %s31_s27, %s31_s27 }
  0x1b   :  { %p315_p13 = scmp.lt.s32.totalorder %s313_s1, %s309_s8 }
  0x1d   :  { %p316_p0 = por %p315_p13, %p314_p12 }
  0x1f   :  { %p317_p1 = pnand %p316_p0, %p310_p11 }
  0x21   :  { %320 = shalt.err (!%p317_p1)
}
  0x22   :  { %33 = dma.hbm_to_vmem [thread:$0]  %s393_s2, 16, %s31_s27, [#allocation6]  }
  0x23   :  { %321 = dma.done.wait [#allocation4], 1024  }
  0x24   :  { %322 = vsyncadd [#allocation4], 4294966272 }
  0x25   :  { %323 = dma.done.wait [#allocation6], 16  }
  0x26   :  { %324 = vsyncadd [#allocation6], 4294967280  ;;  %v267_v0 = vld [vmem:[#allocation3] sm:$0xff]   ;;  %v268_v1 = vld [vmem:[#allocation3 + $0x8] sm:$0xff]  }
  0x27   :  { %243 = vmatprep.subr.bf16.mxu0 %v267_v0  ;;  %v269_v2 = vld [vmem:[#allocation3 + $0x10] sm:$0xff]   ;;  %v270_v3 = vld [vmem:[#allocation3 + $0x18] sm:$0xff]   ;;  %v275_v4 = vld [vmem:[%s391_s0] sm:$0xff]  }
  0x28   :  { %244 = vmatpush3.bf16.msra.mxu0 %v267_v0  ;;  %259 = vmatprep.mubr.bf16.mxu0 %v275_v4  ;;  %v271_v5 = vld [vmem:[#allocation3 + $0x20] sm:$0xff]   ;;  %v272_v6 = vld [vmem:[#allocation3 + $0x28] sm:$0xff]   ;;  %v273_v7 = vld [vmem:[#allocation3 + $0x30] sm:$0xff]  }
  0x29   :  { %245 = vmatprep.subr.bf16.mxu0 %v268_v1  ;;  %v274_v8 = vld [vmem:[#allocation3 + $0x38] sm:$0xff]   ;;  %v276_v9 = vld [vmem:[%s391_s0 + $0x8] sm:$0xff]   ;;  %v232_v10 = vld [vmem:[#allocation5] ss:$0 sm:$0xff] }
  0x2c   :  { %246 = vmatpush3.bf16.msra.mxu0 %v268_v1 }
  0x2d   :  { %247 = vmatprep.subr.bf16.mxu0 %v269_v2 }
  0x30   :  { %248 = vmatpush3.bf16.msra.mxu0 %v269_v2 }
  0x31   :  { %249 = vmatprep.subr.bf16.mxu0 %v270_v3 }
  0x34   :  { %250 = vmatpush3.bf16.msra.mxu0 %v270_v3 }
  0x35   :  { %251 = vmatprep.subr.bf16.mxu0 %v271_v5 }
  0x38   :  { %252 = vmatpush3.bf16.msra.mxu0 %v271_v5 }
  0x39   :  { %253 = vmatprep.subr.bf16.mxu0 %v272_v6 }
  0x3c   :  { %254 = vmatpush3.bf16.msra.mxu0 %v272_v6 }
  0x3d   :  { %255 = vmatprep.subr.bf16.mxu0 %v273_v7 }
  0x40   :  { %256 = vmatpush3.bf16.msra.mxu0 %v273_v7 }
  0x41   :  { %257 = vmatprep.subr.bf16.mxu0 %v274_v8 }
  0x44   :  { %258 = vmatpush3.bf16.msra.mxu0 %v274_v8 }
  0x47   :  { %260 = vmatmul.mubr.bf16.vlgmr.msra.gmra.mrb[0].mxu0 %v276_v9 }
 0x11a   :  { %v261_v11 = vpop.f32.mrb[0].mxu0 }
 0x11b   :  { %v206_v12 = vadd.f32 %v261_v11, %v232_v10  ;;  %v167_v13 = vpop.f32.mrb[1].mxu0 }
 0x11c   :  { %v204_v14 = vadd.f32 %v232_v10, %v167_v13  ;;  %v262_v15 = vpop.f32.mrb[2].mxu0 }
 0x11d   :  { %v210_v16 = vmax.f32 %v206_v12, 0.0  ;;  %v207_v17 = vadd.f32 %v262_v15, %v232_v10  ;;  %v170_v18 = vpop.f32.mrb[3].mxu0 }
 0x11e   :  { %v208_v19 = vmax.f32 %v204_v14, 0.0  ;;  %v205_v20 = vadd.f32 %v232_v10, %v170_v18 }
 0x11f   :  { %214 = vst [vmem:[%s394_s3 + $0x10] sm:$0xff] %v210_v16  ;;  %v211_v21 = vmax.f32 %v207_v17, 0.0 }
 0x120   :  { %212 = vst [vmem:[%s394_s3] sm:$0xff] %v208_v19  ;;  %v209_v22 = vmax.f32 %v205_v20, 0.0 }
 0x121   :  { %215 = vst [vmem:[%s394_s3 + $0x18] sm:$0xff] %v211_v21 }
 0x122   :  { %213 = vst [vmem:[%s394_s3 + $0x8] sm:$0xff] %v209_v22 }
 0x123   :  { %220 = vsyncpa [#allocation4], 1 }
 0x124   :  { %221 = vsyncpa [#allocation6], 1 }

// kernel: multiscale_net_v12.24
= control target key start
LH: loop header
LB: loop body
LE: loop exit
PB: predicated region body
PF: predicated region fallthrough
CT: control target
= control target key end

     0   :  { %8 = vsyncpa [#allocation4], 0  ;;  %s487_s0 = inlined_call_operand.vmem [shape: bf16[32,128], index: 0, kind: input, shape index: {}]   ;;  %s488_s1 = inlined_call_operand.hbm [shape: bf16[128,256], index: 1, kind: input, shape index: {}]   ;;  %s489_s2 = inlined_call_operand.hbm [shape: f32[1,256], index: 2, kind: input, shape index: {}]   ;;  %s490_s3 = inlined_call_operand.vmem [shape: f32[32,256], index: 3, kind: output, shape index: {}]  }
   0x1   :  { %9 = vsyncpa [#allocation6], 0  ;;  %s408_s12 = smov [#allocation3]   ;;  %s360_s16 = scalar_lea.hbm %s488_s1, 2048 }
   0x2   :  { %s17_s13 = sshll.u32 %s408_s12, 4  ;;  %p361_p0 = scmp.ne.s32.totalorder %s488_s1, %s360_s16  ;;  %s18_s13 = int_to_ptr.vmem [resolvable:$true] %s17_s13 }
   0x3   :  { %p364_p1 = scmp.lt.u32.totalorder %s360_s16, %s488_s1 }
   0x5   :  { %p366_p2 = pnand %p364_p1, %p361_p0 }
   0x7   :  { %369 = shalt.err (!%p366_p2)
}
   0x8   :  { %s370_s21 = scalar_lea.vmem %s18_s13, 2048  ;;  %p375_p4 = scmp.lt.s32.totalorder %s18_s13, %s18_s13 }
   0x9   :  { %p371_p3 = scmp.ne.s32.totalorder %s18_s13, %s370_s21  ;;  %p376_p5 = scmp.lt.s32.totalorder %s370_s21, %s370_s21 }
   0xb   :  { %p377_p6 = por %p376_p5, %p375_p4 }
   0xd   :  { %p378_p7 = pnand %p377_p6, %p371_p3 }
   0xf   :  { %381 = shalt.err (!%p378_p7)
}
  0x10   :  { %s409_s22 = smov 128   ;;  %s410_s23 = smov 8  }
  0x11   :  { %23 = dma.hbm_to_vmem [thread:$0]  %s488_s1, 2048, %s18_s13, [#allocation4], %s409_s22, %s409_s22, %s410_s23  }
  0x12   :  { %s411_s26 = smov [#allocation5]   ;;  %s382_s30 = scalar_lea.hbm %s489_s2, 32 }
  0x13   :  { %s30_s27 = sshll.u32 %s411_s26, 4  ;;  %p383_p8 = scmp.ne.s32.totalorder %s489_s2, %s382_s30  ;;  %s31_s27 = int_to_ptr.vmem [resolvable:$true] %s30_s27 }
  0x14   :  { %p386_p9 = scmp.lt.u32.totalorder %s382_s30, %s489_s2 }
  0x16   :  { %p388_p10 = pnand %p386_p9, %p383_p8 }
  0x18   :  { %391 = shalt.err (!%p388_p10)
}
  0x19   :  { %s392_s8 = scalar_lea.vmem %s31_s27, 32  ;;  %p397_p12 = scmp.lt.s32.totalorder %s31_s27, %s31_s27 }
  0x1a   :  { %p393_p11 = scmp.ne.s32.totalorder %s31_s27, %s392_s8  ;;  %p398_p13 = scmp.lt.s32.totalorder %s392_s8, %s392_s8 }
  0x1c   :  { %p399_p0 = por %p398_p13, %p397_p12 }
  0x1e   :  { %p400_p1 = pnand %p399_p0, %p393_p11 }
  0x20   :  { %403 = shalt.err (!%p400_p1)
}
  0x21   :  { %33 = dma.hbm_to_vmem [thread:$0]  %s489_s2, 32, %s31_s27, [#allocation6]  }
  0x22   :  { %404 = dma.done.wait [#allocation4], 2048  }
  0x23   :  { %405 = vsyncadd [#allocation4], 4294965248 }
  0x24   :  { %406 = dma.done.wait [#allocation6], 32  }
  0x25   :  { %407 = vsyncadd [#allocation6], 4294967264  ;;  %v412_v0 = vmov 0   ;;  %v334_v1 = vld [vmem:[#allocation3 + $0x4] ss:$8 sps:$4 sm:$0xff]   ;;  %v255_v19 = vlaneseq }
  0x26   :  { %205 = vmatprep.mubr.bf16.mxu0 %v412_v0  ;;  %215 = vmatprep.mubr.bf16.mxu1 %v412_v0  ;;  %v336_v2 = vld [vmem:[#allocation3] ss:$8 sps:$4 sm:$0xff]   ;;  %v337_v3 = vld [vmem:[#allocation3 + $0x14] ss:$8 sps:$4 sm:$0xff]   ;;  %v339_v4 = vld [vmem:[#allocation3 + $0x10] ss:$8 sps:$4 sm:$0xff]  }
  0x27   :  { %173 = vmatprep.subr.bf16.mxu0 %v334_v1  ;;  %313 = vmatprep.subr.bf16.mxu1 %v334_v1  ;;  %v340_v5 = vld [vmem:[#allocation3 + $0x24] ss:$8 sps:$4 sm:$0xff]   ;;  %v342_v6 = vld [vmem:[#allocation3 + $0x20] ss:$8 sps:$4 sm:$0xff]   ;;  %v343_v7 = vld [vmem:[#allocation3 + $0x34] ss:$8 sps:$4 sm:$0xff]  }
  0x28   :  { %174 = vmatpush1.bf16.msra.mxu0 %v336_v2  ;;  %321 = vmatpush1.bf16.msra.mxu1 %v336_v2  ;;  %v345_v8 = vld [vmem:[#allocation3 + $0x30] ss:$8 sps:$4 sm:$0xff]   ;;  %v346_v9 = vld [vmem:[#allocation3 + $0x44] ss:$8 sps:$4 sm:$0xff]   ;;  %v348_v10 = vld [vmem:[#allocation3 + $0x40] ss:$8 sps:$4 sm:$0xff]  }
  0x29   :  { %175 = vmatprep.subr.bf16.mxu0 %v337_v3  ;;  %314 = vmatprep.subr.bf16.mxu1 %v337_v3  ;;  %v349_v11 = vld [vmem:[#allocation3 + $0x54] ss:$8 sps:$4 sm:$0xff]   ;;  %v351_v12 = vld [vmem:[#allocation3 + $0x50] ss:$8 sps:$4 sm:$0xff]   ;;  %v352_v13 = vld [vmem:[#allocation3 + $0x64] ss:$8 sps:$4 sm:$0xff]  }
  0x2a   :  { %v354_v14 = vld [vmem:[#allocation3 + $0x60] ss:$8 sps:$4 sm:$0xff]   ;;  %v355_v15 = vld [vmem:[#allocation3 + $0x74] ss:$8 sps:$4 sm:$0xff]   ;;  %v357_v16 = vld [vmem:[#allocation3 + $0x70] ss:$8 sps:$4 sm:$0xff]  }
  0x2b   :  { %v358_v17 = vld [vmem:[%s487_s0] sm:$0xff]   ;;  %v359_v18 = vld [vmem:[%s487_s0 + $0x8] sm:$0xff]   ;;  %v256_v20 = vshrl.u32 %v255_v19, 7 }
  0x2c   :  { %176 = vmatpush1.bf16.msra.mxu0 %v339_v4  ;;  %322 = vmatpush1.bf16.msra.mxu1 %v339_v4  ;;  %v253_v22 = vld [vmem:[#allocation5] sm:$0x3] }
  0x2d   :  { %177 = vmatprep.subr.bf16.mxu0 %v340_v5  ;;  %315 = vmatprep.subr.bf16.mxu1 %v340_v5  ;;  %v257_v21 = vsub.s32 0, %v256_v20  ;;  %v261_v23 = vsub.s32 1, %v256_v20 }
  0x2f   :  { %v258_v24 = vrot.slane %v253_v22, %v257_v21  ;;  %v262_v25 = vrot.slane %v253_v22, %v261_v23 }
  0x30   :  { %178 = vmatpush1.bf16.msra.mxu0 %v342_v6  ;;  %323 = vmatpush1.bf16.msra.mxu1 %v342_v6 }
  0x31   :  { %179 = vmatprep.subr.bf16.mxu0 %v343_v7  ;;  %316 = vmatprep.subr.bf16.mxu1 %v343_v7 }
  0x34   :  { %180 = vmatpush1.bf16.msra.mxu0 %v345_v8  ;;  %324 = vmatpush1.bf16.msra.mxu1 %v345_v8 }
  0x35   :  { %181 = vmatprep.subr.bf16.mxu0 %v346_v9  ;;  %317 = vmatprep.subr.bf16.mxu1 %v346_v9 }
  0x38   :  { %182 = vmatpush1.bf16.msra.mxu0 %v348_v10  ;;  %325 = vmatpush1.bf16.msra.mxu1 %v348_v10 }
  0x39   :  { %183 = vmatprep.subr.bf16.mxu0 %v349_v11  ;;  %318 = vmatprep.subr.bf16.mxu1 %v349_v11 }
  0x3c   :  { %184 = vmatpush1.bf16.msra.mxu0 %v351_v12  ;;  %326 = vmatpush1.bf16.msra.mxu1 %v351_v12 }
  0x3d   :  { %185 = vmatprep.subr.bf16.mxu0 %v352_v13  ;;  %319 = vmatprep.subr.bf16.mxu1 %v352_v13 }
  0x40   :  { %186 = vmatpush1.bf16.msra.mxu0 %v354_v14  ;;  %327 = vmatpush1.bf16.msra.mxu1 %v354_v14 }
  0x41   :  { %187 = vmatprep.subr.bf16.mxu0 %v355_v15  ;;  %320 = vmatprep.subr.bf16.mxu1 %v355_v15 }
  0x44   :  { %188 = vmatpush1.bf16.msra.mxu0 %v357_v16  ;;  %328 = vmatpush1.bf16.msra.mxu1 %v357_v16 }
  0x47   :  { %206 = vmatmul.mubr.bf16.vlgmr.msra.gmra.mrb[0].mxu0 %v358_v17  ;;  %216 = vmatmul.mubr.bf16.vlgmr.msra.gmra.mrb[0].mxu1 %v359_v18 }
 0x11a   :  { %v207_v26 = vpop.f32.mrb[0].mxu0  ;;  %v217_v27 = vpop.f32.mrb[0].mxu1 }
 0x11b   :  { %v265_v28 = vadd.f32 %v258_v24, %v207_v26  ;;  %v269_v29 = vadd.f32 %v258_v24, %v217_v27  ;;  %v209_v30 = vpop.f32.mrb[1].mxu0  ;;  %v219_v31 = vpop.f32.mrb[1].mxu1 }
 0x11c   :  { %v266_v32 = vadd.f32 %v262_v25, %v209_v30  ;;  %v270_v33 = vadd.f32 %v262_v25, %v219_v31  ;;  %v211_v34 = vpop.f32.mrb[2].mxu0  ;;  %v221_v35 = vpop.f32.mrb[2].mxu1 }
 0x11d   :  { %v273_v36 = vmax.f32 %v265_v28, 0.0  ;;  %v277_v37 = vmax.f32 %v269_v29, 0.0  ;;  %v267_v38 = vadd.f32 %v258_v24, %v211_v34  ;;  %v271_v39 = vadd.f32 %v258_v24, %v221_v35  ;;  %v213_v40 = vpop.f32.mrb[3].mxu0  ;;  %v223_v41 = vpop.f32.mrb[3].mxu1 }
 0x11e   :  { %v274_v42 = vmax.f32 %v266_v32, 0.0  ;;  %v278_v43 = vmax.f32 %v270_v33, 0.0  ;;  %v268_v44 = vadd.f32 %v262_v25, %v213_v40  ;;  %v272_v45 = vadd.f32 %v262_v25, %v223_v41 }
 0x11f   :  { %281 = vst [vmem:[%s490_s3] sm:$0xff] %v273_v36  ;;  %285 = vst [vmem:[%s490_s3 + $0x20] sm:$0xff] %v277_v37  ;;  %v275_v46 = vmax.f32 %v267_v38, 0.0  ;;  %v279_v47 = vmax.f32 %v271_v39, 0.0 }
 0x120   :  { %282 = vst [vmem:[%s490_s3 + $0x8] sm:$0xff] %v274_v42  ;;  %286 = vst [vmem:[%s490_s3 + $0x28] sm:$0xff] %v278_v43  ;;  %v276_v48 = vmax.f32 %v268_v44, 0.0  ;;  %v280_v49 = vmax.f32 %v272_v45, 0.0 }
 0x121   :  { %283 = vst [vmem:[%s490_s3 + $0x10] sm:$0xff] %v275_v46  ;;  %287 = vst [vmem:[%s490_s3 + $0x30] sm:$0xff] %v279_v47 }
 0x122   :  { %284 = vst [vmem:[%s490_s3 + $0x18] sm:$0xff] %v276_v48  ;;  %288 = vst [vmem:[%s490_s3 + $0x38] sm:$0xff] %v280_v49 }
 0x123   :  { %293 = vsyncpa [#allocation4], 1 }
 0x124   :  { %294 = vsyncpa [#allocation6], 1 }

// kernel: multiscale_net_v12.25
= control target key start
LH: loop header
LB: loop body
LE: loop exit
PB: predicated region body
PF: predicated region fallthrough
CT: control target
= control target key end

     0   :  { %s867_s12 = smov 0   ;;  %s869_s13 = smov 0   ;;  %s973_s0 = inlined_call_operand.vmem [shape: bf16[32,2304], index: 0, kind: input, shape index: {}]   ;;  %s974_s1 = inlined_call_operand.vmem [shape: bf16[2304,128], index: 1, kind: input, shape index: {}]   ;;  %s975_s2 = inlined_call_operand.vmem [shape: f32[1,128], index: 2, kind: input, shape index: {}]   ;;  %s976_s3 = inlined_call_operand.vmem [shape: f32[32,128], index: 3, kind: output, shape index: {}]  }
   0x1   :  { %s871_s14 = smov 0   ;;  %s873_s15 = smov 0  }
   0x2   :  { %s875_s16 = smov 0  }
   0x3 LB: > { %s25_s17 = sadd.s32 1, %s840_s15  ;;  %p48_p1 = scmp.ne.s32.totalorder %s832_s13, %s828_s12  ;;  %s844_s16 = sphi %s875_s16, %s13_s16   ;;  %s840_s15 = sphi %s873_s15, %s980_s15   ;;  %s836_s14 = sphi %s871_s14, %s979_s14   ;;  %s832_s13 = sphi %s869_s13, %s978_s13   ;;  %s828_s12 = sphi %s867_s12, %s977_s12  }
   0x4   : > { %p26_p0 = scmp.ge.s32.totalorder %s25_s17, 9  ;;  %p49_p2 = scmp.eq.s32.totalorder %s844_s16, 0 }
   0x5   : > { %s41_s19 = sadd.s32 1, %s832_s13  ;;  %p663_p5 = scmp.ge.s32.totalorder %s844_s16, 9 }
   0x6   : > { %s982_s17 = smov (%p26_p0, %s25_s17), 0  ;;  %p50_p3 = por %p49_p2, %p48_p1 }
   0x7   : > { %s37_s18 = ssub.s32 %s840_s15, %s982_s17  ;;  %162 = sbr.rel (%p663_p5) target bundleno = 21 (0x15), region = 20 }
   0x8   : > { %p39_p4 = scmp.eq.s32.totalorder %s37_s18, 0 }
   0xa   : > { %s902_s20 = scalar_select %p39_p4, %s832_s13, %s41_s19  }
   0xe   : > { %165 = sbr.rel (!%p50_p3) target bundleno = 21 (0x15), region = 24  ;;  %s167_s21 = sand.u32 (%p50_p3), 1, %s832_s13  }
   0xf   : > { %s698_s22 = sshll.u32 (%p50_p3), %s840_s15, 3  ;;  %s664_s23 = sshll.u32 (%p50_p3), %s167_s21, 5 }
  0x10   : > { %s175_s26 = scalar_lea.vmem (%p50_p3), %s973_s0, %s698_s22  ;;  %s169_s27 = scalar_lea.vmem (%p50_p3), [#allocation3], %s664_s23 }
  0x11   : > { %v209_v0 = vld [vmem:[%s175_s26] sm:$0xff] (%p50_p3)  ;;  %v211_v1 = vld [vmem:[%s175_s26 + $0x48] sm:$0xff] (%p50_p3)  ;;  %v213_v2 = vld [vmem:[%s175_s26 + $0x90] sm:$0xff] (%p50_p3) }
  0x12   : > { %210 = vst [vmem:[%s169_s27] sm:$0xff] (%p50_p3), %v209_v0  ;;  %212 = vst [vmem:[%s169_s27 + $0x8] sm:$0xff] (%p50_p3), %v211_v1  ;;  %v215_v3 = vld [vmem:[%s175_s26 + $0xd8] sm:$0xff] (%p50_p3) }
  0x13   : > { %214 = vst [vmem:[%s169_s27 + $0x10] sm:$0xff] (%p50_p3), %v213_v2  ;;  %216 = vst [vmem:[%s169_s27 + $0x18] sm:$0xff] (%p50_p3), %v215_v3 }
  0x15 PF: > { %p667_p6 = scmp.ge.s32.totalorder %s844_s16, 1  ;;  %p233_p7 = scmp.lt.s32.totalorder %s844_s16, 10 }
  0x17   : > { %p234_p8 = pnand %p667_p6, %p233_p7 }
  0x18   : > { %s240_s28 = sand.u32 (!%p234_p8), 1, %s828_s12   ;;  %s669_s29 = sshll.u32 (!%p234_p8), %s836_s14, 5 }
  0x19   : > { %237 = sbr.rel (%p234_p8) target bundleno = 304 (0x130), region = 66  ;;  %s668_s30 = sshll.u32 (!%p234_p8), %s240_s28, 5 }
  0x1a   : > { %p280_p9 = scmp.lt.s32.totalorder (!%p234_p8), %s669_s29, 287  ;;  %s919_s8 = scalar_lea.vmem (!%p234_p8), [#allocation3], %s668_s30 }
  0x1b   : > { %p671_p10 = scmp.ne.s32.totalorder (!%p234_p8), %s836_s14, 0 }
  0x20   : > { %s984_s29 = smov (!%p280_p9, %s669_s29), 287  ;;  %304 = sbr.rel (%p671_p10) target bundleno = 39 (0x27), region = 74 }
  0x21   : > { %s670_s4 = sshll.u32 %s984_s29, 2  ;;  %v846_v4 = vmov (!%p671_p10), 0.0  }
  0x22   : > { %s917_s7 = scalar_lea.vmem %s974_s1, %s670_s4  ;;  %305 = vst [vmem:[#allocation2] sm:$0xff] (!%p671_p10), %v846_v4  ;;  %306 = vst [vmem:[#allocation2 + $0x8] sm:$0xff] (!%p671_p10), %v846_v4 }
  0x23   : > { %307 = vst [vmem:[#allocation2 + $0x10] sm:$0xff] (!%p671_p10), %v846_v4  ;;  %308 = vst [vmem:[#allocation2 + $0x18] sm:$0xff] (!%p671_p10), %v846_v4 }
  0x27 PF: > { %v784_v5 = vld [vmem:[%s917_s7 + $0x40] sm:$0xff]   ;;  %v786_v7 = vld [vmem:[%s917_s7 + $0x48] sm:$0xff]   ;;  %v788_v9 = vld [vmem:[%s917_s7 + $0x50] sm:$0xff]   ;;  %p692_p11 = scmp.ne.s32.totalorder %s836_s14, 8 }
  0x28   : > { %v785_v6 = vld [vmem:[%s917_s7] sm:$0xff]   ;;  %699 = vmatprep.subr.bf16.mxu0 %v784_v5  ;;  %727 = vmatprep.subr.bf16.mxu1 %v784_v5  ;;  %v787_v8 = vld [vmem:[%s917_s7 + $0x8] sm:$0xff]   ;;  %v789_v10 = vld [vmem:[%s917_s7 + $0x10] sm:$0xff]  }
  0x29   : > { %700 = vmatpush3.bf16.msra.mxu0 %v785_v6  ;;  %735 = vmatpush3.bf16.msra.mxu1 %v785_v6  ;;  %v790_v11 = vld [vmem:[%s917_s7 + $0x58] sm:$0xff]   ;;  %v792_v13 = vld [vmem:[%s917_s7 + $0x60] sm:$0xff]   ;;  %v794_v15 = vld [vmem:[%s917_s7 + $0x68] sm:$0xff]  }
  0x2a   : > { %701 = vmatprep.subr.bf16.mxu0 %v786_v7  ;;  %728 = vmatprep.subr.bf16.mxu1 %v786_v7  ;;  %v791_v12 = vld [vmem:[%s917_s7 + $0x18] sm:$0xff]   ;;  %v793_v14 = vld [vmem:[%s917_s7 + $0x20] sm:$0xff]   ;;  %v795_v18 = vld [vmem:[%s917_s7 + $0x28] sm:$0xff]  }
  0x2b   : > { %v802_v16 = vld [vmem:[%s919_s8 + $0x4] ss:$8 sps:$4 sm:$0xff]   ;;  %v805_v17 = vld [vmem:[%s919_s8 + $0x14] ss:$8 sps:$4 sm:$0xff]   ;;  %v800_v23 = vld [vmem:[%s919_s8] ss:$8 sps:$4 sm:$0xff]  }
  0x2c   : > { %v796_v19 = vld [vmem:[%s917_s7 + $0x70] sm:$0xff]   ;;  %497 = vmatprep.mubr.bf16.mxu0 %v802_v16  ;;  %505 = vmatprep.mubr.bf16.mxu1 %v805_v17  ;;  %v798_v21 = vld [vmem:[%s917_s7 + $0x78] sm:$0xff]   ;;  %v309_v27 = vld [vmem:[#allocation2] sm:$0xff] }
  0x2d   : > { %702 = vmatpush3.bf16.msra.mxu0 %v787_v8  ;;  %736 = vmatpush3.bf16.msra.mxu1 %v787_v8  ;;  %v797_v20 = vld [vmem:[%s917_s7 + $0x30] sm:$0xff]   ;;  %v799_v22 = vld [vmem:[%s917_s7 + $0x38] sm:$0xff]   ;;  %v310_v35 = vld [vmem:[#allocation2 + $0x8] sm:$0xff] }
  0x2e   : > { %703 = vmatprep.subr.bf16.mxu0 %v788_v9  ;;  %729 = vmatprep.subr.bf16.mxu1 %v788_v9  ;;  %v803_v24 = vld [vmem:[%s919_s8 + $0x10] ss:$8 sps:$4 sm:$0xff]   ;;  %v693_v46 = vld [vmem:[%s975_s2] ss:$0 sm:$0xff] (!%p692_p11) }
  0x2f   : > { %v311_v29 = vld [vmem:[#allocation2 + $0x10] sm:$0xff]  ;;  %v312_v37 = vld [vmem:[#allocation2 + $0x18] sm:$0xff] }
  0x31   : > { %704 = vmatpush3.bf16.msra.mxu0 %v789_v10  ;;  %737 = vmatpush3.bf16.msra.mxu1 %v789_v10 }
  0x32   : > { %705 = vmatprep.subr.bf16.mxu0 %v790_v11  ;;  %730 = vmatprep.subr.bf16.mxu1 %v790_v11 }
  0x35   : > { %706 = vmatpush3.bf16.msra.mxu0 %v791_v12  ;;  %738 = vmatpush3.bf16.msra.mxu1 %v791_v12 }
  0x36   : > { %707 = vmatprep.subr.bf16.mxu0 %v792_v13  ;;  %731 = vmatprep.subr.bf16.mxu1 %v792_v13 }
  0x39   : > { %708 = vmatpush3.bf16.msra.mxu0 %v793_v14  ;;  %739 = vmatpush3.bf16.msra.mxu1 %v793_v14 }
  0x3a   : > { %709 = vmatprep.subr.bf16.mxu0 %v794_v15  ;;  %732 = vmatprep.subr.bf16.mxu1 %v794_v15 }
  0x3d   : > { %710 = vmatpush3.bf16.msra.mxu0 %v795_v18  ;;  %740 = vmatpush3.bf16.msra.mxu1 %v795_v18 }
  0x3e   : > { %711 = vmatprep.subr.bf16.mxu0 %v796_v19  ;;  %733 = vmatprep.subr.bf16.mxu1 %v796_v19 }
  0x41   : > { %712 = vmatpush3.bf16.msra.mxu0 %v797_v20  ;;  %741 = vmatpush3.bf16.msra.mxu1 %v797_v20 }
  0x42   : > { %713 = vmatprep.subr.bf16.mxu0 %v798_v21  ;;  %734 = vmatprep.subr.bf16.mxu1 %v798_v21 }
  0x45   : > { %714 = vmatpush3.bf16.msra.mxu0 %v799_v22  ;;  %742 = vmatpush3.bf16.msra.mxu1 %v799_v22 }
  0x48   : > { %498 = vmatmul.mubr.bf16.vlgmr.msra.gmra.mrb[0].mxu0 %v800_v23  ;;  %506 = vmatmul.mubr.bf16.vlgmr.msra.gmra.mrb[0].mxu1 %v803_v24 }
 0x11b   : > { %v715_v25 = vpop.f32.mrb[0].mxu0  ;;  %v721_v26 = vpop.f32.mrb[0].mxu1 }
 0x11c   : > { %v716_v28 = vpop.f32.mrb[1].mxu0  ;;  %v722_v30 = vpop.f32.mrb[1].mxu1 }
 0x11d   : > { %v717_v31 = vadd.f32 %v716_v28, %v715_v25  ;;  %v723_v32 = vadd.f32 %v722_v30, %v721_v26  ;;  %v718_v33 = vpop.f32.mrb[2].mxu0  ;;  %v724_v34 = vpop.f32.mrb[2].mxu1  ;;  %525 = sbr.rel (%p692_p11) target bundleno = 304 (0x130), region = 78 }
 0x11e   : > { %v719_v36 = vpop.f32.mrb[3].mxu0  ;;  %v725_v38 = vpop.f32.mrb[3].mxu1 }
 0x11f   : > { %v514_v39 = vadd.f32 %v717_v31, %v309_v27  ;;  %v516_v40 = vadd.f32 %v723_v32, %v311_v29  ;;  %v720_v41 = vadd.f32 %v719_v36, %v718_v33  ;;  %v726_v42 = vadd.f32 %v725_v38, %v724_v34 }
 0x121   : > { %518 = vst [vmem:[#allocation2] sm:$0xff] %v514_v39  ;;  %520 = vst [vmem:[#allocation2 + $0x10] sm:$0xff] %v516_v40  ;;  %v515_v43 = vadd.f32 %v720_v41, %v310_v35  ;;  %v517_v44 = vadd.f32 %v726_v42, %v312_v37 }
 0x123   : > { %519 = vst [vmem:[#allocation2 + $0x8] sm:$0xff] %v515_v43  ;;  %521 = vst [vmem:[#allocation2 + $0x18] sm:$0xff] %v517_v44 }
 0x128   : > { %v526_v45 = vld [vmem:[#allocation2] sm:$0xff]  ;;  %v528_v50 = vld [vmem:[#allocation2 + $0x10] sm:$0xff] }
 0x129   : > { %v537_v48 = vadd.f32 %v693_v46, %v526_v45  ;;  %v539_v52 = vadd.f32 %v693_v46, %v528_v50 }
 0x12a   : > { %v527_v47 = vld [vmem:[#allocation2 + $0x8] sm:$0xff]  ;;  %v529_v51 = vld [vmem:[#allocation2 + $0x18] sm:$0xff] }
 0x12b   : > { %v538_v49 = vadd.f32 %v693_v46, %v527_v47  ;;  %v540_v53 = vadd.f32 %v693_v46, %v529_v51  ;;  %v541_v54 = vmax.f32 %v537_v48, 0.0  ;;  %v543_v56 = vmax.f32 %v539_v52, 0.0 }
 0x12d   : > { %v542_v55 = vmax.f32 %v538_v49, 0.0  ;;  %v544_v57 = vmax.f32 %v540_v53, 0.0  ;;  %545 = vst [vmem:[%s976_s3] sm:$0xff] %v541_v54  ;;  %547 = vst [vmem:[%s976_s3 + $0x10] sm:$0xff] %v543_v56 }
 0x12f   : > { %546 = vst [vmem:[%s976_s3 + $0x8] sm:$0xff] %v542_v55  ;;  %548 = vst [vmem:[%s976_s3 + $0x18] sm:$0xff] %v544_v57 }
 0x130 PF: > { %s13_s16 = sadd.s32 1, %s844_s16   ;;  %s977_s12 = smov %s832_s13 }
 0x131   : > { %p10_p12 = scmp.ge.s32.totalorder %s13_s16, 11   ;;  %s978_s13 = smov %s902_s20 }
 0x132   : > { %s979_s14 = smov %s840_s15  ;;  %s980_s15 = smov %s982_s17 }
 0x133   :  { %12 = sbr.rel (!%p10_p12) target bundleno = 3 (0x3), region = 119 }

// kernel: multiscale_net_v12.26
= control target key start
LH: loop header
LB: loop body
LE: loop exit
PB: predicated region body
PF: predicated region fallthrough
CT: control target
= control target key end

     0   :  { %s338_s1 = inlined_call_operand.vmem [shape: bf16[128,128], index: 1, kind: input, shape index: {}]   ;;  %s339_s0 = inlined_call_operand.vmem [shape: bf16[32,128], index: 0, kind: input, shape index: {}]   ;;  %s340_s2 = inlined_call_operand.vmem [shape: f32[1,128], index: 2, kind: input, shape index: {}]   ;;  %s341_s3 = inlined_call_operand.vmem [shape: f32[32,128], index: 3, kind: output, shape index: {}]  }
   0x1   :  { %v255_v0 = vld [vmem:[%s338_s1] sm:$0xff]   ;;  %v256_v1 = vld [vmem:[%s338_s1 + $0x8] sm:$0xff]   ;;  %v257_v2 = vld [vmem:[%s338_s1 + $0x10] sm:$0xff]  }
   0x2   :  { %235 = vmatprep.subr.bf16.mxu0 %v255_v0  ;;  %v258_v3 = vld [vmem:[%s338_s1 + $0x18] sm:$0xff]   ;;  %v263_v4 = vld [vmem:[%s339_s0] sm:$0xff]   ;;  %v260_v6 = vld [vmem:[%s338_s1 + $0x28] sm:$0xff]  }
   0x3   :  { %236 = vmatpush3.bf16.msra.mxu0 %v255_v0  ;;  %251 = vmatprep.mubr.bf16.mxu0 %v263_v4  ;;  %v259_v5 = vld [vmem:[%s338_s1 + $0x20] sm:$0xff]   ;;  %v261_v7 = vld [vmem:[%s338_s1 + $0x30] sm:$0xff]   ;;  %v262_v8 = vld [vmem:[%s338_s1 + $0x38] sm:$0xff]  }
   0x4   :  { %237 = vmatprep.subr.bf16.mxu0 %v256_v1  ;;  %v264_v9 = vld [vmem:[%s339_s0 + $0x8] sm:$0xff]   ;;  %v224_v10 = vld [vmem:[%s340_s2] ss:$0 sm:$0xff] }
   0x7   :  { %238 = vmatpush3.bf16.msra.mxu0 %v256_v1 }
   0x8   :  { %239 = vmatprep.subr.bf16.mxu0 %v257_v2 }
   0xb   :  { %240 = vmatpush3.bf16.msra.mxu0 %v257_v2 }
   0xc   :  { %241 = vmatprep.subr.bf16.mxu0 %v258_v3 }
   0xf   :  { %242 = vmatpush3.bf16.msra.mxu0 %v258_v3 }
  0x10   :  { %243 = vmatprep.subr.bf16.mxu0 %v259_v5 }
  0x13   :  { %244 = vmatpush3.bf16.msra.mxu0 %v259_v5 }
  0x14   :  { %245 = vmatprep.subr.bf16.mxu0 %v260_v6 }
  0x17   :  { %246 = vmatpush3.bf16.msra.mxu0 %v260_v6 }
  0x18   :  { %247 = vmatprep.subr.bf16.mxu0 %v261_v7 }
  0x1b   :  { %248 = vmatpush3.bf16.msra.mxu0 %v261_v7 }
  0x1c   :  { %249 = vmatprep.subr.bf16.mxu0 %v262_v8 }
  0x1f   :  { %250 = vmatpush3.bf16.msra.mxu0 %v262_v8 }
  0x22   :  { %252 = vmatmul.mubr.bf16.vlgmr.msra.gmra.mrb[0].mxu0 %v264_v9 }
  0xf5   :  { %v253_v11 = vpop.f32.mrb[0].mxu0 }
  0xf6   :  { %v180_v12 = vadd.f32 %v253_v11, %v224_v10  ;;  %v141_v13 = vpop.f32.mrb[1].mxu0 }
  0xf7   :  { %v178_v14 = vadd.f32 %v224_v10, %v141_v13  ;;  %v254_v15 = vpop.f32.mrb[2].mxu0 }
  0xf8   :  { %v181_v16 = vadd.f32 %v254_v15, %v224_v10  ;;  %v144_v17 = vpop.f32.mrb[3].mxu0  ;;  %v184_v18 = vmul.f32 %v180_v12, %v180_v12 }
  0xf9   :  { %v179_v19 = vadd.f32 %v224_v10, %v144_v17  ;;  %v182_v20 = vmul.f32 %v178_v14, %v178_v14 }
  0xfa   :  { %190 = vadd.xlane.f32.xlu1 %v184_v18  ;;  %v185_v21 = vmul.f32 %v181_v16, %v181_v16 }
  0xfb   :  { %186 = vadd.xlane.f32.xlu0 %v182_v20  ;;  %v183_v22 = vmul.f32 %v179_v19, %v179_v19 }
  0xfe   :  { %192 = vadd.xlane.f32.xlu1 %v185_v21 }
  0xff   :  { %188 = vadd.xlane.f32.xlu0 %v183_v22 }
 0x187   :  { %v191_v23 = vpop.xlane.xlu1 %190 }
 0x188   :  { %v196_v24 = vmax.f32 %v191_v23, 1e-24  ;;  %v187_v25 = vpop.xlane.xlu0 %186 }
 0x189   :  { %v194_v26 = vmax.f32 %v187_v25, 1e-24 }
 0x18a   :  { %265 = vrsqrt.f32 %v196_v24 }
 0x18b   :  { %267 = vrsqrt.f32 %v194_v26  ;;  %v193_v27 = vpop.xlane.xlu1 %192 }
 0x18c   :  { %v197_v28 = vmax.f32 %v193_v27, 1e-24  ;;  %v189_v29 = vpop.xlane.xlu0 %188 }
 0x18d   :  { %v195_v30 = vmax.f32 %v189_v29, 1e-24 }
 0x18e   :  { %269 = vrsqrt.f32 %v197_v28 }
 0x18f   :  { %271 = vrsqrt.f32 %v195_v30 }
 0x194   :  { %v266_v31 = vpop.eup %265 }
 0x195   :  { %v268_v32 = vpop.eup %267  ;;  %v204_v33 = vmul.f32 %v266_v31, %v180_v12 }
 0x196   :  { %v202_v34 = vmul.f32 %v268_v32, %v178_v14 }
 0x197   :  { %208 = vst [vmem:[%s341_s3 + $0x10] sm:$0xff] %v204_v33 }
 0x198   :  { %v270_v35 = vpop.eup %269  ;;  %206 = vst [vmem:[%s341_s3] sm:$0xff] %v202_v34 }
 0x199   :  { %v272_v36 = vpop.eup %271  ;;  %v205_v37 = vmul.f32 %v270_v35, %v181_v16 }
 0x19a   :  { %v203_v38 = vmul.f32 %v272_v36, %v179_v19 }
 0x19b   :  { %209 = vst [vmem:[%s341_s3 + $0x18] sm:$0xff] %v205_v37 }
 0x19c   :  { %207 = vst [vmem:[%s341_s3 + $0x8] sm:$0xff] %v203_v38 }

// kernel: multiscale_net_v12.19
= control target key start
LH: loop header
LB: loop body
LE: loop exit
PB: predicated region body
PF: predicated region fallthrough
CT: control target
= control target key end

     0   :  { %s310_s1 = inlined_call_operand.vmem [shape: bf16[128,128], index: 1, kind: input, shape index: {}]   ;;  %s311_s0 = inlined_call_operand.vmem [shape: bf16[32,128], index: 0, kind: input, shape index: {}]   ;;  %s312_s2 = inlined_call_operand.vmem [shape: f32[1,128], index: 2, kind: input, shape index: {}]   ;;  %s313_s3 = inlined_call_operand.vmem [shape: f32[32,128], index: 3, kind: output, shape index: {}]  }
   0x1   :  { %v235_v0 = vld [vmem:[%s310_s1] sm:$0xff]   ;;  %v236_v1 = vld [vmem:[%s310_s1 + $0x8] sm:$0xff]   ;;  %v237_v2 = vld [vmem:[%s310_s1 + $0x10] sm:$0xff]  }
   0x2   :  { %215 = vmatprep.subr.bf16.mxu0 %v235_v0  ;;  %v238_v3 = vld [vmem:[%s310_s1 + $0x18] sm:$0xff]   ;;  %v243_v4 = vld [vmem:[%s311_s0] sm:$0xff]   ;;  %v240_v6 = vld [vmem:[%s310_s1 + $0x28] sm:$0xff]  }
   0x3   :  { %216 = vmatpush3.bf16.msra.mxu0 %v235_v0  ;;  %231 = vmatprep.mubr.bf16.mxu0 %v243_v4  ;;  %v239_v5 = vld [vmem:[%s310_s1 + $0x20] sm:$0xff]   ;;  %v241_v7 = vld [vmem:[%s310_s1 + $0x30] sm:$0xff]   ;;  %v242_v8 = vld [vmem:[%s310_s1 + $0x38] sm:$0xff]  }
   0x4   :  { %217 = vmatprep.subr.bf16.mxu0 %v236_v1  ;;  %v244_v9 = vld [vmem:[%s311_s0 + $0x8] sm:$0xff]   ;;  %v204_v10 = vld [vmem:[%s312_s2] ss:$0 sm:$0xff] }
   0x7   :  { %218 = vmatpush3.bf16.msra.mxu0 %v236_v1 }
   0x8   :  { %219 = vmatprep.subr.bf16.mxu0 %v237_v2 }
   0xb   :  { %220 = vmatpush3.bf16.msra.mxu0 %v237_v2 }
   0xc   :  { %221 = vmatprep.subr.bf16.mxu0 %v238_v3 }
   0xf   :  { %222 = vmatpush3.bf16.msra.mxu0 %v238_v3 }
  0x10   :  { %223 = vmatprep.subr.bf16.mxu0 %v239_v5 }
  0x13   :  { %224 = vmatpush3.bf16.msra.mxu0 %v239_v5 }
  0x14   :  { %225 = vmatprep.subr.bf16.mxu0 %v240_v6 }
  0x17   :  { %226 = vmatpush3.bf16.msra.mxu0 %v240_v6 }
  0x18   :  { %227 = vmatprep.subr.bf16.mxu0 %v241_v7 }
  0x1b   :  { %228 = vmatpush3.bf16.msra.mxu0 %v241_v7 }
  0x1c   :  { %229 = vmatprep.subr.bf16.mxu0 %v242_v8 }
  0x1f   :  { %230 = vmatpush3.bf16.msra.mxu0 %v242_v8 }
  0x22   :  { %232 = vmatmul.mubr.bf16.vlgmr.msra.gmra.mrb[0].mxu0 %v244_v9 }
  0xf5   :  { %v233_v11 = vpop.f32.mrb[0].mxu0 }
  0xf6   :  { %v180_v12 = vadd.f32 %v233_v11, %v204_v10  ;;  %v141_v13 = vpop.f32.mrb[1].mxu0 }
  0xf7   :  { %v178_v14 = vadd.f32 %v204_v10, %v141_v13  ;;  %v234_v15 = vpop.f32.mrb[2].mxu0 }
  0xf8   :  { %v184_v16 = vmax.f32 %v180_v12, 0.0  ;;  %v181_v17 = vadd.f32 %v234_v15, %v204_v10  ;;  %v144_v18 = vpop.f32.mrb[3].mxu0 }
  0xf9   :  { %v182_v19 = vmax.f32 %v178_v14, 0.0  ;;  %v179_v20 = vadd.f32 %v204_v10, %v144_v18 }
  0xfa   :  { %188 = vst [vmem:[%s313_s3 + $0x10] sm:$0xff] %v184_v16  ;;  %v185_v21 = vmax.f32 %v181_v17, 0.0 }
  0xfb   :  { %186 = vst [vmem:[%s313_s3] sm:$0xff] %v182_v19  ;;  %v183_v22 = vmax.f32 %v179_v20, 0.0 }
  0xfc   :  { %189 = vst [vmem:[%s313_s3 + $0x18] sm:$0xff] %v185_v21 }
  0xfd   :  { %187 = vst [vmem:[%s313_s3 + $0x8] sm:$0xff] %v183_v22 }

// kernel: multiscale_net_v12.20
= control target key start
LH: loop header
LB: loop body
LE: loop exit
PB: predicated region body
PF: predicated region fallthrough
CT: control target
= control target key end

     0   :  { %v328_v1 = vmov 0   ;;  %v229_v19 = vlaneseq  ;;  %s430_s1 = inlined_call_operand.vmem [shape: bf16[128,256], index: 1, kind: input, shape index: {}]   ;;  %s431_s0 = inlined_call_operand.vmem [shape: bf16[32,128], index: 0, kind: input, shape index: {}]   ;;  %s432_s2 = inlined_call_operand.vmem [shape: f32[1,256], index: 2, kind: input, shape index: {}]   ;;  %s433_s3 = inlined_call_operand.vmem [shape: f32[32,256], index: 3, kind: output, shape index: {}]  }
   0x1   :  { %v302_v0 = vld [vmem:[%s430_s1 + $0x4] ss:$8 sps:$4 sm:$0xff]   ;;  %179 = vmatprep.mubr.bf16.mxu0 %v328_v1  ;;  %189 = vmatprep.mubr.bf16.mxu1 %v328_v1  ;;  %v304_v2 = vld [vmem:[%s430_s1] ss:$8 sps:$4 sm:$0xff]   ;;  %v305_v3 = vld [vmem:[%s430_s1 + $0x14] ss:$8 sps:$4 sm:$0xff]  }
   0x2   :  { %147 = vmatprep.subr.bf16.mxu0 %v302_v0  ;;  %285 = vmatprep.subr.bf16.mxu1 %v302_v0  ;;  %v307_v4 = vld [vmem:[%s430_s1 + $0x10] ss:$8 sps:$4 sm:$0xff]   ;;  %v308_v5 = vld [vmem:[%s430_s1 + $0x24] ss:$8 sps:$4 sm:$0xff]   ;;  %v310_v6 = vld [vmem:[%s430_s1 + $0x20] ss:$8 sps:$4 sm:$0xff]  }
   0x3   :  { %148 = vmatpush1.bf16.msra.mxu0 %v304_v2  ;;  %293 = vmatpush1.bf16.msra.mxu1 %v304_v2  ;;  %v311_v7 = vld [vmem:[%s430_s1 + $0x34] ss:$8 sps:$4 sm:$0xff]   ;;  %v313_v8 = vld [vmem:[%s430_s1 + $0x30] ss:$8 sps:$4 sm:$0xff]   ;;  %v314_v9 = vld [vmem:[%s430_s1 + $0x44] ss:$8 sps:$4 sm:$0xff]  }
   0x4   :  { %149 = vmatprep.subr.bf16.mxu0 %v305_v3  ;;  %286 = vmatprep.subr.bf16.mxu1 %v305_v3  ;;  %v316_v10 = vld [vmem:[%s430_s1 + $0x40] ss:$8 sps:$4 sm:$0xff]   ;;  %v317_v11 = vld [vmem:[%s430_s1 + $0x54] ss:$8 sps:$4 sm:$0xff]   ;;  %v319_v12 = vld [vmem:[%s430_s1 + $0x50] ss:$8 sps:$4 sm:$0xff]  }
   0x5   :  { %v320_v13 = vld [vmem:[%s430_s1 + $0x64] ss:$8 sps:$4 sm:$0xff]   ;;  %v322_v14 = vld [vmem:[%s430_s1 + $0x60] ss:$8 sps:$4 sm:$0xff]   ;;  %v323_v15 = vld [vmem:[%s430_s1 + $0x74] ss:$8 sps:$4 sm:$0xff]  }
   0x6   :  { %v325_v16 = vld [vmem:[%s430_s1 + $0x70] ss:$8 sps:$4 sm:$0xff]   ;;  %v326_v17 = vld [vmem:[%s431_s0] sm:$0xff]   ;;  %v327_v18 = vld [vmem:[%s431_s0 + $0x8] sm:$0xff]   ;;  %v230_v20 = vshrl.u32 %v229_v19, 7 }
   0x7   :  { %150 = vmatpush1.bf16.msra.mxu0 %v307_v4  ;;  %294 = vmatpush1.bf16.msra.mxu1 %v307_v4  ;;  %v227_v22 = vld [vmem:[%s432_s2] sm:$0x3] }
   0x8   :  { %151 = vmatprep.subr.bf16.mxu0 %v308_v5  ;;  %287 = vmatprep.subr.bf16.mxu1 %v308_v5  ;;  %v231_v21 = vsub.s32 0, %v230_v20  ;;  %v235_v23 = vsub.s32 1, %v230_v20 }
   0xa   :  { %v232_v24 = vrot.slane %v227_v22, %v231_v21  ;;  %v236_v25 = vrot.slane %v227_v22, %v235_v23 }
   0xb   :  { %152 = vmatpush1.bf16.msra.mxu0 %v310_v6  ;;  %295 = vmatpush1.bf16.msra.mxu1 %v310_v6 }
   0xc   :  { %153 = vmatprep.subr.bf16.mxu0 %v311_v7  ;;  %288 = vmatprep.subr.bf16.mxu1 %v311_v7 }
   0xf   :  { %154 = vmatpush1.bf16.msra.mxu0 %v313_v8  ;;  %296 = vmatpush1.bf16.msra.mxu1 %v313_v8 }
  0x10   :  { %155 = vmatprep.subr.bf16.mxu0 %v314_v9  ;;  %289 = vmatprep.subr.bf16.mxu1 %v314_v9 }
  0x13   :  { %156 = vmatpush1.bf16.msra.mxu0 %v316_v10  ;;  %297 = vmatpush1.bf16.msra.mxu1 %v316_v10 }
  0x14   :  { %157 = vmatprep.subr.bf16.mxu0 %v317_v11  ;;  %290 = vmatprep.subr.bf16.mxu1 %v317_v11 }
  0x17   :  { %158 = vmatpush1.bf16.msra.mxu0 %v319_v12  ;;  %298 = vmatpush1.bf16.msra.mxu1 %v319_v12 }
  0x18   :  { %159 = vmatprep.subr.bf16.mxu0 %v320_v13  ;;  %291 = vmatprep.subr.bf16.mxu1 %v320_v13 }
  0x1b   :  { %160 = vmatpush1.bf16.msra.mxu0 %v322_v14  ;;  %299 = vmatpush1.bf16.msra.mxu1 %v322_v14 }
  0x1c   :  { %161 = vmatprep.subr.bf16.mxu0 %v323_v15  ;;  %292 = vmatprep.subr.bf16.mxu1 %v323_v15 }
  0x1f   :  { %162 = vmatpush1.bf16.msra.mxu0 %v325_v16  ;;  %300 = vmatpush1.bf16.msra.mxu1 %v325_v16 }
  0x22   :  { %180 = vmatmul.mubr.bf16.vlgmr.msra.gmra.mrb[0].mxu0 %v326_v17  ;;  %190 = vmatmul.mubr.bf16.vlgmr.msra.gmra.mrb[0].mxu1 %v327_v18 }
  0xf5   :  { %v181_v26 = vpop.f32.mrb[0].mxu0  ;;  %v191_v27 = vpop.f32.mrb[0].mxu1 }
  0xf6   :  { %v239_v28 = vadd.f32 %v232_v24, %v181_v26  ;;  %v243_v29 = vadd.f32 %v232_v24, %v191_v27  ;;  %v183_v30 = vpop.f32.mrb[1].mxu0  ;;  %v193_v31 = vpop.f32.mrb[1].mxu1 }
  0xf7   :  { %v240_v32 = vadd.f32 %v236_v25, %v183_v30  ;;  %v244_v33 = vadd.f32 %v236_v25, %v193_v31  ;;  %v185_v34 = vpop.f32.mrb[2].mxu0  ;;  %v195_v35 = vpop.f32.mrb[2].mxu1 }
  0xf8   :  { %v247_v36 = vmax.f32 %v239_v28, 0.0  ;;  %v251_v37 = vmax.f32 %v243_v29, 0.0  ;;  %v241_v38 = vadd.f32 %v232_v24, %v185_v34  ;;  %v245_v39 = vadd.f32 %v232_v24, %v195_v35  ;;  %v187_v40 = vpop.f32.mrb[3].mxu0  ;;  %v197_v41 = vpop.f32.mrb[3].mxu1 }
  0xf9   :  { %v248_v42 = vmax.f32 %v240_v32, 0.0  ;;  %v252_v43 = vmax.f32 %v244_v33, 0.0  ;;  %v242_v44 = vadd.f32 %v236_v25, %v187_v40  ;;  %v246_v45 = vadd.f32 %v236_v25, %v197_v41 }
  0xfa   :  { %255 = vst [vmem:[%s433_s3] sm:$0xff] %v247_v36  ;;  %259 = vst [vmem:[%s433_s3 + $0x20] sm:$0xff] %v251_v37  ;;  %v249_v46 = vmax.f32 %v241_v38, 0.0  ;;  %v253_v47 = vmax.f32 %v245_v39, 0.0 }
  0xfb   :  { %256 = vst [vmem:[%s433_s3 + $0x8] sm:$0xff] %v248_v42  ;;  %260 = vst [vmem:[%s433_s3 + $0x28] sm:$0xff] %v252_v43  ;;  %v250_v48 = vmax.f32 %v242_v44, 0.0  ;;  %v254_v49 = vmax.f32 %v246_v45, 0.0 }
  0xfc   :  { %257 = vst [vmem:[%s433_s3 + $0x10] sm:$0xff] %v249_v46  ;;  %261 = vst [vmem:[%s433_s3 + $0x30] sm:$0xff] %v253_v47 }
  0xfd   :  { %258 = vst [vmem:[%s433_s3 + $0x18] sm:$0xff] %v250_v48  ;;  %262 = vst [vmem:[%s433_s3 + $0x38] sm:$0xff] %v254_v49 }

// kernel: multiscale_net_v12.27
= control target key start
LH: loop header
LB: loop body
LE: loop exit
PB: predicated region body
PF: predicated region fallthrough
CT: control target
= control target key end

     0   :  { %s548_s9 = smov 0   ;;  %s550_s10 = smov 0   ;;  %s589_s0 = inlined_call_operand.vmem [shape: bf16[2,16,128], index: 0, kind: input, shape index: {}]   ;;  %s590_s1 = inlined_call_operand.vmem [shape: bf16[2,128,128], index: 1, kind: input, shape index: {}]   ;;  %s591_s2 = inlined_call_operand.vmem [shape: f32[2,16,128], index: 2, kind: output, shape index: {}]  }
   0x1   :  { %s552_s11 = smov 0  }
   0x2 LB: > { %s24_s12 = sadd.s32 1, %s525_s10  ;;  %p422_p0 = scmp.ge.s32.totalorder %s529_s11, 1  ;;  %s529_s11 = sphi %s552_s11, %s12_s11   ;;  %s525_s10 = sphi %s550_s10, %s593_s10   ;;  %s521_s9 = sphi %s548_s9, %s592_s9  }
   0x3   : > { %p26_p1 = scmp.ge.s32.totalorder %s24_s12, 2  ;;  %p143_p2 = scmp.lt.s32.totalorder %s529_s11, 3 }
   0x5   : > { %s595_s12 = smov (%p26_p1, %s24_s12), 0  ;;  %p144_p3 = pnand %p422_p0, %p143_p2 }
   0x6   : > { %p179_p4 = scmp.lt.s32.totalorder (!%p144_p3), %s521_s9, 1  ;;  %v531_v0 = vmov (!%p144_p3), 0.0   ;;  %vm532_vm0 = vmmov (!%p144_p3), 0  }
   0x7   : > { %147 = sbr.rel (%p144_p3) target bundleno = 264 (0x108), region = 28  ;;  %452 = vmatprep.subr.bf16.mxu0 (!%p144_p3), %v531_v0  ;;  %468 = vmatprep.mubr.msk.bf16.mxu0 (!%p144_p3), %vm532_vm0, %v531_v0 }
   0xe   : > { %s597_s9 = smov (!%p179_p4, %s521_s9), 1 }
   0xf   : > { %s441_s13 = sshll.u32 %s597_s9, 6  ;;  %s440_s17 = sshll.u32 %s597_s9, 3 }
  0x10   : > { %s192_s16 = scalar_lea.vmem %s590_s1, %s441_s13  ;;  %s186_s20 = scalar_lea.vmem %s589_s0, %s440_s17 }
  0x11   : > { %v498_v1 = vld [vmem:[%s192_s16] sm:$0xff]   ;;  %v499_v2 = vld [vmem:[%s192_s16 + $0x8] sm:$0xff]   ;;  %v500_v3 = vld [vmem:[%s192_s16 + $0x10] sm:$0xff]   ;;  %s442_s21 = sshll.u32 %s597_s9, 4 }
  0x12   : > { %453 = vmatpush3.bf16.msra.mxu0 %v498_v1  ;;  %v501_v4 = vld [vmem:[%s192_s16 + $0x18] sm:$0xff]   ;;  %v502_v5 = vld [vmem:[%s192_s16 + $0x20] sm:$0xff]   ;;  %v503_v6 = vld [vmem:[%s192_s16 + $0x28] sm:$0xff]   ;;  %s201_s24 = scalar_lea.vmem %s591_s2, %s442_s21 }
  0x13   : > { %454 = vmatprep.subr.bf16.mxu0 %v531_v0  ;;  %v504_v7 = vld [vmem:[%s192_s16 + $0x30] sm:$0xff]   ;;  %v505_v8 = vld [vmem:[%s192_s16 + $0x38] sm:$0xff]   ;;  %v506_v9 = vld [vmem:[%s186_s20] sm:$0xff]  }
  0x16   : > { %455 = vmatpush3.bf16.msra.mxu0 %v499_v2 }
  0x17   : > { %456 = vmatprep.subr.bf16.mxu0 %v531_v0 }
  0x1a   : > { %457 = vmatpush3.bf16.msra.mxu0 %v500_v3 }
  0x1b   : > { %458 = vmatprep.subr.bf16.mxu0 %v531_v0 }
  0x1e   : > { %459 = vmatpush3.bf16.msra.mxu0 %v501_v4 }
  0x1f   : > { %460 = vmatprep.subr.bf16.mxu0 %v531_v0 }
  0x22   : > { %461 = vmatpush3.bf16.msra.mxu0 %v502_v5 }
  0x23   : > { %462 = vmatprep.subr.bf16.mxu0 %v531_v0 }
  0x26   : > { %463 = vmatpush3.bf16.msra.mxu0 %v503_v6 }
  0x27   : > { %464 = vmatprep.subr.bf16.mxu0 %v531_v0 }
  0x2a   : > { %465 = vmatpush3.bf16.msra.mxu0 %v504_v7 }
  0x2b   : > { %466 = vmatprep.subr.bf16.mxu0 %v531_v0 }
  0x2e   : > { %467 = vmatpush3.bf16.msra.mxu0 %v505_v8 }
  0x31   : > { %469 = vmatmul.mubr.bf16.vlgmr.msra.gmra.mrb[0].mxu0 %v506_v9 }
 0x104   : > { %v310_v10 = vpop.f32.mrb[0].mxu0 }
 0x105   : > { %317 = vst [vmem:[%s201_s24] sm:$0xff] %v310_v10  ;;  %v470_v11 = vpop.f32.mrb[1].mxu0 }
 0x106   : > { %v313_v12 = vpop.f32.mrb[2].mxu0 }
 0x107   : > { %318 = vst [vmem:[%s201_s24 + $0x8] sm:$0xff] %v313_v12  ;;  %v471_v13 = vpop.f32.mrb[3].mxu0 }
 0x108 PF: > { %s12_s11 = sadd.s32 1, %s529_s11   ;;  %s592_s9 = smov %s525_s10 }
 0x109   : > { %p9_p5 = scmp.ge.s32.totalorder %s12_s11, 4   ;;  %s593_s10 = smov %s595_s12 }
 0x10b   :  { %11 = sbr.rel (!%p9_p5) target bundleno = 2 (0x2), region = 61 }

// kernel: multiscale_net_v12.30
= control target key start
LH: loop header
LB: loop body
LE: loop exit
PB: predicated region body
PF: predicated region fallthrough
CT: control target
= control target key end

     0   :  { %s842_s12 = smov 0   ;;  %s844_s13 = smov 0   ;;  %s927_s0 = inlined_call_operand.vmem [shape: bf16[8,1280], index: 0, kind: input, shape index: {}]   ;;  %s928_s1 = inlined_call_operand.vmem [shape: bf16[1280,256], index: 1, kind: input, shape index: {}]   ;;  %s929_s2 = inlined_call_operand.vmem [shape: f32[1,256], index: 2, kind: input, shape index: {}]   ;;  %s930_s3 = inlined_call_operand.vmem [shape: f32[8,256], index: 3, kind: output, shape index: {}]  }
   0x1   :  { %s846_s14 = smov 0  }
   0x2 LB: > { %s25_s15 = sadd.s32 1, %s815_s13  ;;  %p675_p0 = scmp.ge.s32.totalorder %s819_s14, 1  ;;  %s819_s14 = sphi %s846_s14, %s13_s14   ;;  %s815_s13 = sphi %s844_s13, %s932_s13   ;;  %s811_s12 = sphi %s842_s12, %s931_s12  }
   0x3   : > { %p26_p1 = scmp.ge.s32.totalorder %s25_s15, 5  ;;  %p194_p2 = scmp.lt.s32.totalorder %s819_s14, 6 }
   0x5   : > { %s934_s15 = smov (%p26_p1, %s25_s15), 0  ;;  %p195_p3 = pnand %p675_p0, %p194_p2 }
   0x6   : > { %s676_s16 = sshll.u32 (!%p195_p3), %s811_s12, 1  ;;  %s678_s17 = sshll.u32 (!%p195_p3), %s811_s12, 5 }
   0x7   : > { %198 = sbr.rel (%p195_p3) target bundleno = 317 (0x13d), region = 32  ;;  %p243_p4 = scmp.lt.s32.totalorder (!%p195_p3), %s676_s16, 9 }
   0x8   : > { %p252_p5 = scmp.lt.s32.totalorder (!%p195_p3), %s678_s17, 159  ;;  %p681_p6 = scmp.ne.s32.totalorder (!%p195_p3), %s811_s12, 0 }
   0xe   : > { %s936_s16 = smov (!%p243_p4, %s676_s16), 9  ;;  %s938_s17 = smov (!%p252_p5, %s678_s17), 159 }
   0xf   : > { %s677_s18 = sshll.u32 %s936_s16, 2  ;;  %s721_s22 = sshll.u32 %s938_s17, 3  ;;  %v821_v0 = vmov (!%p681_p6), 0.0  }
  0x10   : > { %s867_s21 = scalar_lea.vmem %s927_s0, %s677_s18  ;;  %s872_s25 = scalar_lea.vmem %s928_s1, %s721_s22  ;;  %281 = vst [vmem:[#allocation2] sm:$0xff] (!%p681_p6), %v821_v0  ;;  %282 = vst [vmem:[#allocation2 + $0x8] sm:$0xff] (!%p681_p6), %v821_v0 }
  0x11   : > { %280 = sbr.rel (%p681_p6) target bundleno = 24 (0x18), region = 36 }
  0x18 PF: > { %v747_v1 = vld [vmem:[%s872_s25 + $0x4] ss:$8 sps:$4 sm:$0xff]   ;;  %v749_v2 = vld [vmem:[%s872_s25] ss:$8 sps:$4 sm:$0xff]   ;;  %v750_v3 = vld [vmem:[%s872_s25 + $0x14] ss:$8 sps:$4 sm:$0xff]  }
  0x19   : > { %485 = vmatprep.subr.bf16.mxu0 %v747_v1  ;;  %v752_v4 = vld [vmem:[%s872_s25 + $0x10] ss:$8 sps:$4 sm:$0xff]   ;;  %v753_v5 = vld [vmem:[%s872_s25 + $0x24] ss:$8 sps:$4 sm:$0xff]   ;;  %v755_v6 = vld [vmem:[%s872_s25 + $0x20] ss:$8 sps:$4 sm:$0xff]  }
  0x1a   : > { %486 = vmatpush1.bf16.msra.mxu0 %v749_v2  ;;  %v756_v7 = vld [vmem:[%s872_s25 + $0x34] ss:$8 sps:$4 sm:$0xff]   ;;  %v758_v8 = vld [vmem:[%s872_s25 + $0x30] ss:$8 sps:$4 sm:$0xff]   ;;  %v759_v9 = vld [vmem:[%s872_s25 + $0x44] ss:$8 sps:$4 sm:$0xff]  }
  0x1b   : > { %487 = vmatprep.subr.bf16.mxu0 %v750_v3  ;;  %v761_v10 = vld [vmem:[%s872_s25 + $0x40] ss:$8 sps:$4 sm:$0xff]   ;;  %v762_v11 = vld [vmem:[%s872_s25 + $0x54] ss:$8 sps:$4 sm:$0xff]   ;;  %v764_v12 = vld [vmem:[%s872_s25 + $0x50] ss:$8 sps:$4 sm:$0xff]  }
  0x1c   : > { %v765_v13 = vld [vmem:[%s872_s25 + $0x64] ss:$8 sps:$4 sm:$0xff]   ;;  %v767_v16 = vld [vmem:[%s872_s25 + $0x60] ss:$8 sps:$4 sm:$0xff]   ;;  %v768_v17 = vld [vmem:[%s872_s25 + $0x74] ss:$8 sps:$4 sm:$0xff]  }
  0x1d   : > { %v285_v14 = vld [vmem:[%s867_s21] sm:$0xff]  ;;  %v770_v18 = vld [vmem:[%s872_s25 + $0x70] ss:$8 sps:$4 sm:$0xff]   ;;  %v774_v21 = vld [vmem:[%s872_s25 + $0x94] ss:$8 sps:$4 sm:$0xff]   ;;  %p716_p7 = scmp.ne.s32.totalorder %s811_s12, 4 }
  0x1e   : > { %488 = vmatpush1.bf16.msra.mxu0 %v752_v4  ;;  %v683_v15 = vcombine.high %v285_v14, %v285_v14  ;;  %v771_v19 = vld [vmem:[%s872_s25 + $0x84] ss:$8 sps:$4 sm:$0xff]   ;;  %v773_v20 = vld [vmem:[%s872_s25 + $0x80] ss:$8 sps:$4 sm:$0xff]   ;;  %v776_v22 = vld [vmem:[%s872_s25 + $0x90] ss:$8 sps:$4 sm:$0xff]   ;;  %v682_v35 = vcombine.low %v285_v14, %v285_v14  ;;  %v538_v44 = vlaneseq (!%p716_p7) }
  0x1f   : > { %489 = vmatprep.subr.bf16.mxu0 %v753_v5  ;;  %v777_v23 = vld [vmem:[%s872_s25 + $0xa4] ss:$8 sps:$4 sm:$0xff]   ;;  %v779_v24 = vld [vmem:[%s872_s25 + $0xa0] ss:$8 sps:$4 sm:$0xff]   ;;  %v780_v25 = vld [vmem:[%s872_s25 + $0xb4] ss:$8 sps:$4 sm:$0xff]  }
  0x20   : > { %517 = vmatprep.mubr.bf16.mxu0 %v683_v15  ;;  %v782_v26 = vld [vmem:[%s872_s25 + $0xb0] ss:$8 sps:$4 sm:$0xff]   ;;  %v783_v27 = vld [vmem:[%s872_s25 + $0xc4] ss:$8 sps:$4 sm:$0xff]   ;;  %v785_v28 = vld [vmem:[%s872_s25 + $0xc0] ss:$8 sps:$4 sm:$0xff]  }
  0x21   : > { %v786_v29 = vld [vmem:[%s872_s25 + $0xd4] ss:$8 sps:$4 sm:$0xff]   ;;  %v788_v30 = vld [vmem:[%s872_s25 + $0xd0] ss:$8 sps:$4 sm:$0xff]   ;;  %v789_v31 = vld [vmem:[%s872_s25 + $0xe4] ss:$8 sps:$4 sm:$0xff]  }
  0x22   : > { %490 = vmatpush1.bf16.msra.mxu0 %v755_v6  ;;  %v791_v32 = vld [vmem:[%s872_s25 + $0xe0] ss:$8 sps:$4 sm:$0xff]   ;;  %v792_v33 = vld [vmem:[%s872_s25 + $0xf4] ss:$8 sps:$4 sm:$0xff]   ;;  %v794_v34 = vld [vmem:[%s872_s25 + $0xf0] ss:$8 sps:$4 sm:$0xff]  }
  0x23   : > { %491 = vmatprep.subr.bf16.mxu0 %v756_v7  ;;  %v283_v36 = vld [vmem:[#allocation2] sm:$0xff]  ;;  %v284_v37 = vld [vmem:[#allocation2 + $0x8] sm:$0xff]  ;;  %v539_v45 = vshrl.u32 (!%p716_p7), %v538_v44, 7 }
  0x24   : > { %v536_v46 = vld [vmem:[%s929_s2] sm:$0x3] (!%p716_p7) }
  0x25   : > { %v540_v47 = vsub.s32 (!%p716_p7), 0, %v539_v45  ;;  %v544_v48 = vsub.s32 (!%p716_p7), 1, %v539_v45 }
  0x26   : > { %492 = vmatpush1.bf16.msra.mxu0 %v758_v8 }
  0x27   : > { %493 = vmatprep.subr.bf16.mxu0 %v759_v9  ;;  %v541_v51 = vrot.slane (!%p716_p7), %v536_v46, %v540_v47  ;;  %v545_v52 = vrot.slane (!%p716_p7), %v536_v46, %v544_v48 }
  0x2a   : > { %494 = vmatpush1.bf16.msra.mxu0 %v761_v10 }
  0x2b   : > { %495 = vmatprep.subr.bf16.mxu0 %v762_v11 }
  0x2e   : > { %496 = vmatpush1.bf16.msra.mxu0 %v764_v12 }
  0x2f   : > { %497 = vmatprep.subr.bf16.mxu0 %v765_v13 }
  0x32   : > { %498 = vmatpush1.bf16.msra.mxu0 %v767_v16 }
  0x33   : > { %499 = vmatprep.subr.bf16.mxu0 %v768_v17 }
  0x36   : > { %500 = vmatpush1.bf16.msra.mxu0 %v770_v18 }
  0x37   : > { %501 = vmatprep.subr.bf16.mxu0 %v771_v19 }
  0x3a   : > { %502 = vmatpush1.bf16.msra.mxu0 %v773_v20 }
  0x3b   : > { %503 = vmatprep.subr.bf16.mxu0 %v774_v21 }
  0x3e   : > { %504 = vmatpush1.bf16.msra.mxu0 %v776_v22 }
  0x3f   : > { %505 = vmatprep.subr.bf16.mxu0 %v777_v23 }
  0x42   : > { %506 = vmatpush1.bf16.msra.mxu0 %v779_v24 }
  0x43   : > { %507 = vmatprep.subr.bf16.mxu0 %v780_v25 }
  0x46   : > { %508 = vmatpush1.bf16.msra.mxu0 %v782_v26 }
  0x47   : > { %509 = vmatprep.subr.bf16.mxu0 %v783_v27 }
  0x4a   : > { %510 = vmatpush1.bf16.msra.mxu0 %v785_v28 }
  0x4b   : > { %511 = vmatprep.subr.bf16.mxu0 %v786_v29 }
  0x4e   : > { %512 = vmatpush1.bf16.msra.mxu0 %v788_v30 }
  0x4f   : > { %513 = vmatprep.subr.bf16.mxu0 %v789_v31 }
  0x52   : > { %514 = vmatpush1.bf16.msra.mxu0 %v791_v32 }
  0x53   : > { %515 = vmatprep.subr.bf16.mxu0 %v792_v33 }
  0x56   : > { %516 = vmatpush1.bf16.msra.mxu0 %v794_v34 }
  0x59   : > { %518 = vmatmul.mubr.bf16.vlgmr.msra.gmra.mrb[0].mxu0 %v682_v35 }
 0x12a   : > { %533 = sbr.rel (%p716_p7) target bundleno = 317 (0x13d), region = 40 }
 0x12c   : > { %v519_v38 = vpop.f32.mrb[0].mxu0 }
 0x12d   : > { %v526_v39 = vadd.f32 %v519_v38, %v283_v36  ;;  %v521_v40 = vpop.f32.mrb[1].mxu0 }
 0x12e   : > { %v527_v41 = vadd.f32 %v521_v40, %v284_v37  ;;  %v523_v42 = vpop.f32.mrb[2].mxu0 }
 0x12f   : > { %528 = vst [vmem:[#allocation2] sm:$0xff] %v526_v39  ;;  %v524_v43 = vpop.f32.mrb[3].mxu0 }
 0x130   : > { %529 = vst [vmem:[#allocation2 + $0x8] sm:$0xff] %v527_v41 }
 0x136   : > { %v534_v49 = vld [vmem:[#allocation2] sm:$0xff] }
 0x137   : > { %v535_v50 = vld [vmem:[#allocation2 + $0x8] sm:$0xff]  ;;  %v548_v53 = vadd.f32 %v541_v51, %v534_v49 }
 0x138   : > { %v549_v54 = vadd.f32 %v545_v52, %v535_v50 }
 0x139   : > { %v550_v55 = vmax.f32 %v548_v53, 0.0 }
 0x13a   : > { %v551_v56 = vmax.f32 %v549_v54, 0.0 }
 0x13b   : > { %552 = vst [vmem:[%s930_s3] sm:$0xff] %v550_v55 }
 0x13c   : > { %553 = vst [vmem:[%s930_s3 + $0x8] sm:$0xff] %v551_v56 }
 0x13d PF: > { %s13_s14 = sadd.s32 1, %s819_s14   ;;  %s931_s12 = smov %s815_s13 }
 0x13e   : > { %p10_p8 = scmp.ge.s32.totalorder %s13_s14, 7   ;;  %s932_s13 = smov %s934_s15 }
 0x140   :  { %12 = sbr.rel (!%p10_p8) target bundleno = 2 (0x2), region = 76 }

// kernel: multiscale_net_v12.35
= control target key start
LH: loop header
LB: loop body
LE: loop exit
PB: predicated region body
PF: predicated region fallthrough
CT: control target
= control target key end

     0   :  { %s707_s12 = smov 0   ;;  %s709_s13 = smov 0   ;;  %s770_s0 = inlined_call_operand.vmem [shape: bf16[8,1024], index: 0, kind: input, shape index: {}]   ;;  %s771_s1 = inlined_call_operand.vmem [shape: bf16[1024,128], index: 1, kind: input, shape index: {}]   ;;  %s772_s2 = inlined_call_operand.vmem [shape: f32[1,128], index: 2, kind: input, shape index: {}]   ;;  %s773_s3 = inlined_call_operand.vmem [shape: f32[8,128], index: 3, kind: output, shape index: {}]  }
   0x1   :  { %s711_s14 = smov 0  }
   0x2 LB: > { %s25_s15 = sadd.s32 1, %s680_s13  ;;  %p568_p0 = scmp.ge.s32.totalorder %s684_s14, 1  ;;  %s684_s14 = sphi %s711_s14, %s13_s14   ;;  %s680_s13 = sphi %s709_s13, %s775_s13   ;;  %s676_s12 = sphi %s707_s12, %s774_s12  }
   0x3   : > { %p26_p1 = scmp.ge.s32.totalorder %s25_s15, 4  ;;  %p189_p2 = scmp.lt.s32.totalorder %s684_s14, 5 }
   0x5   : > { %s777_s15 = smov (%p26_p1, %s25_s15), 0  ;;  %p190_p3 = pnand %p568_p0, %p189_p2 }
   0x6   : > { %s569_s16 = sshll.u32 (!%p190_p3), %s676_s12, 1  ;;  %s571_s17 = sshll.u32 (!%p190_p3), %s676_s12, 5 }
   0x7   : > { %193 = sbr.rel (%p190_p3) target bundleno = 287 (0x11f), region = 32  ;;  %p233_p4 = scmp.lt.s32.totalorder (!%p190_p3), %s569_s16, 7 }
   0x8   : > { %p241_p5 = scmp.lt.s32.totalorder (!%p190_p3), %s571_s17, 127  ;;  %p573_p6 = scmp.ne.s32.totalorder (!%p190_p3), %s676_s12, 0 }
   0xe   : > { %s779_s16 = smov (!%p233_p4, %s569_s16), 7  ;;  %s781_s17 = smov (!%p241_p5, %s571_s17), 127 }
   0xf   : > { %s570_s18 = sshll.u32 %s779_s16, 2  ;;  %s572_s22 = sshll.u32 %s781_s17, 2  ;;  %v686_v0 = vmov (!%p573_p6), 0.0  }
  0x10   : > { %s238_s21 = scalar_lea.vmem %s770_s0, %s570_s18  ;;  %s735_s25 = scalar_lea.vmem %s771_s1, %s572_s22  ;;  %264 = vst [vmem:[#allocation2] sm:$0xff] (!%p573_p6), %v686_v0 }
  0x11   : > { %263 = sbr.rel (%p573_p6) target bundleno = 24 (0x18), region = 36 }
  0x18 PF: > { %v644_v1 = vld [vmem:[%s735_s25 + $0x40] sm:$0xff]   ;;  %v646_v3 = vld [vmem:[%s735_s25 + $0x48] sm:$0xff]   ;;  %v648_v5 = vld [vmem:[%s735_s25 + $0x50] sm:$0xff]   ;;  %p592_p7 = scmp.ne.s32.totalorder %s676_s12, 3 }
  0x19   : > { %v645_v2 = vld [vmem:[%s735_s25] sm:$0xff]   ;;  %597 = vmatprep.subr.bf16.mxu0 %v644_v1  ;;  %v647_v4 = vld [vmem:[%s735_s25 + $0x8] sm:$0xff]   ;;  %v649_v6 = vld [vmem:[%s735_s25 + $0x10] sm:$0xff]  }
  0x1a   : > { %598 = vmatpush3.bf16.msra.mxu0 %v645_v2  ;;  %v650_v7 = vld [vmem:[%s735_s25 + $0x58] sm:$0xff]   ;;  %v652_v9 = vld [vmem:[%s735_s25 + $0x60] sm:$0xff]   ;;  %v654_v11 = vld [vmem:[%s735_s25 + $0x68] sm:$0xff]  }
  0x1b   : > { %599 = vmatprep.subr.bf16.mxu0 %v646_v3  ;;  %v651_v8 = vld [vmem:[%s735_s25 + $0x18] sm:$0xff]   ;;  %v653_v10 = vld [vmem:[%s735_s25 + $0x20] sm:$0xff]   ;;  %v655_v14 = vld [vmem:[%s735_s25 + $0x28] sm:$0xff]  }
  0x1c   : > { %v266_v12 = vld [vmem:[%s238_s21] sm:$0xff]  ;;  %v656_v15 = vld [vmem:[%s735_s25 + $0x70] sm:$0xff]   ;;  %v658_v17 = vld [vmem:[%s735_s25 + $0x78] sm:$0xff]  }
  0x1d   : > { %v575_v13 = vcombine.high %v266_v12, %v266_v12  ;;  %v657_v16 = vld [vmem:[%s735_s25 + $0x30] sm:$0xff]   ;;  %v659_v18 = vld [vmem:[%s735_s25 + $0x38] sm:$0xff]   ;;  %v574_v19 = vcombine.low %v266_v12, %v266_v12  ;;  %v265_v21 = vld [vmem:[#allocation2] sm:$0xff] }
  0x1e   : > { %600 = vmatpush3.bf16.msra.mxu0 %v647_v4  ;;  %v593_v28 = vld [vmem:[%s772_s2] ss:$0 sm:$0xff] (!%p592_p7) }
  0x1f   : > { %601 = vmatprep.subr.bf16.mxu0 %v648_v5  ;;  %434 = vmatprep.mubr.bf16.mxu0 %v575_v13 }
  0x22   : > { %602 = vmatpush3.bf16.msra.mxu0 %v649_v6 }
  0x23   : > { %603 = vmatprep.subr.bf16.mxu0 %v650_v7 }
  0x26   : > { %604 = vmatpush3.bf16.msra.mxu0 %v651_v8 }
  0x27   : > { %605 = vmatprep.subr.bf16.mxu0 %v652_v9 }
  0x2a   : > { %606 = vmatpush3.bf16.msra.mxu0 %v653_v10 }
  0x2b   : > { %607 = vmatprep.subr.bf16.mxu0 %v654_v11 }
  0x2e   : > { %608 = vmatpush3.bf16.msra.mxu0 %v655_v14 }
  0x2f   : > { %609 = vmatprep.subr.bf16.mxu0 %v656_v15 }
  0x32   : > { %610 = vmatpush3.bf16.msra.mxu0 %v657_v16 }
  0x33   : > { %611 = vmatprep.subr.bf16.mxu0 %v658_v17 }
  0x36   : > { %612 = vmatpush3.bf16.msra.mxu0 %v659_v18 }
  0x39   : > { %435 = vmatmul.mubr.bf16.vlgmr.msra.gmra.mrb[0].mxu0 %v574_v19 }
 0x10c   : > { %v613_v20 = vpop.f32.mrb[0].mxu0  ;;  %447 = sbr.rel (%p592_p7) target bundleno = 287 (0x11f), region = 40 }
 0x10d   : > { %v614_v22 = vpop.f32.mrb[1].mxu0 }
 0x10e   : > { %v615_v23 = vadd.f32 %v614_v22, %v613_v20  ;;  %v616_v24 = vpop.f32.mrb[2].mxu0 }
 0x10f   : > { %v617_v25 = vpop.f32.mrb[3].mxu0 }
 0x110   : > { %v442_v26 = vadd.f32 %v615_v23, %v265_v21 }
 0x112   : > { %443 = vst [vmem:[#allocation2] sm:$0xff] %v442_v26 }
 0x119   : > { %v448_v27 = vld [vmem:[#allocation2] sm:$0xff] }
 0x11a   : > { %v456_v29 = vadd.f32 %v593_v28, %v448_v27 }
 0x11c   : > { %v457_v30 = vmax.f32 %v456_v29, 0.0 }
 0x11e   : > { %458 = vst [vmem:[%s773_s3] sm:$0xff] %v457_v30 }
 0x11f PF: > { %s13_s14 = sadd.s32 1, %s684_s14   ;;  %s774_s12 = smov %s680_s13 }
 0x120   : > { %p10_p8 = scmp.ge.s32.totalorder %s13_s14, 6   ;;  %s775_s13 = smov %s777_s15 }
 0x122   :  { %12 = sbr.rel (!%p10_p8) target bundleno = 2 (0x2), region = 76 }

// kernel: multiscale_net_v12.31
= control target key start
LH: loop header
LB: loop body
LE: loop exit
PB: predicated region body
PF: predicated region fallthrough
CT: control target
= control target key end

     0   :  { %s842_s12 = smov 0   ;;  %s844_s13 = smov 0   ;;  %s927_s0 = inlined_call_operand.vmem [shape: bf16[8,2304], index: 0, kind: input, shape index: {}]   ;;  %s928_s1 = inlined_call_operand.vmem [shape: bf16[2304,256], index: 1, kind: input, shape index: {}]   ;;  %s929_s2 = inlined_call_operand.vmem [shape: f32[1,256], index: 2, kind: input, shape index: {}]   ;;  %s930_s3 = inlined_call_operand.vmem [shape: f32[8,256], index: 3, kind: output, shape index: {}]  }
   0x1   :  { %s846_s14 = smov 0  }
   0x2 LB: > { %s25_s15 = sadd.s32 1, %s815_s13  ;;  %p675_p0 = scmp.ge.s32.totalorder %s819_s14, 1  ;;  %s819_s14 = sphi %s846_s14, %s13_s14   ;;  %s815_s13 = sphi %s844_s13, %s932_s13   ;;  %s811_s12 = sphi %s842_s12, %s931_s12  }
   0x3   : > { %p26_p1 = scmp.ge.s32.totalorder %s25_s15, 9  ;;  %p194_p2 = scmp.lt.s32.totalorder %s819_s14, 10 }
   0x5   : > { %s934_s15 = smov (%p26_p1, %s25_s15), 0  ;;  %p195_p3 = pnand %p675_p0, %p194_p2 }
   0x6   : > { %s676_s16 = sshll.u32 (!%p195_p3), %s811_s12, 1  ;;  %s678_s17 = sshll.u32 (!%p195_p3), %s811_s12, 5 }
   0x7   : > { %198 = sbr.rel (%p195_p3) target bundleno = 317 (0x13d), region = 32  ;;  %p243_p4 = scmp.lt.s32.totalorder (!%p195_p3), %s676_s16, 17 }
   0x8   : > { %p252_p5 = scmp.lt.s32.totalorder (!%p195_p3), %s678_s17, 287  ;;  %p681_p6 = scmp.ne.s32.totalorder (!%p195_p3), %s811_s12, 0 }
   0xe   : > { %s936_s16 = smov (!%p243_p4, %s676_s16), 17  ;;  %s938_s17 = smov (!%p252_p5, %s678_s17), 287 }
   0xf   : > { %s677_s18 = sshll.u32 %s936_s16, 2  ;;  %s721_s22 = sshll.u32 %s938_s17, 3  ;;  %v821_v0 = vmov (!%p681_p6), 0.0  }
  0x10   : > { %s867_s21 = scalar_lea.vmem %s927_s0, %s677_s18  ;;  %s872_s25 = scalar_lea.vmem %s928_s1, %s721_s22  ;;  %281 = vst [vmem:[#allocation2] sm:$0xff] (!%p681_p6), %v821_v0  ;;  %282 = vst [vmem:[#allocation2 + $0x8] sm:$0xff] (!%p681_p6), %v821_v0 }
  0x11   : > { %280 = sbr.rel (%p681_p6) target bundleno = 24 (0x18), region = 36 }
  0x18 PF: > { %v747_v1 = vld [vmem:[%s872_s25 + $0x4] ss:$8 sps:$4 sm:$0xff]   ;;  %v749_v2 = vld [vmem:[%s872_s25] ss:$8 sps:$4 sm:$0xff]   ;;  %v750_v3 = vld [vmem:[%s872_s25 + $0x14] ss:$8 sps:$4 sm:$0xff]  }
  0x19   : > { %485 = vmatprep.subr.bf16.mxu0 %v747_v1  ;;  %v752_v4 = vld [vmem:[%s872_s25 + $0x10] ss:$8 sps:$4 sm:$0xff]   ;;  %v753_v5 = vld [vmem:[%s872_s25 + $0x24] ss:$8 sps:$4 sm:$0xff]   ;;  %v755_v6 = vld [vmem:[%s872_s25 + $0x20] ss:$8 sps:$4 sm:$0xff]  }
  0x1a   : > { %486 = vmatpush1.bf16.msra.mxu0 %v749_v2  ;;  %v756_v7 = vld [vmem:[%s872_s25 + $0x34] ss:$8 sps:$4 sm:$0xff]   ;;  %v758_v8 = vld [vmem:[%s872_s25 + $0x30] ss:$8 sps:$4 sm:$0xff]   ;;  %v759_v9 = vld [vmem:[%s872_s25 + $0x44] ss:$8 sps:$4 sm:$0xff]  }
  0x1b   : > { %487 = vmatprep.subr.bf16.mxu0 %v750_v3  ;;  %v761_v10 = vld [vmem:[%s872_s25 + $0x40] ss:$8 sps:$4 sm:$0xff]   ;;  %v762_v11 = vld [vmem:[%s872_s25 + $0x54] ss:$8 sps:$4 sm:$0xff]   ;;  %v764_v12 = vld [vmem:[%s872_s25 + $0x50] ss:$8 sps:$4 sm:$0xff]  }
  0x1c   : > { %v765_v13 = vld [vmem:[%s872_s25 + $0x64] ss:$8 sps:$4 sm:$0xff]   ;;  %v767_v16 = vld [vmem:[%s872_s25 + $0x60] ss:$8 sps:$4 sm:$0xff]   ;;  %v768_v17 = vld [vmem:[%s872_s25 + $0x74] ss:$8 sps:$4 sm:$0xff]  }
  0x1d   : > { %v285_v14 = vld [vmem:[%s867_s21] sm:$0xff]  ;;  %v770_v18 = vld [vmem:[%s872_s25 + $0x70] ss:$8 sps:$4 sm:$0xff]   ;;  %v774_v21 = vld [vmem:[%s872_s25 + $0x94] ss:$8 sps:$4 sm:$0xff]   ;;  %p716_p7 = scmp.ne.s32.totalorder %s811_s12, 8 }
  0x1e   : > { %488 = vmatpush1.bf16.msra.mxu0 %v752_v4  ;;  %v683_v15 = vcombine.high %v285_v14, %v285_v14  ;;  %v771_v19 = vld [vmem:[%s872_s25 + $0x84] ss:$8 sps:$4 sm:$0xff]   ;;  %v773_v20 = vld [vmem:[%s872_s25 + $0x80] ss:$8 sps:$4 sm:$0xff]   ;;  %v776_v22 = vld [vmem:[%s872_s25 + $0x90] ss:$8 sps:$4 sm:$0xff]   ;;  %v682_v35 = vcombine.low %v285_v14, %v285_v14  ;;  %v538_v44 = vlaneseq (!%p716_p7) }
  0x1f   : > { %489 = vmatprep.subr.bf16.mxu0 %v753_v5  ;;  %v777_v23 = vld [vmem:[%s872_s25 + $0xa4] ss:$8 sps:$4 sm:$0xff]   ;;  %v779_v24 = vld [vmem:[%s872_s25 + $0xa0] ss:$8 sps:$4 sm:$0xff]   ;;  %v780_v25 = vld [vmem:[%s872_s25 + $0xb4] ss:$8 sps:$4 sm:$0xff]  }
  0x20   : > { %517 = vmatprep.mubr.bf16.mxu0 %v683_v15  ;;  %v782_v26 = vld [vmem:[%s872_s25 + $0xb0] ss:$8 sps:$4 sm:$0xff]   ;;  %v783_v27 = vld [vmem:[%s872_s25 + $0xc4] ss:$8 sps:$4 sm:$0xff]   ;;  %v785_v28 = vld [vmem:[%s872_s25 + $0xc0] ss:$8 sps:$4 sm:$0xff]  }
  0x21   : > { %v786_v29 = vld [vmem:[%s872_s25 + $0xd4] ss:$8 sps:$4 sm:$0xff]   ;;  %v788_v30 = vld [vmem:[%s872_s25 + $0xd0] ss:$8 sps:$4 sm:$0xff]   ;;  %v789_v31 = vld [vmem:[%s872_s25 + $0xe4] ss:$8 sps:$4 sm:$0xff]  }
  0x22   : > { %490 = vmatpush1.bf16.msra.mxu0 %v755_v6  ;;  %v791_v32 = vld [vmem:[%s872_s25 + $0xe0] ss:$8 sps:$4 sm:$0xff]   ;;  %v792_v33 = vld [vmem:[%s872_s25 + $0xf4] ss:$8 sps:$4 sm:$0xff]   ;;  %v794_v34 = vld [vmem:[%s872_s25 + $0xf0] ss:$8 sps:$4 sm:$0xff]  }
  0x23   : > { %491 = vmatprep.subr.bf16.mxu0 %v756_v7  ;;  %v283_v36 = vld [vmem:[#allocation2] sm:$0xff]  ;;  %v284_v37 = vld [vmem:[#allocation2 + $0x8] sm:$0xff]  ;;  %v539_v45 = vshrl.u32 (!%p716_p7), %v538_v44, 7 }
  0x24   : > { %v536_v46 = vld [vmem:[%s929_s2] sm:$0x3] (!%p716_p7) }
  0x25   : > { %v540_v47 = vsub.s32 (!%p716_p7), 0, %v539_v45  ;;  %v544_v48 = vsub.s32 (!%p716_p7), 1, %v539_v45 }
  0x26   : > { %492 = vmatpush1.bf16.msra.mxu0 %v758_v8 }
  0x27   : > { %493 = vmatprep.subr.bf16.mxu0 %v759_v9  ;;  %v541_v51 = vrot.slane (!%p716_p7), %v536_v46, %v540_v47  ;;  %v545_v52 = vrot.slane (!%p716_p7), %v536_v46, %v544_v48 }
  0x2a   : > { %494 = vmatpush1.bf16.msra.mxu0 %v761_v10 }
  0x2b   : > { %495 = vmatprep.subr.bf16.mxu0 %v762_v11 }
  0x2e   : > { %496 = vmatpush1.bf16.msra.mxu0 %v764_v12 }
  0x2f   : > { %497 = vmatprep.subr.bf16.mxu0 %v765_v13 }
  0x32   : > { %498 = vmatpush1.bf16.msra.mxu0 %v767_v16 }
  0x33   : > { %499 = vmatprep.subr.bf16.mxu0 %v768_v17 }
  0x36   : > { %500 = vmatpush1.bf16.msra.mxu0 %v770_v18 }
  0x37   : > { %501 = vmatprep.subr.bf16.mxu0 %v771_v19 }
  0x3a   : > { %502 = vmatpush1.bf16.msra.mxu0 %v773_v20 }
  0x3b   : > { %503 = vmatprep.subr.bf16.mxu0 %v774_v21 }
  0x3e   : > { %504 = vmatpush1.bf16.msra.mxu0 %v776_v22 }
  0x3f   : > { %505 = vmatprep.subr.bf16.mxu0 %v777_v23 }
  0x42   : > { %506 = vmatpush1.bf16.msra.mxu0 %v779_v24 }
  0x43   : > { %507 = vmatprep.subr.bf16.mxu0 %v780_v25 }
  0x46   : > { %508 = vmatpush1.bf16.msra.mxu0 %v782_v26 }
  0x47   : > { %509 = vmatprep.subr.bf16.mxu0 %v783_v27 }
  0x4a   : > { %510 = vmatpush1.bf16.msra.mxu0 %v785_v28 }
  0x4b   : > { %511 = vmatprep.subr.bf16.mxu0 %v786_v29 }
  0x4e   : > { %512 = vmatpush1.bf16.msra.mxu0 %v788_v30 }
  0x4f   : > { %513 = vmatprep.subr.bf16.mxu0 %v789_v31 }
  0x52   : > { %514 = vmatpush1.bf16.msra.mxu0 %v791_v32 }
  0x53   : > { %515 = vmatprep.subr.bf16.mxu0 %v792_v33 }
  0x56   : > { %516 = vmatpush1.bf16.msra.mxu0 %v794_v34 }
  0x59   : > { %518 = vmatmul.mubr.bf16.vlgmr.msra.gmra.mrb[0].mxu0 %v682_v35 }
 0x12a   : > { %533 = sbr.rel (%p716_p7) target bundleno = 317 (0x13d), region = 40 }
 0x12c   : > { %v519_v38 = vpop.f32.mrb[0].mxu0 }
 0x12d   : > { %v526_v39 = vadd.f32 %v519_v38, %v283_v36  ;;  %v521_v40 = vpop.f32.mrb[1].mxu0 }
 0x12e   : > { %v527_v41 = vadd.f32 %v521_v40, %v284_v37  ;;  %v523_v42 = vpop.f32.mrb[2].mxu0 }
 0x12f   : > { %528 = vst [vmem:[#allocation2] sm:$0xff] %v526_v39  ;;  %v524_v43 = vpop.f32.mrb[3].mxu0 }
 0x130   : > { %529 = vst [vmem:[#allocation2 + $0x8] sm:$0xff] %v527_v41 }
 0x136   : > { %v534_v49 = vld [vmem:[#allocation2] sm:$0xff] }
 0x137   : > { %v535_v50 = vld [vmem:[#allocation2 + $0x8] sm:$0xff]  ;;  %v548_v53 = vadd.f32 %v541_v51, %v534_v49 }
 0x138   : > { %v549_v54 = vadd.f32 %v545_v52, %v535_v50 }
 0x139   : > { %v550_v55 = vmax.f32 %v548_v53, 0.0 }
 0x13a   : > { %v551_v56 = vmax.f32 %v549_v54, 0.0 }
 0x13b   : > { %552 = vst [vmem:[%s930_s3] sm:$0xff] %v550_v55 }
 0x13c   : > { %553 = vst [vmem:[%s930_s3 + $0x8] sm:$0xff] %v551_v56 }
 0x13d PF: > { %s13_s14 = sadd.s32 1, %s819_s14   ;;  %s931_s12 = smov %s815_s13 }
 0x13e   : > { %p10_p8 = scmp.ge.s32.totalorder %s13_s14, 11   ;;  %s932_s13 = smov %s934_s15 }
 0x140   :  { %12 = sbr.rel (!%p10_p8) target bundleno = 2 (0x2), region = 76 }

// kernel: multiscale_net_v12.33
= control target key start
LH: loop header
LB: loop body
LE: loop exit
PB: predicated region body
PF: predicated region fallthrough
CT: control target
= control target key end

     0   :  { %s707_s12 = smov 0   ;;  %s709_s13 = smov 0   ;;  %s770_s0 = inlined_call_operand.vmem [shape: bf16[8,512], index: 0, kind: input, shape index: {}]   ;;  %s771_s1 = inlined_call_operand.vmem [shape: bf16[512,128], index: 1, kind: input, shape index: {}]   ;;  %s772_s2 = inlined_call_operand.vmem [shape: f32[1,128], index: 2, kind: input, shape index: {}]   ;;  %s773_s3 = inlined_call_operand.vmem [shape: f32[8,128], index: 3, kind: output, shape index: {}]  }
   0x1   :  { %s711_s14 = smov 0  }
   0x2 LB: > { %s25_s15 = sadd.s32 1, %s680_s13  ;;  %p568_p0 = scmp.ge.s32.totalorder %s684_s14, 1  ;;  %s684_s14 = sphi %s711_s14, %s13_s14   ;;  %s680_s13 = sphi %s709_s13, %s775_s13   ;;  %s676_s12 = sphi %s707_s12, %s774_s12  }
   0x3   : > { %p26_p1 = scmp.ge.s32.totalorder %s25_s15, 2  ;;  %p189_p2 = scmp.lt.s32.totalorder %s684_s14, 3 }
   0x5   : > { %s777_s15 = smov (%p26_p1, %s25_s15), 0  ;;  %p190_p3 = pnand %p568_p0, %p189_p2 }
   0x6   : > { %s569_s16 = sshll.u32 (!%p190_p3), %s676_s12, 1  ;;  %s571_s17 = sshll.u32 (!%p190_p3), %s676_s12, 5 }
   0x7   : > { %193 = sbr.rel (%p190_p3) target bundleno = 287 (0x11f), region = 32  ;;  %p233_p4 = scmp.lt.s32.totalorder (!%p190_p3), %s569_s16, 3 }
   0x8   : > { %p241_p5 = scmp.lt.s32.totalorder (!%p190_p3), %s571_s17, 63  ;;  %p573_p6 = scmp.ne.s32.totalorder (!%p190_p3), %s676_s12, 0 }
   0xe   : > { %s779_s16 = smov (!%p233_p4, %s569_s16), 3  ;;  %s781_s17 = smov (!%p241_p5, %s571_s17), 63 }
   0xf   : > { %s570_s18 = sshll.u32 %s779_s16, 2  ;;  %s572_s22 = sshll.u32 %s781_s17, 2  ;;  %v686_v0 = vmov (!%p573_p6), 0.0  }
  0x10   : > { %s238_s21 = scalar_lea.vmem %s770_s0, %s570_s18  ;;  %s735_s25 = scalar_lea.vmem %s771_s1, %s572_s22  ;;  %264 = vst [vmem:[#allocation2] sm:$0xff] (!%p573_p6), %v686_v0 }
  0x11   : > { %263 = sbr.rel (%p573_p6) target bundleno = 24 (0x18), region = 36 }
  0x18 PF: > { %v644_v1 = vld [vmem:[%s735_s25 + $0x40] sm:$0xff]   ;;  %v646_v3 = vld [vmem:[%s735_s25 + $0x48] sm:$0xff]   ;;  %v648_v5 = vld [vmem:[%s735_s25 + $0x50] sm:$0xff]   ;;  %p592_p7 = scmp.ne.s32.totalorder %s676_s12, 1 }
  0x19   : > { %v645_v2 = vld [vmem:[%s735_s25] sm:$0xff]   ;;  %597 = vmatprep.subr.bf16.mxu0 %v644_v1  ;;  %v647_v4 = vld [vmem:[%s735_s25 + $0x8] sm:$0xff]   ;;  %v649_v6 = vld [vmem:[%s735_s25 + $0x10] sm:$0xff]  }
  0x1a   : > { %598 = vmatpush3.bf16.msra.mxu0 %v645_v2  ;;  %v650_v7 = vld [vmem:[%s735_s25 + $0x58] sm:$0xff]   ;;  %v652_v9 = vld [vmem:[%s735_s25 + $0x60] sm:$0xff]   ;;  %v654_v11 = vld [vmem:[%s735_s25 + $0x68] sm:$0xff]  }
  0x1b   : > { %599 = vmatprep.subr.bf16.mxu0 %v646_v3  ;;  %v651_v8 = vld [vmem:[%s735_s25 + $0x18] sm:$0xff]   ;;  %v653_v10 = vld [vmem:[%s735_s25 + $0x20] sm:$0xff]   ;;  %v655_v14 = vld [vmem:[%s735_s25 + $0x28] sm:$0xff]  }
  0x1c   : > { %v266_v12 = vld [vmem:[%s238_s21] sm:$0xff]  ;;  %v656_v15 = vld [vmem:[%s735_s25 + $0x70] sm:$0xff]   ;;  %v658_v17 = vld [vmem:[%s735_s25 + $0x78] sm:$0xff]  }
  0x1d   : > { %v575_v13 = vcombine.high %v266_v12, %v266_v12  ;;  %v657_v16 = vld [vmem:[%s735_s25 + $0x30] sm:$0xff]   ;;  %v659_v18 = vld [vmem:[%s735_s25 + $0x38] sm:$0xff]   ;;  %v574_v19 = vcombine.low %v266_v12, %v266_v12  ;;  %v265_v21 = vld [vmem:[#allocation2] sm:$0xff] }
  0x1e   : > { %600 = vmatpush3.bf16.msra.mxu0 %v647_v4  ;;  %v593_v28 = vld [vmem:[%s772_s2] ss:$0 sm:$0xff] (!%p592_p7) }
  0x1f   : > { %601 = vmatprep.subr.bf16.mxu0 %v648_v5  ;;  %434 = vmatprep.mubr.bf16.mxu0 %v575_v13 }
  0x22   : > { %602 = vmatpush3.bf16.msra.mxu0 %v649_v6 }
  0x23   : > { %603 = vmatprep.subr.bf16.mxu0 %v650_v7 }
  0x26   : > { %604 = vmatpush3.bf16.msra.mxu0 %v651_v8 }
  0x27   : > { %605 = vmatprep.subr.bf16.mxu0 %v652_v9 }
  0x2a   : > { %606 = vmatpush3.bf16.msra.mxu0 %v653_v10 }
  0x2b   : > { %607 = vmatprep.subr.bf16.mxu0 %v654_v11 }
  0x2e   : > { %608 = vmatpush3.bf16.msra.mxu0 %v655_v14 }
  0x2f   : > { %609 = vmatprep.subr.bf16.mxu0 %v656_v15 }
  0x32   : > { %610 = vmatpush3.bf16.msra.mxu0 %v657_v16 }
  0x33   : > { %611 = vmatprep.subr.bf16.mxu0 %v658_v17 }
  0x36   : > { %612 = vmatpush3.bf16.msra.mxu0 %v659_v18 }
  0x39   : > { %435 = vmatmul.mubr.bf16.vlgmr.msra.gmra.mrb[0].mxu0 %v574_v19 }
 0x10c   : > { %v613_v20 = vpop.f32.mrb[0].mxu0  ;;  %447 = sbr.rel (%p592_p7) target bundleno = 287 (0x11f), region = 40 }
 0x10d   : > { %v614_v22 = vpop.f32.mrb[1].mxu0 }
 0x10e   : > { %v615_v23 = vadd.f32 %v614_v22, %v613_v20  ;;  %v616_v24 = vpop.f32.mrb[2].mxu0 }
 0x10f   : > { %v617_v25 = vpop.f32.mrb[3].mxu0 }
 0x110   : > { %v442_v26 = vadd.f32 %v615_v23, %v265_v21 }
 0x112   : > { %443 = vst [vmem:[#allocation2] sm:$0xff] %v442_v26 }
 0x119   : > { %v448_v27 = vld [vmem:[#allocation2] sm:$0xff] }
 0x11a   : > { %v456_v29 = vadd.f32 %v593_v28, %v448_v27 }
 0x11c   : > { %v457_v30 = vmax.f32 %v456_v29, 0.0 }
 0x11e   : > { %458 = vst [vmem:[%s773_s3] sm:$0xff] %v457_v30 }
 0x11f PF: > { %s13_s14 = sadd.s32 1, %s684_s14   ;;  %s774_s12 = smov %s680_s13 }
 0x120   : > { %p10_p8 = scmp.ge.s32.totalorder %s13_s14, 4   ;;  %s775_s13 = smov %s777_s15 }
 0x122   :  { %12 = sbr.rel (!%p10_p8) target bundleno = 2 (0x2), region = 76 }

// kernel: multiscale_net_v12.32
= control target key start
LH: loop header
LB: loop body
LE: loop exit
PB: predicated region body
PF: predicated region fallthrough
CT: control target
= control target key end

     0   :  { %s353_s1 = inlined_call_operand.vmem [shape: bf16[256,128], index: 1, kind: input, shape index: {}]   ;;  %s354_s0 = inlined_call_operand.vmem [shape: bf16[8,256], index: 0, kind: input, shape index: {}]   ;;  %s355_s2 = inlined_call_operand.vmem [shape: f32[1,128], index: 2, kind: input, shape index: {}]   ;;  %s356_s3 = inlined_call_operand.vmem [shape: f32[8,128], index: 3, kind: output, shape index: {}]  }
   0x1   :  { %v258_v0 = vld [vmem:[%s353_s1 + $0x40] sm:$0xff]   ;;  %v260_v2 = vld [vmem:[%s353_s1 + $0x48] sm:$0xff]   ;;  %v262_v4 = vld [vmem:[%s353_s1 + $0x50] sm:$0xff]  }
   0x2   :  { %v259_v1 = vld [vmem:[%s353_s1] sm:$0xff]   ;;  %236 = vmatprep.subr.bf16.mxu0 %v258_v0  ;;  %v261_v3 = vld [vmem:[%s353_s1 + $0x8] sm:$0xff]   ;;  %v263_v5 = vld [vmem:[%s353_s1 + $0x10] sm:$0xff]  }
   0x3   :  { %237 = vmatpush3.bf16.msra.mxu0 %v259_v1  ;;  %v264_v6 = vld [vmem:[%s353_s1 + $0x58] sm:$0xff]   ;;  %v266_v8 = vld [vmem:[%s353_s1 + $0x60] sm:$0xff]   ;;  %v268_v10 = vld [vmem:[%s353_s1 + $0x68] sm:$0xff]  }
   0x4   :  { %238 = vmatprep.subr.bf16.mxu0 %v260_v2  ;;  %v265_v7 = vld [vmem:[%s353_s1 + $0x18] sm:$0xff]   ;;  %v267_v9 = vld [vmem:[%s353_s1 + $0x20] sm:$0xff]   ;;  %v269_v13 = vld [vmem:[%s353_s1 + $0x28] sm:$0xff]  }
   0x5   :  { %v21_v11 = vld [vmem:[%s354_s0] sm:$0xff]  ;;  %v270_v14 = vld [vmem:[%s353_s1 + $0x70] sm:$0xff]   ;;  %v272_v16 = vld [vmem:[%s353_s1 + $0x78] sm:$0xff]  }
   0x6   :  { %v218_v12 = vcombine.high %v21_v11, %v21_v11  ;;  %v271_v15 = vld [vmem:[%s353_s1 + $0x30] sm:$0xff]   ;;  %v273_v17 = vld [vmem:[%s353_s1 + $0x38] sm:$0xff]   ;;  %v217_v18 = vcombine.low %v21_v11, %v21_v11  ;;  %v235_v21 = vld [vmem:[%s355_s2] ss:$0 sm:$0xff] }
   0x7   :  { %239 = vmatpush3.bf16.msra.mxu0 %v261_v3 }
   0x8   :  { %240 = vmatprep.subr.bf16.mxu0 %v262_v4  ;;  %189 = vmatprep.mubr.bf16.mxu0 %v218_v12 }
   0xb   :  { %241 = vmatpush3.bf16.msra.mxu0 %v263_v5 }
   0xc   :  { %242 = vmatprep.subr.bf16.mxu0 %v264_v6 }
   0xf   :  { %243 = vmatpush3.bf16.msra.mxu0 %v265_v7 }
  0x10   :  { %244 = vmatprep.subr.bf16.mxu0 %v266_v8 }
  0x13   :  { %245 = vmatpush3.bf16.msra.mxu0 %v267_v9 }
  0x14   :  { %246 = vmatprep.subr.bf16.mxu0 %v268_v10 }
  0x17   :  { %247 = vmatpush3.bf16.msra.mxu0 %v269_v13 }
  0x18   :  { %248 = vmatprep.subr.bf16.mxu0 %v270_v14 }
  0x1b   :  { %249 = vmatpush3.bf16.msra.mxu0 %v271_v15 }
  0x1c   :  { %250 = vmatprep.subr.bf16.mxu0 %v272_v16 }
  0x1f   :  { %251 = vmatpush3.bf16.msra.mxu0 %v273_v17 }
  0x22   :  { %190 = vmatmul.mubr.bf16.vlgmr.msra.gmra.mrb[0].mxu0 %v217_v18 }
  0xf5   :  { %v252_v19 = vpop.f32.mrb[0].mxu0 }
  0xf6   :  { %v253_v20 = vpop.f32.mrb[1].mxu0 }
  0xf7   :  { %v254_v22 = vadd.f32 %v253_v20, %v252_v19  ;;  %v255_v23 = vpop.f32.mrb[2].mxu0 }
  0xf8   :  { %v256_v24 = vpop.f32.mrb[3].mxu0 }
  0xf9   :  { %v210_v25 = vadd.f32 %v254_v22, %v235_v21 }
  0xfb   :  { %v211_v26 = vmax.f32 %v210_v25, 0.0 }
  0xfd   :  { %212 = vst [vmem:[%s356_s3] sm:$0xff] %v211_v26 }

// kernel: multiscale_net_v12.37
= control target key start
LH: loop header
LB: loop body
LE: loop exit
PB: predicated region body
PF: predicated region fallthrough
CT: control target
= control target key end

     0   :  { %s863_s12 = smov 0   ;;  %s865_s13 = smov 0   ;;  %s969_s0 = inlined_call_operand.vmem [shape: bf16[32,1280], index: 0, kind: input, shape index: {}]   ;;  %s970_s1 = inlined_call_operand.vmem [shape: bf16[1280,128], index: 1, kind: input, shape index: {}]   ;;  %s971_s2 = inlined_call_operand.vmem [shape: f32[1,128], index: 2, kind: input, shape index: {}]   ;;  %s972_s3 = inlined_call_operand.vmem [shape: f32[32,128], index: 3, kind: output, shape index: {}]  }
   0x1   :  { %s867_s14 = smov 0   ;;  %s869_s15 = smov 0  }
   0x2   :  { %s871_s16 = smov 0  }
   0x3 LB: > { %s25_s17 = sadd.s32 1, %s836_s15  ;;  %p48_p1 = scmp.ne.s32.totalorder %s828_s13, %s824_s12  ;;  %s840_s16 = sphi %s871_s16, %s13_s16   ;;  %s836_s15 = sphi %s869_s15, %s976_s15   ;;  %s832_s14 = sphi %s867_s14, %s975_s14   ;;  %s828_s13 = sphi %s865_s13, %s974_s13   ;;  %s824_s12 = sphi %s863_s12, %s973_s12  }
   0x4   : > { %p26_p0 = scmp.ge.s32.totalorder %s25_s17, 5  ;;  %p49_p2 = scmp.eq.s32.totalorder %s840_s16, 0 }
   0x5   : > { %s41_s19 = sadd.s32 1, %s828_s13  ;;  %p659_p5 = scmp.ge.s32.totalorder %s840_s16, 5 }
   0x6   : > { %s978_s17 = smov (%p26_p0, %s25_s17), 0  ;;  %p50_p3 = por %p49_p2, %p48_p1 }
   0x7   : > { %s37_s18 = ssub.s32 %s836_s15, %s978_s17  ;;  %162 = sbr.rel (%p659_p5) target bundleno = 21 (0x15), region = 20 }
   0x8   : > { %p39_p4 = scmp.eq.s32.totalorder %s37_s18, 0 }
   0xa   : > { %s898_s20 = scalar_select %p39_p4, %s828_s13, %s41_s19  }
   0xe   : > { %165 = sbr.rel (!%p50_p3) target bundleno = 21 (0x15), region = 24  ;;  %s167_s21 = sand.u32 (%p50_p3), 1, %s828_s13  }
   0xf   : > { %s694_s22 = sshll.u32 (%p50_p3), %s836_s15, 3  ;;  %s660_s23 = sshll.u32 (%p50_p3), %s167_s21, 5 }
  0x10   : > { %s175_s26 = scalar_lea.vmem (%p50_p3), %s969_s0, %s694_s22  ;;  %s169_s27 = scalar_lea.vmem (%p50_p3), [#allocation3], %s660_s23 }
  0x11   : > { %v209_v0 = vld [vmem:[%s175_s26] sm:$0xff] (%p50_p3)  ;;  %v211_v1 = vld [vmem:[%s175_s26 + $0x28] sm:$0xff] (%p50_p3)  ;;  %v213_v2 = vld [vmem:[%s175_s26 + $0x50] sm:$0xff] (%p50_p3) }
  0x12   : > { %210 = vst [vmem:[%s169_s27] sm:$0xff] (%p50_p3), %v209_v0  ;;  %212 = vst [vmem:[%s169_s27 + $0x8] sm:$0xff] (%p50_p3), %v211_v1  ;;  %v215_v3 = vld [vmem:[%s175_s26 + $0x78] sm:$0xff] (%p50_p3) }
  0x13   : > { %214 = vst [vmem:[%s169_s27 + $0x10] sm:$0xff] (%p50_p3), %v213_v2  ;;  %216 = vst [vmem:[%s169_s27 + $0x18] sm:$0xff] (%p50_p3), %v215_v3 }
  0x15 PF: > { %p663_p6 = scmp.ge.s32.totalorder %s840_s16, 1  ;;  %p233_p7 = scmp.lt.s32.totalorder %s840_s16, 6 }
  0x17   : > { %p234_p8 = pnand %p663_p6, %p233_p7 }
  0x18   : > { %s240_s28 = sand.u32 (!%p234_p8), 1, %s824_s12   ;;  %s665_s29 = sshll.u32 (!%p234_p8), %s832_s14, 5 }
  0x19   : > { %237 = sbr.rel (%p234_p8) target bundleno = 302 (0x12e), region = 66  ;;  %s664_s30 = sshll.u32 (!%p234_p8), %s240_s28, 5 }
  0x1a   : > { %p280_p9 = scmp.lt.s32.totalorder (!%p234_p8), %s665_s29, 159  ;;  %s915_s8 = scalar_lea.vmem (!%p234_p8), [#allocation3], %s664_s30 }
  0x1b   : > { %p667_p10 = scmp.ne.s32.totalorder (!%p234_p8), %s832_s14, 0 }
  0x20   : > { %s980_s29 = smov (!%p280_p9, %s665_s29), 159  ;;  %304 = sbr.rel (%p667_p10) target bundleno = 39 (0x27), region = 74 }
  0x21   : > { %s666_s4 = sshll.u32 %s980_s29, 2  ;;  %v842_v4 = vmov (!%p667_p10), 0.0  }
  0x22   : > { %s913_s7 = scalar_lea.vmem %s970_s1, %s666_s4  ;;  %305 = vst [vmem:[#allocation2] sm:$0xff] (!%p667_p10), %v842_v4  ;;  %306 = vst [vmem:[#allocation2 + $0x8] sm:$0xff] (!%p667_p10), %v842_v4 }
  0x23   : > { %307 = vst [vmem:[#allocation2 + $0x10] sm:$0xff] (!%p667_p10), %v842_v4  ;;  %308 = vst [vmem:[#allocation2 + $0x18] sm:$0xff] (!%p667_p10), %v842_v4 }
  0x27 PF: > { %v780_v5 = vld [vmem:[%s913_s7 + $0x40] sm:$0xff]   ;;  %v782_v7 = vld [vmem:[%s913_s7 + $0x48] sm:$0xff]   ;;  %v784_v9 = vld [vmem:[%s913_s7 + $0x50] sm:$0xff]   ;;  %p688_p11 = scmp.ne.s32.totalorder %s832_s14, 4 }
  0x28   : > { %v781_v6 = vld [vmem:[%s913_s7] sm:$0xff]   ;;  %695 = vmatprep.subr.bf16.mxu0 %v780_v5  ;;  %723 = vmatprep.subr.bf16.mxu1 %v780_v5  ;;  %v783_v8 = vld [vmem:[%s913_s7 + $0x8] sm:$0xff]   ;;  %v785_v10 = vld [vmem:[%s913_s7 + $0x10] sm:$0xff]  }
  0x29   : > { %696 = vmatpush3.bf16.msra.mxu0 %v781_v6  ;;  %731 = vmatpush3.bf16.msra.mxu1 %v781_v6  ;;  %v786_v11 = vld [vmem:[%s913_s7 + $0x58] sm:$0xff]   ;;  %v788_v13 = vld [vmem:[%s913_s7 + $0x60] sm:$0xff]   ;;  %v790_v15 = vld [vmem:[%s913_s7 + $0x68] sm:$0xff]  }
  0x2a   : > { %697 = vmatprep.subr.bf16.mxu0 %v782_v7  ;;  %724 = vmatprep.subr.bf16.mxu1 %v782_v7  ;;  %v787_v12 = vld [vmem:[%s913_s7 + $0x18] sm:$0xff]   ;;  %v789_v14 = vld [vmem:[%s913_s7 + $0x20] sm:$0xff]   ;;  %v791_v18 = vld [vmem:[%s913_s7 + $0x28] sm:$0xff]  }
  0x2b   : > { %v798_v16 = vld [vmem:[%s915_s8 + $0x4] ss:$8 sps:$4 sm:$0xff]   ;;  %v801_v17 = vld [vmem:[%s915_s8 + $0x14] ss:$8 sps:$4 sm:$0xff]   ;;  %v796_v23 = vld [vmem:[%s915_s8] ss:$8 sps:$4 sm:$0xff]  }
  0x2c   : > { %v792_v19 = vld [vmem:[%s913_s7 + $0x70] sm:$0xff]   ;;  %497 = vmatprep.mubr.bf16.mxu0 %v798_v16  ;;  %505 = vmatprep.mubr.bf16.mxu1 %v801_v17  ;;  %v794_v21 = vld [vmem:[%s913_s7 + $0x78] sm:$0xff]   ;;  %v309_v27 = vld [vmem:[#allocation2] sm:$0xff] }
  0x2d   : > { %698 = vmatpush3.bf16.msra.mxu0 %v783_v8  ;;  %732 = vmatpush3.bf16.msra.mxu1 %v783_v8  ;;  %v793_v20 = vld [vmem:[%s913_s7 + $0x30] sm:$0xff]   ;;  %v795_v22 = vld [vmem:[%s913_s7 + $0x38] sm:$0xff]   ;;  %v310_v35 = vld [vmem:[#allocation2 + $0x8] sm:$0xff] }
  0x2e   : > { %699 = vmatprep.subr.bf16.mxu0 %v784_v9  ;;  %725 = vmatprep.subr.bf16.mxu1 %v784_v9  ;;  %v799_v24 = vld [vmem:[%s915_s8 + $0x10] ss:$8 sps:$4 sm:$0xff]   ;;  %v689_v46 = vld [vmem:[%s971_s2] ss:$0 sm:$0xff] (!%p688_p11) }
  0x2f   : > { %v311_v29 = vld [vmem:[#allocation2 + $0x10] sm:$0xff]  ;;  %v312_v37 = vld [vmem:[#allocation2 + $0x18] sm:$0xff] }
  0x31   : > { %700 = vmatpush3.bf16.msra.mxu0 %v785_v10  ;;  %733 = vmatpush3.bf16.msra.mxu1 %v785_v10 }
  0x32   : > { %701 = vmatprep.subr.bf16.mxu0 %v786_v11  ;;  %726 = vmatprep.subr.bf16.mxu1 %v786_v11 }
  0x35   : > { %702 = vmatpush3.bf16.msra.mxu0 %v787_v12  ;;  %734 = vmatpush3.bf16.msra.mxu1 %v787_v12 }
  0x36   : > { %703 = vmatprep.subr.bf16.mxu0 %v788_v13  ;;  %727 = vmatprep.subr.bf16.mxu1 %v788_v13 }
  0x39   : > { %704 = vmatpush3.bf16.msra.mxu0 %v789_v14  ;;  %735 = vmatpush3.bf16.msra.mxu1 %v789_v14 }
  0x3a   : > { %705 = vmatprep.subr.bf16.mxu0 %v790_v15  ;;  %728 = vmatprep.subr.bf16.mxu1 %v790_v15 }
  0x3d   : > { %706 = vmatpush3.bf16.msra.mxu0 %v791_v18  ;;  %736 = vmatpush3.bf16.msra.mxu1 %v791_v18 }
  0x3e   : > { %707 = vmatprep.subr.bf16.mxu0 %v792_v19  ;;  %729 = vmatprep.subr.bf16.mxu1 %v792_v19 }
  0x41   : > { %708 = vmatpush3.bf16.msra.mxu0 %v793_v20  ;;  %737 = vmatpush3.bf16.msra.mxu1 %v793_v20 }
  0x42   : > { %709 = vmatprep.subr.bf16.mxu0 %v794_v21  ;;  %730 = vmatprep.subr.bf16.mxu1 %v794_v21 }
  0x45   : > { %710 = vmatpush3.bf16.msra.mxu0 %v795_v22  ;;  %738 = vmatpush3.bf16.msra.mxu1 %v795_v22 }
  0x48   : > { %498 = vmatmul.mubr.bf16.vlgmr.msra.gmra.mrb[0].mxu0 %v796_v23  ;;  %506 = vmatmul.mubr.bf16.vlgmr.msra.gmra.mrb[0].mxu1 %v799_v24 }
 0x11b   : > { %v711_v25 = vpop.f32.mrb[0].mxu0  ;;  %v717_v26 = vpop.f32.mrb[0].mxu1 }
 0x11c   : > { %v712_v28 = vpop.f32.mrb[1].mxu0  ;;  %v718_v30 = vpop.f32.mrb[1].mxu1 }
 0x11d   : > { %v713_v31 = vadd.f32 %v712_v28, %v711_v25  ;;  %v719_v32 = vadd.f32 %v718_v30, %v717_v26  ;;  %v714_v33 = vpop.f32.mrb[2].mxu0  ;;  %v720_v34 = vpop.f32.mrb[2].mxu1  ;;  %525 = sbr.rel (%p688_p11) target bundleno = 302 (0x12e), region = 78 }
 0x11e   : > { %v715_v36 = vpop.f32.mrb[3].mxu0  ;;  %v721_v38 = vpop.f32.mrb[3].mxu1 }
 0x11f   : > { %v514_v39 = vadd.f32 %v713_v31, %v309_v27  ;;  %v516_v40 = vadd.f32 %v719_v32, %v311_v29  ;;  %v716_v41 = vadd.f32 %v715_v36, %v714_v33  ;;  %v722_v42 = vadd.f32 %v721_v38, %v720_v34 }
 0x121   : > { %518 = vst [vmem:[#allocation2] sm:$0xff] %v514_v39  ;;  %520 = vst [vmem:[#allocation2 + $0x10] sm:$0xff] %v516_v40  ;;  %v515_v43 = vadd.f32 %v716_v41, %v310_v35  ;;  %v517_v44 = vadd.f32 %v722_v42, %v312_v37 }
 0x123   : > { %519 = vst [vmem:[#allocation2 + $0x8] sm:$0xff] %v515_v43  ;;  %521 = vst [vmem:[#allocation2 + $0x18] sm:$0xff] %v517_v44 }
 0x128   : > { %v526_v45 = vld [vmem:[#allocation2] sm:$0xff]  ;;  %v528_v50 = vld [vmem:[#allocation2 + $0x10] sm:$0xff] }
 0x129   : > { %v537_v48 = vadd.f32 %v689_v46, %v526_v45  ;;  %v539_v52 = vadd.f32 %v689_v46, %v528_v50 }
 0x12a   : > { %v527_v47 = vld [vmem:[#allocation2 + $0x8] sm:$0xff]  ;;  %v529_v51 = vld [vmem:[#allocation2 + $0x18] sm:$0xff] }
 0x12b   : > { %v538_v49 = vadd.f32 %v689_v46, %v527_v47  ;;  %v540_v53 = vadd.f32 %v689_v46, %v529_v51  ;;  %541 = vst [vmem:[%s972_s3] sm:$0xff] %v537_v48  ;;  %543 = vst [vmem:[%s972_s3 + $0x10] sm:$0xff] %v539_v52 }
 0x12d   : > { %542 = vst [vmem:[%s972_s3 + $0x8] sm:$0xff] %v538_v49  ;;  %544 = vst [vmem:[%s972_s3 + $0x18] sm:$0xff] %v540_v53 }
 0x12e PF: > { %s13_s16 = sadd.s32 1, %s840_s16   ;;  %s973_s12 = smov %s828_s13 }
 0x12f   : > { %p10_p12 = scmp.ge.s32.totalorder %s13_s16, 7   ;;  %s974_s13 = smov %s898_s20 }
 0x130   : > { %s975_s14 = smov %s836_s15  ;;  %s976_s15 = smov %s978_s17 }
 0x131   :  { %12 = sbr.rel (!%p10_p12) target bundleno = 3 (0x3), region = 119 }

</bundles_post_ra>
